<compile_context>
chip_gen: v7x
topology: tpu7x:2x2x1
jax: 0.10.0
libtpu: 0.0.40
codegen_flags: <defaults>
</compile_context>

<pallas_src>
import math

import jax
import jax.numpy as jnp
from jax.experimental import pallas as pl
from jax.experimental.pallas import tpu as pltpu

D_MODEL = 32
N_HEADS = 4
D_FF = 64
EPS = 1e-5                     # torch.nn.LayerNorm default eps
W_PACK = 6 * D_MODEL           # packed projection width: [V'(4*32) | Q(32) | K(32)]


def _layer_norm(x, gamma, beta):
    mean = jnp.mean(x, axis=-1, keepdims=True)
    xc = x - mean
    var = jnp.mean(xc * xc, axis=-1, keepdims=True)
    return xc * jax.lax.rsqrt(var + EPS) * gamma + beta


def _make_kernel(TB, L):
    D, H = D_MODEL, N_HEADS
    dk = D // H
    GL = TB * L                                    # packed token rows per tile

    def kernel(x_ref, colcode_ref, rowcode_ref, wp_ref, w1_ref, w2_ref, vecs_ref, o_ref):
        f32, bf16 = jnp.float32, jnp.bfloat16

        # lane-dense (TB, L*D) slab -> (GL, D) token rows; packed row index = l*TB + b.
        x = jnp.concatenate(
            [x_ref[:, l * D:(l + 1) * D].astype(f32) for l in range(L)], axis=0)

        # packed small vectors (rows: bqkv, bf1, g1, be1, g2, be2, bo, bf2)
        bqkv = vecs_ref[0:1, :]
        bf1 = vecs_ref[1:2, 0:D_FF]
        g1, be1 = vecs_ref[2:3, 0:D], vecs_ref[3:4, 0:D]
        g2, be2 = vecs_ref[4:5, 0:D], vecs_ref[5:6, 0:D]
        bo, bf2 = vecs_ref[6:7, 0:D], vecs_ref[7:8, 0:D]

        # ---- sublayer 0: x + self_attn(LayerNorm(x)) ----
        xn = _layer_norm(x, g1, be1)
        qkv = jnp.dot(xn.astype(bf16), wp_ref[...],
                      preferred_element_type=f32) + bqkv          # (GL, 6D)
        vprime = qkv[:, 0:H * D]            # (GL, 4D): per-head V @ Wo_h (Wo folded in)
        q = qkv[:, H * D:(H + 1) * D]       # 1/sqrt(dk) folded into Wq / bq
        k = qkv[:, (H + 1) * D:(H + 2) * D]

        # block-diagonal packed attention bias: keep (row, col) iff same sequence and the
        # key column is unmasked (colcode = sequence id, or -1 where the key is masked).
        keep = rowcode_ref[...] == colcode_ref[0]                 # (GL,1)==(1,GL)->(GL,GL)
        bias = jnp.where(keep, 0.0, -1e9).astype(f32)

        kt = k.T                                                  # (D, GL), one transpose
        ps = []
        for h in range(H):                                        # static unroll, H = 4
            qh = q[:, h * dk:(h + 1) * dk].astype(bf16)
            kth = kt[h * dk:(h + 1) * dk, :].astype(bf16)
            s = jnp.dot(qh, kth, preferred_element_type=f32) + bias
            s = s - jnp.max(s, axis=-1, keepdims=True)            # mask / overflow safety
            p = jnp.exp(s)
            p = p * pl.reciprocal(jnp.sum(p, axis=-1, keepdims=True), approx=True)
            ps.append(p.astype(bf16))

        if GL % 128 == 0:
            # one well-filled PV matmul: [p0|..|p3] (GL, 4GL) @ [v'0;..;v'3] (4GL, D)
            pcat = jnp.concatenate(ps, axis=1)
            vstk = jnp.concatenate(
                [vprime[:, h * D:(h + 1) * D] for h in range(H)], axis=0).astype(bf16)
            attn = jnp.dot(pcat, vstk, preferred_element_type=f32)
        else:
            attn = jnp.zeros((GL, D), f32)
            for h in range(H):
                attn = attn + jnp.dot(
                    ps[h], vprime[:, h * D:(h + 1) * D].astype(bf16),
                    preferred_element_type=f32)

        x1 = x + attn + bo                  # dropout = identity (eval)

        # ---- sublayer 1: x1 + feed_forward(LayerNorm(x1)) ----
        xn2 = _layer_norm(x1, g2, be2)
        h1 = jnp.maximum(
            jnp.dot(xn2.astype(bf16), w1_ref[...], preferred_element_type=f32) + bf1, 0.0)
        ff = jnp.dot(h1.astype(bf16), w2_ref[...], preferred_element_type=f32) + bf2
        out = x1 + ff                       # (GL, D), rows ordered (l, b)

        # lane-dense store: packed row l*TB + b -> o_ref[b, l*D:(l+1)*D]
        for l in range(L):
            o_ref[:, l * D:(l + 1) * D] = out[l * TB:(l + 1) * TB, :].astype(o_ref.dtype)

    return kernel


def _choose_tile(B, L):
    """Generation-aware batch tile.

    v5e/v6e (1 TensorCore): prefer a single grid step (tb = B) so the ~0.35us per-step
    overhead is paid once.  v7x (2 TensorCores): prefer >= 2 steps so the ("parallel",)
    grid shards across both cores.  tb*L is also the packed-attention width, so it is
    capped (block-diagonal packing wastes ~tb-fold score FLOPs, cheap only while the
    score matrix stays a few hundred rows).  tb stays a multiple of 8 so all in-kernel
    sublane slices / concats are tile-aligned.
    """
    try:
        kind = jax.devices()[0].device_kind.lower()
    except Exception:
        kind = ""
    min_steps = 2 if "v7" in kind else 1
    max_rows = 512
    Bp = ((B + 7) // 8) * 8              # pad batch to a sublane-aligned multiple of 8
    tb_best = 8
    tb = 8
    while tb <= Bp:
        if Bp % tb == 0 and tb * L <= max_rows and Bp // tb >= min_steps:
            tb_best = tb
        tb += 8
    return Bp, tb_best


def transformer_encoder_layer(x, mask, params):
    """x: (B, L, D_MODEL) f32, mask: (B, 1, L) with 1 = keep, 0 = masked key."""
    B, L, D = x.shape
    assert D == D_MODEL
    dk = D // N_HEADS
    scale = 1.0 / math.sqrt(dk)

    Bp, tb = _choose_tile(B, L)
    n_steps = Bp // tb
    GL = tb * L

    mask2 = mask.reshape(B, L).astype(jnp.float32)
    if Bp != B:
        x = jnp.concatenate([x, jnp.zeros((Bp - B, L, D), x.dtype)], axis=0)
        mask2 = jnp.concatenate([mask2, jnp.zeros((Bp - B, L), mask2.dtype)], axis=0)

    # ---- weight preprocessing (done once, outside the kernel) ----
    wo = params["wo"]
    wv_p = jnp.concatenate(
        [params["wv"][:, h * dk:(h + 1) * dk] @ wo[h * dk:(h + 1) * dk, :]
         for h in range(N_HEADS)], axis=1)                               # (D, H*D)
    bv_p = jnp.concatenate(
        [params["bv"][:, h * dk:(h + 1) * dk] @ wo[h * dk:(h + 1) * dk, :]
         for h in range(N_HEADS)], axis=1)                               # (1, H*D)
    wp = jnp.concatenate([wv_p, params["wq"] * scale, params["wk"]],
                         axis=1).astype(jnp.bfloat16)                    # (D, 6D)
    bqkv = jnp.concatenate([bv_p, params["bq"] * scale, params["bk"]], axis=1)  # (1, 6D)
    w1 = params["w1"].astype(jnp.bfloat16)
    w2 = params["w2"].astype(jnp.bfloat16)

    def pad_row(v):
        return jnp.pad(v, ((0, 0), (0, W_PACK - v.shape[1])))
    vecs = jnp.concatenate(
        [pad_row(bqkv), pad_row(params["bf1"]),
         pad_row(params["g1"]), pad_row(params["be1"]),
         pad_row(params["g2"]), pad_row(params["be2"]),
         pad_row(params["bo"]), pad_row(params["bf2"])], axis=0)         # (8, 6D)

    # lane-dense input slab + packed-attention code vectors
    x_slab = x.reshape(Bp, L * D)
    # packed row/column order inside a tile is (l, b): index j -> (l = j//tb, b = j%tb)
    seq_row = jnp.tile(jnp.arange(tb, dtype=jnp.float32), L)             # (GL,)
    kmask = mask2.reshape(n_steps, tb, L).transpose(0, 2, 1).reshape(n_steps, GL)
    colcode = jnp.where(kmask > 0.5, seq_row[None, :], -1.0).reshape(n_steps, 1, GL)
    rowcode = seq_row.reshape(GL, 1)

    kernel = _make_kernel(tb, L)
    const2 = lambda s: pl.BlockSpec(s, lambda t: (0, 0))

    out = pl.pallas_call(
        kernel,
        out_shape=jax.ShapeDtypeStruct((Bp, L * D), x.dtype),
        grid=(n_steps,),
        in_specs=[
            pl.BlockSpec((tb, L * D), lambda t: (t, 0)),      # x slab (lane-dense)
            pl.BlockSpec((1, 1, GL), lambda t: (t, 0, 0)),    # per-tile column codes
            const2((GL, 1)),                                  # row codes (tile-invariant)
            const2((D, W_PACK)),                              # packed [V'|Q|K] weight
            const2((D, D_FF)),                                # W1
            const2((D_FF, D)),                                # W2
            const2((8, W_PACK)),                              # packed LN / bias vectors
        ],
        out_specs=pl.BlockSpec((tb, L * D), lambda t: (t, 0)),
        compiler_params=pltpu.CompilerParams(
            dimension_semantics=("parallel",),
            vmem_limit_bytes=64 * 1024 * 1024),               # headroom if tiles grow
    )(x_slab, colcode, rowcode, wp, w1, w2, vecs)

    out = out.reshape(Bp, L, D)
    return out[:B] if Bp != B else out


def reference_forward(x, mask, params):
    """Pure-JAX reference mirroring the PyTorch module semantics (eval mode), in f32."""
    dk = D_MODEL // N_HEADS

    def ln(z, g, b):
        m = jnp.mean(z, axis=-1, keepdims=True)
        v = jnp.mean((z - m) ** 2, axis=-1, keepdims=True)
        return (z - m) / jnp.sqrt(v + EPS) * g + b

    xn = ln(x, params["g1"][0], params["be1"][0])
    q = xn @ params["wq"] + params["bq"][0]
    k = xn @ params["wk"] + params["bk"][0]
    v = xn @ params["wv"] + params["bv"][0]
    B, L, D = x.shape
    q = q.reshape(B, L, N_HEADS, dk).transpose(0, 2, 1, 3)
    k = k.reshape(B, L, N_HEADS, dk).transpose(0, 2, 1, 3)
    v = v.reshape(B, L, N_HEADS, dk).transpose(0, 2, 1, 3)
    scores = jnp.einsum("bhqd,bhkd->bhqk", q, k) / math.sqrt(dk)
    scores = jnp.where(mask[:, None, :, :] == 0, -1e9, scores)
    p = jax.nn.softmax(scores, axis=-1)
    attn = jnp.einsum("bhqk,bhkd->bhqd", p, v).transpose(0, 2, 1, 3).reshape(B, L, D)
    attn = attn @ params["wo"] + params["bo"][0]
    x1 = x + attn
    xn2 = ln(x1, params["g2"][0], params["be2"][0])
    ff = jnp.maximum(xn2 @ params["w1"] + params["bf1"][0], 0.0) @ params["w2"] + params["bf2"][0]
    return x1 + ff


def init_params(key):
    ks = jax.random.split(key, 16)
    n = lambda k, shape, s=0.05: s * jax.random.normal(k, shape, jnp.float32)
    return {
        "wq": n(ks[0], (D_MODEL, D_MODEL)), "bq": n(ks[1], (1, D_MODEL)),
        "wk": n(ks[2], (D_MODEL, D_MODEL)), "bk": n(ks[3], (1, D_MODEL)),
        "wv": n(ks[4], (D_MODEL, D_MODEL)), "bv": n(ks[5], (1, D_MODEL)),
        "wo": n(ks[6], (D_MODEL, D_MODEL)), "bo": n(ks[7], (1, D_MODEL)),
        "g1": 1.0 + n(ks[8], (1, D_MODEL)), "be1": n(ks[9], (1, D_MODEL)),
        "g2": 1.0 + n(ks[10], (1, D_MODEL)), "be2": n(ks[11], (1, D_MODEL)),
        "w1": n(ks[12], (D_MODEL, D_FF)), "bf1": n(ks[13], (1, D_FF)),
        "w2": n(ks[14], (D_FF, D_MODEL)), "bf2": n(ks[15], (1, D_MODEL)),
    }


if __name__ == "__main__":
    key = jax.random.PRNGKey(0)
    k_x, k_p = jax.random.split(key)

    B, L = 16, 8
    x = jax.random.normal(k_x, (B, L, D_MODEL), jnp.float32)
    # mask: (B, 1, L); deterministic valid lengths in [1, L]
    lengths = (jnp.arange(B) % L) + 1
    mask = (jnp.arange(L)[None, None, :] < lengths[:, None, None]).astype(jnp.float32)

    params = init_params(k_p)

    out = transformer_encoder_layer(x, mask, params)
    out = jax.block_until_ready(out)

    ref = reference_forward(x, mask, params)
    assert out.shape == (B, L, D_MODEL)
    # bf16 MXU operands (f32 accumulation) + approximate reciprocal => compare against the
    # f32 reference with a correspondingly looser tolerance.
    err = float(jnp.max(jnp.abs(out - ref)))
    assert jnp.allclose(out, ref, atol=2e-2, rtol=2e-2), (
        "mismatch vs. reference, max abs err = %s" % err)

    print("KERNEL_OK")
</pallas_src>

<mosaic_0001>
module attributes {stable_mosaic.version = 11 : i64} {
  func.func @kernel(%arg0: i32, %arg1: memref<16x256xf32, #tpu.memory_space<vmem>>, %arg2: memref<1x1x128xf32, #tpu.memory_space<vmem>>, %arg3: memref<128x1xf32, #tpu.memory_space<vmem>>, %arg4: memref<32x192xbf16, #tpu.memory_space<vmem>>, %arg5: memref<32x64xbf16, #tpu.memory_space<vmem>>, %arg6: memref<64x32xbf16, #tpu.memory_space<vmem>>, %arg7: memref<8x192xf32, #tpu.memory_space<vmem>>, %arg8: memref<16x256xf32, #tpu.memory_space<vmem>>) attributes {dimension_semantics = [#tpu.dimension_semantics<parallel>], iteration_bounds = array<i64: 1>, scalar_prefetch = 0 : i64, scratch_operands = 0 : i64, tpu.core_type = #tpu.core_type<tc>, window_params = [{transform_indices = @transform_0, window_bounds = array<i64: 16, 256>}, {transform_indices = @transform_1, window_bounds = array<i64: 1, 1, 128>}, {pipeline_mode = #tpu.pipeline_mode<synchronous>, transform_indices = @transform_2, window_bounds = array<i64: 128, 1>}, {pipeline_mode = #tpu.pipeline_mode<synchronous>, transform_indices = @transform_3, window_bounds = array<i64: 32, 192>}, {pipeline_mode = #tpu.pipeline_mode<synchronous>, transform_indices = @transform_4, window_bounds = array<i64: 32, 64>}, {pipeline_mode = #tpu.pipeline_mode<synchronous>, transform_indices = @transform_5, window_bounds = array<i64: 64, 32>}, {pipeline_mode = #tpu.pipeline_mode<synchronous>, transform_indices = @transform_6, window_bounds = array<i64: 8, 192>}, {transform_indices = @transform_7, window_bounds = array<i64: 16, 256>}]} {
    %c0 = arith.constant 0 : index
    %c0_0 = arith.constant 0 : index
    %0 = vector.load %arg1[%c0, %c0_0] : memref<16x256xf32, #tpu.memory_space<vmem>>, vector<16x32xf32>
    %c0_1 = arith.constant 0 : index
    %c32 = arith.constant 32 : index
    %1 = vector.load %arg1[%c0_1, %c32] : memref<16x256xf32, #tpu.memory_space<vmem>>, vector<16x32xf32>
    %c0_2 = arith.constant 0 : index
    %c64 = arith.constant 64 : index
    %2 = vector.load %arg1[%c0_2, %c64] : memref<16x256xf32, #tpu.memory_space<vmem>>, vector<16x32xf32>
    %c0_3 = arith.constant 0 : index
    %c96 = arith.constant 96 : index
    %3 = vector.load %arg1[%c0_3, %c96] : memref<16x256xf32, #tpu.memory_space<vmem>>, vector<16x32xf32>
    %c0_4 = arith.constant 0 : index
    %c128 = arith.constant 128 : index
    %4 = vector.load %arg1[%c0_4, %c128] : memref<16x256xf32, #tpu.memory_space<vmem>>, vector<16x32xf32>
    %c0_5 = arith.constant 0 : index
    %c160 = arith.constant 160 : index
    %5 = vector.load %arg1[%c0_5, %c160] : memref<16x256xf32, #tpu.memory_space<vmem>>, vector<16x32xf32>
    %c0_6 = arith.constant 0 : index
    %c192 = arith.constant 192 : index
    %6 = vector.load %arg1[%c0_6, %c192] : memref<16x256xf32, #tpu.memory_space<vmem>>, vector<16x32xf32>
    %c0_7 = arith.constant 0 : index
    %c224 = arith.constant 224 : index
    %7 = vector.load %arg1[%c0_7, %c224] : memref<16x256xf32, #tpu.memory_space<vmem>>, vector<16x32xf32>
    %8 = tpu.concatenate %0, %1, %2, %3, %4, %5, %6, %7 in 0 : vector<16x32xf32>, vector<16x32xf32>, vector<16x32xf32>, vector<16x32xf32>, vector<16x32xf32>, vector<16x32xf32>, vector<16x32xf32>, vector<16x32xf32> -> vector<128x32xf32>
    %c0_8 = arith.constant 0 : index
    %c0_9 = arith.constant 0 : index
    %9 = vector.load %arg7[%c0_8, %c0_9] : memref<8x192xf32, #tpu.memory_space<vmem>>, vector<1x192xf32>
    %c1 = arith.constant 1 : index
    %c0_10 = arith.constant 0 : index
    %10 = vector.load %arg7[%c1, %c0_10] : memref<8x192xf32, #tpu.memory_space<vmem>>, vector<1x64xf32>
    %c2 = arith.constant 2 : index
    %c0_11 = arith.constant 0 : index
    %11 = vector.load %arg7[%c2, %c0_11] : memref<8x192xf32, #tpu.memory_space<vmem>>, vector<1x32xf32>
    %c3 = arith.constant 3 : index
    %c0_12 = arith.constant 0 : index
    %12 = vector.load %arg7[%c3, %c0_12] : memref<8x192xf32, #tpu.memory_space<vmem>>, vector<1x32xf32>
    %c4 = arith.constant 4 : index
    %c0_13 = arith.constant 0 : index
    %13 = vector.load %arg7[%c4, %c0_13] : memref<8x192xf32, #tpu.memory_space<vmem>>, vector<1x32xf32>
    %c5 = arith.constant 5 : index
    %c0_14 = arith.constant 0 : index
    %14 = vector.load %arg7[%c5, %c0_14] : memref<8x192xf32, #tpu.memory_space<vmem>>, vector<1x32xf32>
    %c6 = arith.constant 6 : index
    %c0_15 = arith.constant 0 : index
    %15 = vector.load %arg7[%c6, %c0_15] : memref<8x192xf32, #tpu.memory_space<vmem>>, vector<1x32xf32>
    %c7 = arith.constant 7 : index
    %c0_16 = arith.constant 0 : index
    %16 = vector.load %arg7[%c7, %c0_16] : memref<8x192xf32, #tpu.memory_space<vmem>>, vector<1x32xf32>
    %cst = arith.constant dense<0.000000e+00> : vector<128xf32>
    %17 = vector.multi_reduction <add>, %8, %cst [1] : vector<128x32xf32> to vector<128xf32>
    %18 = vector.shape_cast %17 : vector<128xf32> to vector<128x1xf32>
    %cst_17 = arith.constant 3.200000e+01 : f32
    %19 = vector.broadcast %cst_17 : f32 to vector<128x1xf32>
    %20 = arith.divf %18, %19 : vector<128x1xf32>
    %21 = vector.broadcast %20 : vector<128x1xf32> to vector<128x32xf32>
    %22 = arith.subf %8, %21 : vector<128x32xf32>
    %23 = arith.mulf %22, %22 : vector<128x32xf32>
    %cst_18 = arith.constant dense<0.000000e+00> : vector<128xf32>
    %24 = vector.multi_reduction <add>, %23, %cst_18 [1] : vector<128x32xf32> to vector<128xf32>
    %25 = vector.shape_cast %24 : vector<128xf32> to vector<128x1xf32>
    %cst_19 = arith.constant 3.200000e+01 : f32
    %26 = vector.broadcast %cst_19 : f32 to vector<128x1xf32>
    %27 = arith.divf %25, %26 : vector<128x1xf32>
    %cst_20 = arith.constant 9.99999974E-6 : f32
    %28 = vector.broadcast %cst_20 : f32 to vector<128x1xf32>
    %29 = arith.addf %27, %28 : vector<128x1xf32>
    %30 = math.rsqrt %29 : vector<128x1xf32>
    %31 = vector.broadcast %30 : vector<128x1xf32> to vector<128x32xf32>
    %32 = arith.mulf %22, %31 : vector<128x32xf32>
    %33 = vector.broadcast %11 : vector<1x32xf32> to vector<128x32xf32>
    %34 = arith.mulf %32, %33 : vector<128x32xf32>
    %35 = vector.broadcast %12 : vector<1x32xf32> to vector<128x32xf32>
    %36 = arith.addf %34, %35 : vector<128x32xf32>
    %37 = arith.truncf %36 : vector<128x32xf32> to vector<128x32xbf16>
    %c0_21 = arith.constant 0 : index
    %c0_22 = arith.constant 0 : index
    %38 = vector.load %arg4[%c0_21, %c0_22] : memref<32x192xbf16, #tpu.memory_space<vmem>>, vector<32x192xbf16>
    %cst_23 = arith.constant dense<0.000000e+00> : vector<128x192xf32>
    %39 = tpu.matmul %37, %38, %cst_23 {dimension_numbers = #tpu.dot_dimension_numbers<[1], [0], [0], [1], [0, 0, 1, 1], [], []>} : vector<128x32xbf16>, vector<32x192xbf16>, vector<128x192xf32> -> vector<128x192xf32>
    %40 = vector.broadcast %9 : vector<1x192xf32> to vector<128x192xf32>
    %41 = arith.addf %39, %40 : vector<128x192xf32>
    %42 = vector.extract_strided_slice %41 {offsets = [0, 0], sizes = [128, 128], strides = [1, 1]} : vector<128x192xf32> to vector<128x128xf32>
    %43 = vector.extract_strided_slice %41 {offsets = [0, 128], sizes = [128, 32], strides = [1, 1]} : vector<128x192xf32> to vector<128x32xf32>
    %44 = vector.extract_strided_slice %41 {offsets = [0, 160], sizes = [128, 32], strides = [1, 1]} : vector<128x192xf32> to vector<128x32xf32>
    %c0_24 = arith.constant 0 : index
    %c0_25 = arith.constant 0 : index
    %45 = vector.load %arg3[%c0_24, %c0_25] : memref<128x1xf32, #tpu.memory_space<vmem>>, vector<128x1xf32>
    %c0_26 = arith.constant 0 : index
    %c0_27 = arith.constant 0 : index
    %c0_28 = arith.constant 0 : index
    %46 = vector.load %arg2[%c0_26, %c0_27, %c0_28] : memref<1x1x128xf32, #tpu.memory_space<vmem>>, vector<1x1x128xf32>
    %47 = vector.shape_cast %46 : vector<1x1x128xf32> to vector<1x128xf32>
    %48 = vector.broadcast %45 : vector<128x1xf32> to vector<128x128xf32>
    %49 = vector.broadcast %47 : vector<1x128xf32> to vector<128x128xf32>
    %50 = arith.cmpf oeq, %48, %49 : vector<128x128xf32>
    %cst_29 = arith.constant 0.000000e+00 : f32
    %cst_30 = arith.constant -1.000000e+09 : f32
    %51 = vector.broadcast %cst_29 : f32 to vector<128x128xf32>
    %52 = vector.broadcast %cst_30 : f32 to vector<128x128xf32>
    %53 = arith.select %50, %51, %52 : vector<128x128xi1>, vector<128x128xf32>
    %54 = tpu.transpose %44, [1, 0] : vector<128x32xf32> -> vector<32x128xf32>
    %55 = vector.extract_strided_slice %43 {offsets = [0, 0], sizes = [128, 8], strides = [1, 1]} : vector<128x32xf32> to vector<128x8xf32>
    %56 = arith.truncf %55 : vector<128x8xf32> to vector<128x8xbf16>
    %57 = vector.extract_strided_slice %54 {offsets = [0, 0], sizes = [8, 128], strides = [1, 1]} : vector<32x128xf32> to vector<8x128xf32>
    %58 = arith.truncf %57 : vector<8x128xf32> to vector<8x128xbf16>
    %cst_31 = arith.constant dense<0.000000e+00> : vector<128x128xf32>
    %59 = tpu.matmul %56, %58, %cst_31 {dimension_numbers = #tpu.dot_dimension_numbers<[1], [0], [0], [1], [0, 0, 1, 1], [], []>} : vector<128x8xbf16>, vector<8x128xbf16>, vector<128x128xf32> -> vector<128x128xf32>
    %60 = arith.addf %59, %53 : vector<128x128xf32>
    %cst_32 = arith.constant dense<0xFF800000> : vector<128xf32>
    %61 = vector.multi_reduction <maximumf>, %60, %cst_32 [1] : vector<128x128xf32> to vector<128xf32>
    %62 = vector.shape_cast %61 : vector<128xf32> to vector<128x1xf32>
    %63 = vector.broadcast %62 : vector<128x1xf32> to vector<128x128xf32>
    %64 = arith.subf %60, %63 : vector<128x128xf32>
    %65 = math.exp %64 : vector<128x128xf32>
    %cst_33 = arith.constant dense<0.000000e+00> : vector<128xf32>
    %66 = vector.multi_reduction <add>, %65, %cst_33 [1] : vector<128x128xf32> to vector<128xf32>
    %67 = vector.shape_cast %66 : vector<128xf32> to vector<128x1xf32>
    %68 = tpu.reciprocal %67 {approx = true} : vector<128x1xf32> -> vector<128x1xf32>
    %69 = vector.broadcast %68 : vector<128x1xf32> to vector<128x128xf32>
    %70 = arith.mulf %65, %69 : vector<128x128xf32>
    %71 = arith.truncf %70 : vector<128x128xf32> to vector<128x128xbf16>
    %72 = vector.extract_strided_slice %43 {offsets = [0, 8], sizes = [128, 8], strides = [1, 1]} : vector<128x32xf32> to vector<128x8xf32>
    %73 = arith.truncf %72 : vector<128x8xf32> to vector<128x8xbf16>
    %74 = vector.extract_strided_slice %54 {offsets = [8, 0], sizes = [8, 128], strides = [1, 1]} : vector<32x128xf32> to vector<8x128xf32>
    %75 = arith.truncf %74 : vector<8x128xf32> to vector<8x128xbf16>
    %cst_34 = arith.constant dense<0.000000e+00> : vector<128x128xf32>
    %76 = tpu.matmul %73, %75, %cst_34 {dimension_numbers = #tpu.dot_dimension_numbers<[1], [0], [0], [1], [0, 0, 1, 1], [], []>} : vector<128x8xbf16>, vector<8x128xbf16>, vector<128x128xf32> -> vector<128x128xf32>
    %77 = arith.addf %76, %53 : vector<128x128xf32>
    %cst_35 = arith.constant dense<0xFF800000> : vector<128xf32>
    %78 = vector.multi_reduction <maximumf>, %77, %cst_35 [1] : vector<128x128xf32> to vector<128xf32>
    %79 = vector.shape_cast %78 : vector<128xf32> to vector<128x1xf32>
    %80 = vector.broadcast %79 : vector<128x1xf32> to vector<128x128xf32>
    %81 = arith.subf %77, %80 : vector<128x128xf32>
    %82 = math.exp %81 : vector<128x128xf32>
    %cst_36 = arith.constant dense<0.000000e+00> : vector<128xf32>
    %83 = vector.multi_reduction <add>, %82, %cst_36 [1] : vector<128x128xf32> to vector<128xf32>
    %84 = vector.shape_cast %83 : vector<128xf32> to vector<128x1xf32>
    %85 = tpu.reciprocal %84 {approx = true} : vector<128x1xf32> -> vector<128x1xf32>
    %86 = vector.broadcast %85 : vector<128x1xf32> to vector<128x128xf32>
    %87 = arith.mulf %82, %86 : vector<128x128xf32>
    %88 = arith.truncf %87 : vector<128x128xf32> to vector<128x128xbf16>
    %89 = vector.extract_strided_slice %43 {offsets = [0, 16], sizes = [128, 8], strides = [1, 1]} : vector<128x32xf32> to vector<128x8xf32>
    %90 = arith.truncf %89 : vector<128x8xf32> to vector<128x8xbf16>
    %91 = vector.extract_strided_slice %54 {offsets = [16, 0], sizes = [8, 128], strides = [1, 1]} : vector<32x128xf32> to vector<8x128xf32>
    %92 = arith.truncf %91 : vector<8x128xf32> to vector<8x128xbf16>
    %cst_37 = arith.constant dense<0.000000e+00> : vector<128x128xf32>
    %93 = tpu.matmul %90, %92, %cst_37 {dimension_numbers = #tpu.dot_dimension_numbers<[1], [0], [0], [1], [0, 0, 1, 1], [], []>} : vector<128x8xbf16>, vector<8x128xbf16>, vector<128x128xf32> -> vector<128x128xf32>
    %94 = arith.addf %93, %53 : vector<128x128xf32>
    %cst_38 = arith.constant dense<0xFF800000> : vector<128xf32>
    %95 = vector.multi_reduction <maximumf>, %94, %cst_38 [1] : vector<128x128xf32> to vector<128xf32>
    %96 = vector.shape_cast %95 : vector<128xf32> to vector<128x1xf32>
    %97 = vector.broadcast %96 : vector<128x1xf32> to vector<128x128xf32>
    %98 = arith.subf %94, %97 : vector<128x128xf32>
    %99 = math.exp %98 : vector<128x128xf32>
    %cst_39 = arith.constant dense<0.000000e+00> : vector<128xf32>
    %100 = vector.multi_reduction <add>, %99, %cst_39 [1] : vector<128x128xf32> to vector<128xf32>
    %101 = vector.shape_cast %100 : vector<128xf32> to vector<128x1xf32>
    %102 = tpu.reciprocal %101 {approx = true} : vector<128x1xf32> -> vector<128x1xf32>
    %103 = vector.broadcast %102 : vector<128x1xf32> to vector<128x128xf32>
    %104 = arith.mulf %99, %103 : vector<128x128xf32>
    %105 = arith.truncf %104 : vector<128x128xf32> to vector<128x128xbf16>
    %106 = vector.extract_strided_slice %43 {offsets = [0, 24], sizes = [128, 8], strides = [1, 1]} : vector<128x32xf32> to vector<128x8xf32>
    %107 = arith.truncf %106 : vector<128x8xf32> to vector<128x8xbf16>
    %108 = vector.extract_strided_slice %54 {offsets = [24, 0], sizes = [8, 128], strides = [1, 1]} : vector<32x128xf32> to vector<8x128xf32>
    %109 = arith.truncf %108 : vector<8x128xf32> to vector<8x128xbf16>
    %cst_40 = arith.constant dense<0.000000e+00> : vector<128x128xf32>
    %110 = tpu.matmul %107, %109, %cst_40 {dimension_numbers = #tpu.dot_dimension_numbers<[1], [0], [0], [1], [0, 0, 1, 1], [], []>} : vector<128x8xbf16>, vector<8x128xbf16>, vector<128x128xf32> -> vector<128x128xf32>
    %111 = arith.addf %110, %53 : vector<128x128xf32>
    %cst_41 = arith.constant dense<0xFF800000> : vector<128xf32>
    %112 = vector.multi_reduction <maximumf>, %111, %cst_41 [1] : vector<128x128xf32> to vector<128xf32>
    %113 = vector.shape_cast %112 : vector<128xf32> to vector<128x1xf32>
    %114 = vector.broadcast %113 : vector<128x1xf32> to vector<128x128xf32>
    %115 = arith.subf %111, %114 : vector<128x128xf32>
    %116 = math.exp %115 : vector<128x128xf32>
    %cst_42 = arith.constant dense<0.000000e+00> : vector<128xf32>
    %117 = vector.multi_reduction <add>, %116, %cst_42 [1] : vector<128x128xf32> to vector<128xf32>
    %118 = vector.shape_cast %117 : vector<128xf32> to vector<128x1xf32>
    %119 = tpu.reciprocal %118 {approx = true} : vector<128x1xf32> -> vector<128x1xf32>
    %120 = vector.broadcast %119 : vector<128x1xf32> to vector<128x128xf32>
    %121 = arith.mulf %116, %120 : vector<128x128xf32>
    %122 = arith.truncf %121 : vector<128x128xf32> to vector<128x128xbf16>
    %123 = tpu.concatenate %71, %88, %105, %122 in 1 : vector<128x128xbf16>, vector<128x128xbf16>, vector<128x128xbf16>, vector<128x128xbf16> -> vector<128x512xbf16>
    %124 = vector.extract_strided_slice %42 {offsets = [0, 0], sizes = [128, 32], strides = [1, 1]} : vector<128x128xf32> to vector<128x32xf32>
    %125 = vector.extract_strided_slice %42 {offsets = [0, 32], sizes = [128, 32], strides = [1, 1]} : vector<128x128xf32> to vector<128x32xf32>
    %126 = vector.extract_strided_slice %42 {offsets = [0, 64], sizes = [128, 32], strides = [1, 1]} : vector<128x128xf32> to vector<128x32xf32>
    %127 = vector.extract_strided_slice %42 {offsets = [0, 96], sizes = [128, 32], strides = [1, 1]} : vector<128x128xf32> to vector<128x32xf32>
    %128 = tpu.concatenate %124, %125, %126, %127 in 0 : vector<128x32xf32>, vector<128x32xf32>, vector<128x32xf32>, vector<128x32xf32> -> vector<512x32xf32>
    %129 = arith.truncf %128 : vector<512x32xf32> to vector<512x32xbf16>
    %cst_43 = arith.constant dense<0.000000e+00> : vector<128x32xf32>
    %130 = tpu.matmul %123, %129, %cst_43 {dimension_numbers = #tpu.dot_dimension_numbers<[1], [0], [0], [1], [0, 0, 1, 1], [], []>} : vector<128x512xbf16>, vector<512x32xbf16>, vector<128x32xf32> -> vector<128x32xf32>
    %131 = arith.addf %8, %130 : vector<128x32xf32>
    %132 = vector.broadcast %15 : vector<1x32xf32> to vector<128x32xf32>
    %133 = arith.addf %131, %132 : vector<128x32xf32>
    %cst_44 = arith.constant dense<0.000000e+00> : vector<128xf32>
    %134 = vector.multi_reduction <add>, %133, %cst_44 [1] : vector<128x32xf32> to vector<128xf32>
    %135 = vector.shape_cast %134 : vector<128xf32> to vector<128x1xf32>
    %cst_45 = arith.constant 3.200000e+01 : f32
    %136 = vector.broadcast %cst_45 : f32 to vector<128x1xf32>
    %137 = arith.divf %135, %136 : vector<128x1xf32>
    %138 = vector.broadcast %137 : vector<128x1xf32> to vector<128x32xf32>
    %139 = arith.subf %133, %138 : vector<128x32xf32>
    %140 = arith.mulf %139, %139 : vector<128x32xf32>
    %cst_46 = arith.constant dense<0.000000e+00> : vector<128xf32>
    %141 = vector.multi_reduction <add>, %140, %cst_46 [1] : vector<128x32xf32> to vector<128xf32>
    %142 = vector.shape_cast %141 : vector<128xf32> to vector<128x1xf32>
    %cst_47 = arith.constant 3.200000e+01 : f32
    %143 = vector.broadcast %cst_47 : f32 to vector<128x1xf32>
    %144 = arith.divf %142, %143 : vector<128x1xf32>
    %cst_48 = arith.constant 9.99999974E-6 : f32
    %145 = vector.broadcast %cst_48 : f32 to vector<128x1xf32>
    %146 = arith.addf %144, %145 : vector<128x1xf32>
    %147 = math.rsqrt %146 : vector<128x1xf32>
    %148 = vector.broadcast %147 : vector<128x1xf32> to vector<128x32xf32>
    %149 = arith.mulf %139, %148 : vector<128x32xf32>
    %150 = vector.broadcast %13 : vector<1x32xf32> to vector<128x32xf32>
    %151 = arith.mulf %149, %150 : vector<128x32xf32>
    %152 = vector.broadcast %14 : vector<1x32xf32> to vector<128x32xf32>
    %153 = arith.addf %151, %152 : vector<128x32xf32>
    %154 = arith.truncf %153 : vector<128x32xf32> to vector<128x32xbf16>
    %c0_49 = arith.constant 0 : index
    %c0_50 = arith.constant 0 : index
    %155 = vector.load %arg5[%c0_49, %c0_50] : memref<32x64xbf16, #tpu.memory_space<vmem>>, vector<32x64xbf16>
    %cst_51 = arith.constant dense<0.000000e+00> : vector<128x64xf32>
    %156 = tpu.matmul %154, %155, %cst_51 {dimension_numbers = #tpu.dot_dimension_numbers<[1], [0], [0], [1], [0, 0, 1, 1], [], []>} : vector<128x32xbf16>, vector<32x64xbf16>, vector<128x64xf32> -> vector<128x64xf32>
    %157 = vector.broadcast %10 : vector<1x64xf32> to vector<128x64xf32>
    %158 = arith.addf %156, %157 : vector<128x64xf32>
    %cst_52 = arith.constant 0.000000e+00 : f32
    %159 = vector.broadcast %cst_52 : f32 to vector<128x64xf32>
    %160 = arith.maximumf %158, %159 : vector<128x64xf32>
    %161 = arith.truncf %160 : vector<128x64xf32> to vector<128x64xbf16>
    %c0_53 = arith.constant 0 : index
    %c0_54 = arith.constant 0 : index
    %162 = vector.load %arg6[%c0_53, %c0_54] : memref<64x32xbf16, #tpu.memory_space<vmem>>, vector<64x32xbf16>
    %cst_55 = arith.constant dense<0.000000e+00> : vector<128x32xf32>
    %163 = tpu.matmul %161, %162, %cst_55 {dimension_numbers = #tpu.dot_dimension_numbers<[1], [0], [0], [1], [0, 0, 1, 1], [], []>} : vector<128x64xbf16>, vector<64x32xbf16>, vector<128x32xf32> -> vector<128x32xf32>
    %164 = vector.broadcast %16 : vector<1x32xf32> to vector<128x32xf32>
    %165 = arith.addf %163, %164 : vector<128x32xf32>
    %166 = arith.addf %133, %165 : vector<128x32xf32>
    %167 = vector.extract_strided_slice %166 {offsets = [0, 0], sizes = [16, 32], strides = [1, 1]} : vector<128x32xf32> to vector<16x32xf32>
    %c0_56 = arith.constant 0 : index
    %c0_57 = arith.constant 0 : index
    %168 = vector.load %arg8[%c0_56, %c0_57] : memref<16x256xf32, #tpu.memory_space<vmem>>, vector<16x32xf32>
    tpu.vector_store %arg8[%c0_56, %c0_57], %167 {strides = array<i32>} : memref<16x256xf32, #tpu.memory_space<vmem>>, vector<16x32xf32>,
    %169 = vector.extract_strided_slice %166 {offsets = [16, 0], sizes = [16, 32], strides = [1, 1]} : vector<128x32xf32> to vector<16x32xf32>
    %c0_58 = arith.constant 0 : index
    %c32_59 = arith.constant 32 : index
    %170 = vector.load %arg8[%c0_58, %c32_59] : memref<16x256xf32, #tpu.memory_space<vmem>>, vector<16x32xf32>
    tpu.vector_store %arg8[%c0_58, %c32_59], %169 {strides = array<i32>} : memref<16x256xf32, #tpu.memory_space<vmem>>, vector<16x32xf32>,
    %171 = vector.extract_strided_slice %166 {offsets = [32, 0], sizes = [16, 32], strides = [1, 1]} : vector<128x32xf32> to vector<16x32xf32>
    %c0_60 = arith.constant 0 : index
    %c64_61 = arith.constant 64 : index
    %172 = vector.load %arg8[%c0_60, %c64_61] : memref<16x256xf32, #tpu.memory_space<vmem>>, vector<16x32xf32>
    tpu.vector_store %arg8[%c0_60, %c64_61], %171 {strides = array<i32>} : memref<16x256xf32, #tpu.memory_space<vmem>>, vector<16x32xf32>,
    %173 = vector.extract_strided_slice %166 {offsets = [48, 0], sizes = [16, 32], strides = [1, 1]} : vector<128x32xf32> to vector<16x32xf32>
    %c0_62 = arith.constant 0 : index
    %c96_63 = arith.constant 96 : index
    %174 = vector.load %arg8[%c0_62, %c96_63] : memref<16x256xf32, #tpu.memory_space<vmem>>, vector<16x32xf32>
    tpu.vector_store %arg8[%c0_62, %c96_63], %173 {strides = array<i32>} : memref<16x256xf32, #tpu.memory_space<vmem>>, vector<16x32xf32>,
    %175 = vector.extract_strided_slice %166 {offsets = [64, 0], sizes = [16, 32], strides = [1, 1]} : vector<128x32xf32> to vector<16x32xf32>
    %c0_64 = arith.constant 0 : index
    %c128_65 = arith.constant 128 : index
    %176 = vector.load %arg8[%c0_64, %c128_65] : memref<16x256xf32, #tpu.memory_space<vmem>>, vector<16x32xf32>
    tpu.vector_store %arg8[%c0_64, %c128_65], %175 {strides = array<i32>} : memref<16x256xf32, #tpu.memory_space<vmem>>, vector<16x32xf32>,
    %177 = vector.extract_strided_slice %166 {offsets = [80, 0], sizes = [16, 32], strides = [1, 1]} : vector<128x32xf32> to vector<16x32xf32>
    %c0_66 = arith.constant 0 : index
    %c160_67 = arith.constant 160 : index
    %178 = vector.load %arg8[%c0_66, %c160_67] : memref<16x256xf32, #tpu.memory_space<vmem>>, vector<16x32xf32>
    tpu.vector_store %arg8[%c0_66, %c160_67], %177 {strides = array<i32>} : memref<16x256xf32, #tpu.memory_space<vmem>>, vector<16x32xf32>,
    %179 = vector.extract_strided_slice %166 {offsets = [96, 0], sizes = [16, 32], strides = [1, 1]} : vector<128x32xf32> to vector<16x32xf32>
    %c0_68 = arith.constant 0 : index
    %c192_69 = arith.constant 192 : index
    %180 = vector.load %arg8[%c0_68, %c192_69] : memref<16x256xf32, #tpu.memory_space<vmem>>, vector<16x32xf32>
    tpu.vector_store %arg8[%c0_68, %c192_69], %179 {strides = array<i32>} : memref<16x256xf32, #tpu.memory_space<vmem>>, vector<16x32xf32>,
    %181 = vector.extract_strided_slice %166 {offsets = [112, 0], sizes = [16, 32], strides = [1, 1]} : vector<128x32xf32> to vector<16x32xf32>
    %c0_70 = arith.constant 0 : index
    %c224_71 = arith.constant 224 : index
    %182 = vector.load %arg8[%c0_70, %c224_71] : memref<16x256xf32, #tpu.memory_space<vmem>>, vector<16x32xf32>
    tpu.vector_store %arg8[%c0_70, %c224_71], %181 {strides = array<i32>} : memref<16x256xf32, #tpu.memory_space<vmem>>, vector<16x32xf32>,
    return
  }
  func.func @transform_0(%arg0: i32) -> (i32, i32) {
    %c0_i32 = arith.constant 0 : i32
    %c0_i32_0 = arith.constant 0 : i32
    return %arg0, %c0_i32 : i32, i32
  }
  func.func @transform_1(%arg0: i32) -> (i32, i32, i32) {
    %c0_i32 = arith.constant 0 : i32
    %c0_i32_0 = arith.constant 0 : i32
    %c0_i32_1 = arith.constant 0 : i32
    return %arg0, %c0_i32, %c0_i32_0 : i32, i32, i32
  }
  func.func @transform_2(%arg0: i32) -> (i32, i32) {
    %c0_i32 = arith.constant 0 : i32
    %c0_i32_0 = arith.constant 0 : i32
    %c0_i32_1 = arith.constant 0 : i32
    return %c0_i32, %c0_i32_0 : i32, i32
  }
  func.func @transform_3(%arg0: i32) -> (i32, i32) {
    %c0_i32 = arith.constant 0 : i32
    %c0_i32_0 = arith.constant 0 : i32
    %c0_i32_1 = arith.constant 0 : i32
    return %c0_i32, %c0_i32_0 : i32, i32
  }
  func.func @transform_4(%arg0: i32) -> (i32, i32) {
    %c0_i32 = arith.constant 0 : i32
    %c0_i32_0 = arith.constant 0 : i32
    %c0_i32_1 = arith.constant 0 : i32
    return %c0_i32, %c0_i32_0 : i32, i32
  }
  func.func @transform_5(%arg0: i32) -> (i32, i32) {
    %c0_i32 = arith.constant 0 : i32
    %c0_i32_0 = arith.constant 0 : i32
    %c0_i32_1 = arith.constant 0 : i32
    return %c0_i32, %c0_i32_0 : i32, i32
  }
  func.func @transform_6(%arg0: i32) -> (i32, i32) {
    %c0_i32 = arith.constant 0 : i32
    %c0_i32_0 = arith.constant 0 : i32
    %c0_i32_1 = arith.constant 0 : i32
    return %c0_i32, %c0_i32_0 : i32, i32
  }
  func.func @transform_7(%arg0: i32) -> (i32, i32) {
    %c0_i32 = arith.constant 0 : i32
    %c0_i32_0 = arith.constant 0 : i32
    return %arg0, %c0_i32 : i32, i32
  }
}

</mosaic_0001>

<bundles_post_ra>
// kernel: tpu_custom_call.1
= control target key start
LH: loop header
LB: loop body
LE: loop exit
PB: predicated region body
PF: predicated region fallthrough
CT: control target
= control target key end

     0   :  { %12 = vsyncpa [#allocation3], 0  ;;  %s6069_s0 = inlined_call_operand.hbm [shape: f32[16,256], index: 0, kind: input, shape index: {}]   ;;  %s6070_s1 = inlined_call_operand.hbm [shape: f32[1,1,128], index: 1, kind: input, shape index: {}]   ;;  %s6071_s2 = inlined_call_operand.hbm [shape: f32[128,1], index: 2, kind: input, shape index: {}]   ;;  %s6072_s3 = inlined_call_operand.hbm [shape: bf16[32,192], index: 3, kind: input, shape index: {}]   ;;  %s6073_s4 = inlined_call_operand.hbm [shape: bf16[32,64], index: 4, kind: input, shape index: {}]   ;;  %s6074_s5 = inlined_call_operand.hbm [shape: bf16[64,32], index: 5, kind: input, shape index: {}]   ;;  %s6075_s6 = inlined_call_operand.hbm [shape: f32[8,192], index: 6, kind: input, shape index: {}]   ;;  %s6076_s7 = inlined_call_operand.hbm [shape: f32[16,256], index: 7, kind: output, shape index: {}]  }
   0x1   :  { %13 = vsyncpa [#allocation6], 0 }
   0x2   :  { %14 = vsyncpa [#allocation9], 0 }
   0x3   :  { %15 = vsyncpa [#allocation12], 0 }
   0x4   :  { %16 = vsyncpa [#allocation4], 0  ;;  %s4160_s24 = smov [#allocation5]   ;;  %s3974_s28 = scalar_lea.hbm %s6070_s1, 16 }
   0x5   :  { %s35_s25 = sshll.u32 %s4160_s24, 4  ;;  %p3975_p0 = scmp.ne.s32.totalorder %s6070_s1, %s3974_s28  ;;  %s36_s25 = int_to_ptr.vmem [resolvable:$true] %s35_s25 }
   0x6   :  { %p3978_p1 = scmp.lt.u32.totalorder %s3974_s28, %s6070_s1 }
   0x8   :  { %p3980_p2 = pnand %p3978_p1, %p3975_p0 }
   0xa   :  { %3983 = shalt.err (!%p3980_p2)
}
   0xb   :  { %s3984_s10 = scalar_lea.vmem %s36_s25, 16  ;;  %s3988_s11 = scalar_lea.vmem %s36_s25, 32 }
   0xc   :  { %p3985_p3 = scmp.ne.s32.totalorder %s36_s25, %s3984_s10  ;;  %p3989_p4 = scmp.lt.s32.totalorder %s36_s25, %s36_s25 }
   0xd   :  { %p3990_p5 = scmp.lt.s32.totalorder %s3988_s11, %s3984_s10 }
   0xf   :  { %p3991_p6 = por %p3990_p5, %p3989_p4 }
  0x11   :  { %p3992_p7 = pnand %p3991_p6, %p3985_p3 }
  0x13   :  { %3995 = shalt.err (!%p3992_p7)
}
  0x14   :  { %38 = dma.hbm_to_vmem [thread:$0]  %s6070_s1, 16, %s36_s25, [#allocation6]  }
  0x15   :  { %s4161_s14 = smov [#allocation8]   ;;  %s3996_s18 = scalar_lea.hbm %s6072_s3, 512 }
  0x16   :  { %s56_s15 = sshll.u32 %s4161_s14, 4  ;;  %p3997_p8 = scmp.ne.s32.totalorder %s6072_s3, %s3996_s18  ;;  %s57_s15 = int_to_ptr.vmem [resolvable:$true] %s56_s15 }
  0x17   :  { %p4000_p9 = scmp.lt.u32.totalorder %s3996_s18, %s6072_s3 }
  0x19   :  { %p4002_p10 = pnand %p4000_p9, %p3997_p8 }
  0x1b   :  { %4005 = shalt.err (!%p4002_p10)
}
  0x1c   :  { %s4006_s23 = scalar_lea.vmem %s57_s15, 512  ;;  %p4011_p12 = scmp.lt.s32.totalorder %s57_s15, %s57_s15 }
  0x1d   :  { %p4007_p11 = scmp.ne.s32.totalorder %s57_s15, %s4006_s23  ;;  %p4012_p13 = scmp.lt.s32.totalorder %s4006_s23, %s4006_s23 }
  0x1f   :  { %p4013_p0 = por %p4012_p13, %p4011_p12 }
  0x21   :  { %p4014_p1 = pnand %p4013_p0, %p4007_p11 }
  0x23   :  { %4017 = shalt.err (!%p4014_p1)
}
  0x24   :  { %s4162_s1 = smov 128   ;;  %s4163_s24 = smov 8  }
  0x25   :  { %62 = dma.hbm_to_vmem [thread:$0]  %s6072_s3, 512, %s57_s15, [#allocation9], %s4162_s1, %s4162_s1, %s4163_s24  }
  0x26   :  { %s4164_s27 = smov [#allocation11]   ;;  %s4165_s29 = smov [#allocation2]  }
  0x27   :  { %s80_s28 = sshll.u32 %s4164_s27, 4  ;;  %s22_s30 = sshll.u32 %s4165_s29, 4  ;;  %s81_s28 = int_to_ptr.vmem [resolvable:$true] %s80_s28  ;;  %s4248_s30 = int_to_ptr.vmem [resolvable:$true] %s22_s30 }
  0x28   :  { %s4018_s10 = scalar_lea.hbm %s6074_s5, 512 }
  0x29   :  { %p4019_p2 = scmp.ne.s32.totalorder %s6074_s5, %s4018_s10  ;;  %p4022_p3 = scmp.lt.u32.totalorder %s4018_s10, %s6074_s5 }
  0x2b   :  { %p4024_p4 = pnand %p4022_p3, %p4019_p2 }
  0x2d   :  { %4027 = shalt.err (!%p4024_p4)
}
  0x2e   :  { %s4028_s3 = scalar_lea.vmem %s81_s28, 512  ;;  %p4033_p6 = scmp.lt.s32.totalorder %s81_s28, %s81_s28 }
  0x2f   :  { %p4029_p5 = scmp.ne.s32.totalorder %s81_s28, %s4028_s3  ;;  %p4034_p7 = scmp.lt.s32.totalorder %s4028_s3, %s4028_s3 }
  0x31   :  { %p4035_p8 = por %p4034_p7, %p4033_p6 }
  0x33   :  { %p4036_p9 = pnand %p4035_p8, %p4029_p5 }
  0x35   :  { %4039 = shalt.err (!%p4036_p9)
}
  0x36   :  { %s4166_s15 = smov 64   ;;  %s4167_s16 = smov 4  }
  0x37   :  { %86 = dma.hbm_to_vmem [thread:$0]  %s6074_s5, 512, %s81_s28, [#allocation12], %s4166_s15, %s4166_s15, %s4167_s16  }
  0x38   :  { %s4040_s21 = scalar_lea.hbm %s6069_s0, 512 }
  0x39   :  { %p4041_p10 = scmp.ne.s32.totalorder %s6069_s0, %s4040_s21  ;;  %p4044_p11 = scmp.lt.u32.totalorder %s4040_s21, %s6069_s0 }
  0x3b   :  { %p4046_p12 = pnand %p4044_p11, %p4041_p10 }
  0x3d   :  { %4049 = shalt.err (!%p4046_p12)
}
  0x3e   :  { %s4050_s27 = scalar_lea.vmem %s4248_s30, 512  ;;  %p4055_p0 = scmp.lt.s32.totalorder %s4248_s30, %s4248_s30 }
  0x3f   :  { %p4051_p13 = scmp.ne.s32.totalorder %s4248_s30, %s4050_s27  ;;  %p4056_p1 = scmp.lt.s32.totalorder %s4050_s27, %s4050_s27 }
  0x41   :  { %p4057_p2 = por %p4056_p1, %p4055_p0 }
  0x43   :  { %p4058_p3 = pnand %p4057_p2, %p4051_p13 }
  0x45   :  { %4061 = shalt.err (!%p4058_p3)
}
  0x46   :  { %s4168_s5 = smov 256   ;;  %s4169_s28 = smov 16  }
  0x47   :  { %28 = dma.hbm_to_vmem [thread:$0]  %s6069_s0, 512, %s4248_s30, [#allocation3], %s4168_s5, %s4168_s5, %s4169_s28  }
  0x48   :  { %s4170_s9 = smov [#allocation7]   ;;  %s4171_s11 = smov [#allocation10]  }
  0x49   :  { %s44_s10 = sshll.u32 %s4170_s9, 4  ;;  %s68_s12 = sshll.u32 %s4171_s11, 4  ;;  %s45_s10 = int_to_ptr.vmem [resolvable:$true] %s44_s10  ;;  %s4285_s12 = int_to_ptr.vmem [resolvable:$true] %s68_s12 }
  0x4a   :  { %s4062_s3 = scalar_lea.hbm %s6071_s2, 2048 }
  0x4b   :  { %p4063_p4 = scmp.ne.s32.totalorder %s6071_s2, %s4062_s3  ;;  %p4066_p5 = scmp.lt.u32.totalorder %s4062_s3, %s6071_s2 }
  0x4d   :  { %p4068_p6 = pnand %p4066_p5, %p4063_p4 }
  0x4f   :  { %4071 = shalt.err (!%p4068_p6)
}
  0x50   :  { %s4072_s0 = scalar_lea.vmem %s45_s10, 2048  ;;  %p4077_p8 = scmp.lt.s32.totalorder %s45_s10, %s45_s10 }
  0x51   :  { %p4073_p7 = scmp.ne.s32.totalorder %s45_s10, %s4072_s0  ;;  %p4078_p9 = scmp.lt.s32.totalorder %s4072_s0, %s4072_s0 }
  0x53   :  { %p4079_p10 = por %p4078_p9, %p4077_p8 }
  0x55   :  { %p4080_p11 = pnand %p4079_p10, %p4073_p7 }
  0x57   :  { %4083 = shalt.err (!%p4080_p11)
}
  0x58   :  { %50 = dma.hbm_to_vmem [thread:$0]  %s6071_s2, 2048, %s45_s10, [#allocation6], %s4162_s1, %s4162_s1, %s4163_s24  }
  0x59   :  { %s4084_s25 = scalar_lea.hbm %s6073_s4, 256 }
  0x5a   :  { %p4085_p12 = scmp.ne.s32.totalorder %s6073_s4, %s4084_s25  ;;  %p4088_p13 = scmp.lt.u32.totalorder %s4084_s25, %s6073_s4 }
  0x5c   :  { %p4090_p0 = pnand %p4088_p13, %p4085_p12 }
  0x5e   :  { %4093 = shalt.err (!%p4090_p0)
}
  0x5f   :  { %s4094_s9 = scalar_lea.vmem %s4285_s12, 256  ;;  %p4099_p2 = scmp.lt.s32.totalorder %s4285_s12, %s4285_s12 }
  0x60   :  { %p4095_p1 = scmp.ne.s32.totalorder %s4285_s12, %s4094_s9  ;;  %p4100_p3 = scmp.lt.s32.totalorder %s4094_s9, %s4094_s9 }
  0x62   :  { %p4101_p4 = por %p4100_p3, %p4099_p2 }
  0x64   :  { %p4102_p5 = pnand %p4101_p4, %p4095_p1 }
  0x66   :  { %4105 = shalt.err (!%p4102_p5)
}
  0x67   :  { %74 = dma.hbm_to_vmem [thread:$0]  %s6073_s4, 256, %s4285_s12, [#allocation9], %s4166_s15, %s4166_s15, %s4167_s16  }
  0x68   :  { %s4172_s24 = smov [#allocation13]   ;;  %s4106_s14 = scalar_lea.hbm %s6075_s6, 256 }
  0x69   :  { %s93_s10 = sshll.u32 %s4172_s24, 4  ;;  %p4107_p6 = scmp.ne.s32.totalorder %s6075_s6, %s4106_s14  ;;  %s94_s10 = int_to_ptr.vmem [resolvable:$true] %s93_s10 }
  0x6a   :  { %p4110_p7 = scmp.lt.u32.totalorder %s4106_s14, %s6075_s6 }
  0x6c   :  { %p4112_p8 = pnand %p4110_p7, %p4107_p6 }
  0x6e   :  { %4115 = shalt.err (!%p4112_p8)
}
  0x6f   :  { %s4116_s20 = scalar_lea.vmem %s94_s10, 256  ;;  %p4121_p10 = scmp.lt.s32.totalorder %s94_s10, %s94_s10 }
  0x70   :  { %p4117_p9 = scmp.ne.s32.totalorder %s94_s10, %s4116_s20  ;;  %p4122_p11 = scmp.lt.s32.totalorder %s4116_s20, %s4116_s20 }
  0x72   :  { %p4123_p12 = por %p4122_p11, %p4121_p10 }
  0x74   :  { %p4124_p13 = pnand %p4123_p12, %p4117_p9 }
  0x76   :  { %4127 = shalt.err (!%p4124_p13)
}
  0x77   :  { %96 = dma.hbm_to_vmem [thread:$0]  %s6075_s6, 256, %s94_s10, [#allocation12]  }
  0x78   :  { %4150 = dma.done.wait [#allocation3], 512  }
  0x79   :  { %4151 = vsyncadd [#allocation3], 4294966784 }
  0x7a   :  { %4152 = dma.done.wait [#allocation6], 2064  }
  0x7b   :  { %4153 = vsyncadd [#allocation6], 4294965232 }
  0x7c   :  { %4154 = dma.done.wait [#allocation9], 768  }
  0x7d   :  { %4155 = vsyncadd [#allocation9], 4294966528 }
  0x7e   :  { %4156 = dma.done.wait [#allocation12], 768  }
  0x7f   :  { %4157 = vsyncadd [#allocation12], 4294966528  ;;  %v4334_v0 = vld [vmem:[#allocation2] sm:$0xff]  ;;  %s4173_s12 = smov 96   ;;  %v4340_v1 = vld [vmem:[#allocation2 + $0x10] sm:$0xff]  ;;  %s4174_s6 = smov 32  }
  0x80   :  { %131 = vrot.lane.b32.xlu1 %v4334_v0, %s4166_s15  ;;  %125 = vrot.lane.b32.xlu0 %v4334_v0, %s4173_s12  ;;  %v4350_v2 = vld [vmem:[#allocation2 + $0x18] sm:$0xff]  ;;  %v4352_v3 = vld [vmem:[#allocation2 + $0x8] sm:$0xff]  ;;  %vm171_vm0 = vcmask 261120   ;;  %v4175_v45 = vmov 0   ;;  %vm833_vm1 = vcmask 64512   ;;  %s4176_s0 = smov 120  }
  0x81   :  { %v172_v4 = vsel %vm171_vm0, %v4334_v0, 0.0  ;;  %v175_v5 = vsel %vm171_vm0, %v4340_v1, 0.0  ;;  %v196_v17 = vsel %vm171_vm0, %v4352_v3, 0.0  ;;  %v199_v22 = vsel %vm171_vm0, %v4350_v2, 0.0  ;;  %v3638_v42 = vld [vmem:[#allocation8 + $0x4] ss:$8 sps:$4 sm:$0xff]   ;;  %512 = vmatprep.mubr.bf16.mxu0 %v4175_v45  ;;  %3516 = vset.pattern.permute.xlu1 %v4175_v45 }
  0x82   :  { %v3640_v43 = vld [vmem:[#allocation8] ss:$8 sps:$4 sm:$0xff]   ;;  %v3641_v44 = vld [vmem:[#allocation8 + $0x14] ss:$8 sps:$4 sm:$0xff]   ;;  %480 = vmatprep.subr.bf16.mxu0 %v3638_v42  ;;  %v3643_v46 = vld [vmem:[#allocation8 + $0x10] ss:$8 sps:$4 sm:$0xff]  }
  0x83   :  { %481 = vmatpush1.bf16.msra.mxu0 %v3640_v43  ;;  %s4177_s30 = smov 104   ;;  %s4178_s21 = smov 112   ;;  %vm858_vm2 = vcmask 1043456  }
  0x84   :  { %133 = vrot.lane.b32.xlu1 %v4340_v1, %s4166_s15  ;;  %127 = vrot.lane.b32.xlu0 %v4340_v1, %s4173_s12 }
  0x85   :  { %482 = vmatprep.subr.bf16.mxu0 %v3641_v44 }
  0x87   :  { %483 = vmatpush1.bf16.msra.mxu0 %v3643_v46 }
  0x88   :  { %139 = vrot.lane.b32.xlu1 %v4340_v1, %s4174_s6  ;;  %137 = vrot.lane.b32.xlu0 %v4334_v0, %s4174_s6 }
  0x8c   :  { %147 = vrot.lane.b32.xlu1 %v4350_v2, %s4173_s12  ;;  %145 = vrot.lane.b32.xlu0 %v4352_v3, %s4173_s12 }
  0x90   :  { %153 = vrot.lane.b32.xlu1 %v4350_v2, %s4166_s15  ;;  %151 = vrot.lane.b32.xlu0 %v4352_v3, %s4166_s15 }
  0x94   :  { %159 = vrot.lane.b32.xlu1 %v4350_v2, %s4174_s6  ;;  %157 = vrot.lane.b32.xlu0 %v4352_v3, %s4174_s6 }
  0xb3   :  { %173 = vadd.xlane.f32.xlu0 %v172_v4 }
  0xb8   :  { %176 = vadd.xlane.f32.xlu1 %v175_v5 }
  0xf2   :  { %v4370_v6 = vpop.permute.xlu1 %131  ;;  %v4372_v7 = vpop.permute.xlu0 %125 }
  0xf3   :  { %6131 = vst [vmem:[#allocation20_spill] sm:$0xff] %v4370_v6  ;;  %6132 = vst [vmem:[#allocation21_spill] sm:$0xff] %v4372_v7  ;;  %v184_v8 = vsel %vm171_vm0, %v4370_v6, 0.0  ;;  %v178_v9 = vsel %vm171_vm0, %v4372_v7, 0.0 }
  0xf4   :  { %185 = vadd.xlane.f32.xlu1 %v184_v8  ;;  %179 = vadd.xlane.f32.xlu0 %v178_v9 }
  0xf6   :  { %v4378_v10 = vpop.permute.xlu0 %127  ;;  %v4380_v11 = vpop.permute.xlu1 %133 }
  0xf7   :  { %6133 = vst [vmem:[#allocation22_spill] sm:$0xff] %v4378_v10  ;;  %6134 = vst [vmem:[#allocation23_spill] sm:$0xff] %v4380_v11  ;;  %v181_v12 = vsel %vm171_vm0, %v4378_v10, 0.0  ;;  %v187_v13 = vsel %vm171_vm0, %v4380_v11, 0.0 }
  0xf8   :  { %182 = vadd.xlane.f32.xlu0 %v181_v12 }
  0xfa   :  { %v4386_v14 = vpop.permute.xlu0 %137  ;;  %v4388_v15 = vpop.permute.xlu1 %139 }
  0xfb   :  { %6135 = vst [vmem:[#allocation24_spill] sm:$0xff] %v4386_v14  ;;  %6136 = vst [vmem:[#allocation25_spill] sm:$0xff] %v4388_v15  ;;  %v190_v16 = vsel %vm171_vm0, %v4386_v14, 0.0  ;;  %v193_v18 = vsel %vm171_vm0, %v4388_v15, 0.0 }
  0xfc   :  { %191 = vadd.xlane.f32.xlu1 %v190_v16  ;;  %188 = vadd.xlane.f32.xlu0 %v187_v13 }
  0xfe   :  { %v4396_v19 = vpop.permute.xlu0 %145  ;;  %v4398_v20 = vpop.permute.xlu1 %147 }
  0xff   :  { %6137 = vst [vmem:[#allocation26_spill] sm:$0xff] %v4396_v19  ;;  %6138 = vst [vmem:[#allocation27_spill] sm:$0xff] %v4398_v20  ;;  %v202_v21 = vsel %vm171_vm0, %v4396_v19, 0.0  ;;  %v205_v26 = vsel %vm171_vm0, %v4398_v20, 0.0 }
 0x100   :  { %197 = vadd.xlane.f32.xlu1 %v196_v17  ;;  %194 = vadd.xlane.f32.xlu0 %v193_v18 }
 0x102   :  { %v4404_v23 = vpop.permute.xlu0 %151  ;;  %v4406_v24 = vpop.permute.xlu1 %153 }
 0x103   :  { %6139 = vst [vmem:[#allocation28_spill] sm:$0xff] %v4404_v23  ;;  %6140 = vst [vmem:[#allocation29_spill] sm:$0xff] %v4406_v24  ;;  %v208_v25 = vsel %vm171_vm0, %v4404_v23, 0.0  ;;  %v211_v29 = vsel %vm171_vm0, %v4406_v24, 0.0 }
 0x104   :  { %203 = vadd.xlane.f32.xlu1 %v202_v21  ;;  %200 = vadd.xlane.f32.xlu0 %v199_v22 }
 0x106   :  { %v4412_v27 = vpop.permute.xlu0 %157  ;;  %v4418_v30 = vpop.permute.xlu1 %159 }
 0x107   :  { %6141 = vst [vmem:[#allocation30_spill] sm:$0xff] %v4412_v27  ;;  %v214_v28 = vsel %vm171_vm0, %v4412_v27, 0.0  ;;  %6142 = vst [vmem:[#allocation31_spill] sm:$0xff] %v4418_v30  ;;  %v217_v31 = vsel %vm171_vm0, %v4418_v30, 0.0 }
 0x108   :  { %209 = vadd.xlane.f32.xlu1 %v208_v25  ;;  %206 = vadd.xlane.f32.xlu0 %v205_v26 }
 0x10c   :  { %215 = vadd.xlane.f32.xlu1 %v214_v28  ;;  %212 = vadd.xlane.f32.xlu0 %v211_v29 }
 0x110   :  { %218 = vadd.xlane.f32.xlu0 %v217_v31 }
 0x140   :  { %v174_v32 = vpop.xlane.xlu0 %173 }
 0x141   :  { %v221_v33 = vmul.f32 0.03125, %v174_v32 }
 0x143   :  { %v4423_v34 = vsub.f32 %v4334_v0, %v221_v33 }
 0x145   :  { %v177_v35 = vpop.xlane.xlu1 %176  ;;  %v253_v36 = vmul.f32 %v4423_v34, %v4423_v34 }
 0x146   :  { %v222_v37 = vmul.f32 0.03125, %v177_v35 }
 0x147   :  { %v269_v38 = vsel %vm171_vm0, %v253_v36, 0.0 }
 0x148   :  { %v4429_v39 = vsub.f32 %v4340_v1, %v222_v37  ;;  %270 = vadd.xlane.f32.xlu1 %v269_v38 }
 0x14a   :  { %v254_v40 = vmul.f32 %v4429_v39, %v4429_v39 }
 0x14c   :  { %v272_v41 = vsel %vm171_vm0, %v254_v40, 0.0 }
 0x14d   :  { %273 = vadd.xlane.f32.xlu0 %v272_v41 }
 0x181   :  { %v186_v47 = vpop.xlane.xlu1 %185  ;;  %v180_v48 = vpop.xlane.xlu0 %179 }
 0x182   :  { %v225_v49 = vmul.f32 0.03125, %v186_v47  ;;  %v223_v50 = vmul.f32 0.03125, %v180_v48 }
 0x184   :  { %v4437_v51 = vsub.f32 %v4370_v6, %v225_v49  ;;  %v4440_v52 = vsub.f32 %v4372_v7, %v223_v50 }
 0x185   :  { %v183_v53 = vpop.xlane.xlu0 %182 }
 0x186   :  { %v224_v54 = vmul.f32 0.03125, %v183_v53  ;;  %v255_v55 = vmul.f32 %v4440_v52, %v4440_v52  ;;  %v257_v58 = vmul.f32 %v4437_v51, %v4437_v51 }
 0x188   :  { %v4445_v56 = vsub.f32 %v4378_v10, %v224_v54  ;;  %v275_v57 = vsel %vm171_vm0, %v255_v55, 0.0  ;;  %v281_v4 = vsel %vm171_vm0, %v257_v58, 0.0 }
 0x189   :  { %v192_v59 = vpop.xlane.xlu1 %191  ;;  %276 = vadd.xlane.f32.xlu1 %v275_v57  ;;  %v189_v60 = vpop.xlane.xlu0 %188 }
 0x18a   :  { %v227_v61 = vmul.f32 0.03125, %v192_v59  ;;  %v226_v62 = vmul.f32 0.03125, %v189_v60  ;;  %v256_v63 = vmul.f32 %v4445_v56, %v4445_v56 }
 0x18c   :  { %v4453_v0 = vsub.f32 %v4386_v14, %v227_v61  ;;  %v4456_v1 = vsub.f32 %v4380_v11, %v226_v62  ;;  %v278_v5 = vsel %vm171_vm0, %v256_v63, 0.0 }
 0x18d   :  { %v198_v8 = vpop.xlane.xlu1 %197  ;;  %282 = vadd.xlane.f32.xlu1 %v281_v4  ;;  %279 = vadd.xlane.f32.xlu0 %v278_v5  ;;  %v195_v9 = vpop.xlane.xlu0 %194 }
 0x18e   :  { %v229_v12 = vmul.f32 0.03125, %v198_v8  ;;  %v228_v13 = vmul.f32 0.03125, %v195_v9  ;;  %v259_v16 = vmul.f32 %v4453_v0, %v4453_v0  ;;  %v258_v17 = vmul.f32 %v4456_v1, %v4456_v1 }
 0x190   :  { %v4465_v18 = vsub.f32 %v4352_v3, %v229_v12  ;;  %v4468_v21 = vsub.f32 %v4388_v15, %v228_v13  ;;  %v287_v22 = vsel %vm171_vm0, %v259_v16, 0.0  ;;  %v284_v25 = vsel %vm171_vm0, %v258_v17, 0.0 }
 0x191   :  { %v204_v26 = vpop.xlane.xlu1 %203  ;;  %288 = vadd.xlane.f32.xlu1 %v287_v22  ;;  %285 = vadd.xlane.f32.xlu0 %v284_v25  ;;  %v201_v28 = vpop.xlane.xlu0 %200 }
 0x192   :  { %v231_v29 = vmul.f32 0.03125, %v204_v26  ;;  %v230_v31 = vmul.f32 0.03125, %v201_v28  ;;  %v261_v32 = vmul.f32 %v4465_v18, %v4465_v18  ;;  %v260_v3 = vmul.f32 %v4468_v21, %v4468_v21 }
 0x194   :  { %v4477_v33 = vsub.f32 %v4396_v19, %v231_v29  ;;  %v4480_v35 = vsub.f32 %v4350_v2, %v230_v31  ;;  %v293_v36 = vsel %vm171_vm0, %v261_v32, 0.0  ;;  %v290_v37 = vsel %vm171_vm0, %v260_v3, 0.0  ;;  %v4521_v3 = vld [vmem:[#allocation13 + $0x2] ss:$0 sm:$0xff] }
 0x195   :  { %v210_v38 = vpop.xlane.xlu1 %209  ;;  %294 = vadd.xlane.f32.xlu1 %v293_v36  ;;  %291 = vadd.xlane.f32.xlu0 %v290_v37  ;;  %v207_v40 = vpop.xlane.xlu0 %206 }
 0x196   :  { %v233_v41 = vmul.f32 0.03125, %v210_v38  ;;  %v232_v42 = vmul.f32 0.03125, %v207_v40  ;;  %v263_v43 = vmul.f32 %v4477_v33, %v4477_v33  ;;  %v262_v44 = vmul.f32 %v4480_v35, %v4480_v35  ;;  %v4525_v40 = vld [vmem:[#allocation13 + $0x3] ss:$0 sm:$0xff] }
 0x198   :  { %v4489_v46 = vsub.f32 %v4404_v23, %v233_v41  ;;  %v4492_v2 = vsub.f32 %v4398_v20, %v232_v42  ;;  %v299_v47 = vsel %vm171_vm0, %v263_v43, 0.0  ;;  %v296_v48 = vsel %vm171_vm0, %v262_v44, 0.0 }
 0x199   :  { %v216_v49 = vpop.xlane.xlu1 %215  ;;  %300 = vadd.xlane.f32.xlu1 %v299_v47  ;;  %297 = vadd.xlane.f32.xlu0 %v296_v48  ;;  %v213_v50 = vpop.xlane.xlu0 %212 }
 0x19a   :  { %v235_v53 = vmul.f32 0.03125, %v216_v49  ;;  %v234_v54 = vmul.f32 0.03125, %v213_v50  ;;  %v265_v55 = vmul.f32 %v4489_v46, %v4489_v46  ;;  %v264_v57 = vmul.f32 %v4492_v2, %v4492_v2 }
 0x19c   :  { %v4501_v58 = vsub.f32 %v4412_v27, %v235_v53  ;;  %v4504_v59 = vsub.f32 %v4406_v24, %v234_v54  ;;  %v305_v60 = vsel %vm171_vm0, %v265_v55, 0.0  ;;  %v302_v61 = vsel %vm171_vm0, %v264_v57, 0.0 }
 0x19d   :  { %306 = vadd.xlane.f32.xlu1 %v305_v60  ;;  %303 = vadd.xlane.f32.xlu0 %v302_v61  ;;  %v219_v62 = vpop.xlane.xlu0 %218 }
 0x19e   :  { %v236_v63 = vmul.f32 0.03125, %v219_v62  ;;  %v267_v4 = vmul.f32 %v4501_v58, %v4501_v58  ;;  %v266_v5 = vmul.f32 %v4504_v59, %v4504_v59 }
 0x1a0   :  { %v4513_v8 = vsub.f32 %v4418_v30, %v236_v63  ;;  %v311_v9 = vsel %vm171_vm0, %v267_v4, 0.0  ;;  %v308_v12 = vsel %vm171_vm0, %v266_v5, 0.0 }
 0x1a1   :  { %312 = vadd.xlane.f32.xlu1 %v311_v9  ;;  %309 = vadd.xlane.f32.xlu0 %v308_v12 }
 0x1a2   :  { %v268_v13 = vmul.f32 %v4513_v8, %v4513_v8 }
 0x1a4   :  { %v314_v16 = vsel %vm171_vm0, %v268_v13, 0.0 }
 0x1a5   :  { %315 = vadd.xlane.f32.xlu0 %v314_v16 }
 0x1d5   :  { %v271_v17 = vpop.xlane.xlu1 %270 }
 0x1d6   :  { %v317_v22 = vmul.f32 0.03125, %v271_v17 }
 0x1d8   :  { %v333_v25 = vadd.f32 1e-05, %v317_v22 }
 0x1da   :  { %3650 = vrsqrt.f32 %v333_v25  ;;  %v274_v26 = vpop.xlane.xlu0 %273 }
 0x1db   :  { %v318_v28 = vmul.f32 0.03125, %v274_v26 }
 0x1dd   :  { %v334_v29 = vadd.f32 1e-05, %v318_v28 }
 0x1df   :  { %3652 = vrsqrt.f32 %v334_v29 }
 0x1e4   :  { %v3651_v31 = vpop.eup %3650 }
 0x1e5   :  { %v365_v32 = vmul.f32 %v3651_v31, %v4423_v34 }
 0x1e7   :  { %v381_v38 = vmul.f32 %v365_v32, %v4521_v3 }
 0x1e9   :  { %v3653_v36 = vpop.eup %3652  ;;  %v397_v42 = vadd.f32 %v381_v38, %v4525_v40 }
 0x1ea   :  { %v366_v37 = vmul.f32 %v3653_v36, %v4429_v39 }
 0x1ec   :  { %v382_v41 = vmul.f32 %v366_v37, %v4521_v3 }
 0x1ee   :  { %v398_v43 = vadd.f32 %v382_v41, %v4525_v40 }
 0x1f0   :  { %v413_v44 = vpack.c.bf16 %v398_v43, %v397_v42 }
 0x1f2   :  { %3086 = vmatmul.mubr.msk.bf16.vlgmr.msra.gmra.mrb[0].mxu0 %vm171_vm0, %v413_v44 }
 0x1f3   :  { %522 = vmatprep.mubr.bf16.mxu0 %v4175_v45 }
 0x216   :  { %v277_v34 = vpop.xlane.xlu1 %276 }
 0x217   :  { %v319_v47 = vmul.f32 0.03125, %v277_v34 }
 0x219   :  { %v335_v48 = vadd.f32 1e-05, %v319_v47 }
 0x21a   :  { %v283_v49 = vpop.xlane.xlu1 %282  ;;  %v280_v39 = vpop.xlane.xlu0 %279 }
 0x21b   :  { %3654 = vrsqrt.f32 %v335_v48  ;;  %v321_v50 = vmul.f32 0.03125, %v283_v49  ;;  %v320_v53 = vmul.f32 0.03125, %v280_v39 }
 0x21d   :  { %v336_v54 = vadd.f32 1e-05, %v320_v53  ;;  %v337_v55 = vadd.f32 1e-05, %v321_v50 }
 0x21e   :  { %v286_v57 = vpop.xlane.xlu0 %285  ;;  %v289_v60 = vpop.xlane.xlu1 %288 }
 0x21f   :  { %v322_v61 = vmul.f32 0.03125, %v286_v57  ;;  %3656 = vrsqrt.f32 %v336_v54  ;;  %v323_v63 = vmul.f32 0.03125, %v289_v60 }
 0x220   :  { %3658 = vrsqrt.f32 %v337_v55 }
 0x221   :  { %v338_v62 = vadd.f32 1e-05, %v322_v61  ;;  %v339_v13 = vadd.f32 1e-05, %v323_v63 }
 0x222   :  { %v292_v4 = vpop.xlane.xlu0 %291  ;;  %v295_v17 = vpop.xlane.xlu1 %294 }
 0x223   :  { %v324_v5 = vmul.f32 0.03125, %v292_v4  ;;  %3660 = vrsqrt.f32 %v338_v62  ;;  %v325_v28 = vmul.f32 0.03125, %v295_v17 }
 0x225   :  { %v3655_v9 = vpop.eup %3654  ;;  %v340_v12 = vadd.f32 1e-05, %v324_v5  ;;  %v341_v42 = vadd.f32 1e-05, %v325_v28 }
 0x226   :  { %v298_v16 = vpop.xlane.xlu0 %297  ;;  %v367_v22 = vmul.f32 %v3655_v9, %v4440_v52  ;;  %v301_v43 = vpop.xlane.xlu1 %300 }
 0x227   :  { %3662 = vrsqrt.f32 %v340_v12  ;;  %v326_v25 = vmul.f32 0.03125, %v298_v16  ;;  %v327_v39 = vmul.f32 0.03125, %v301_v43 }
 0x228   :  { %3664 = vrsqrt.f32 %v339_v13  ;;  %v383_v31 = vmul.f32 %v367_v22, %v4521_v3 }
 0x229   :  { %v3657_v26 = vpop.eup %3656  ;;  %v342_v36 = vadd.f32 1e-05, %v326_v25 }
 0x22a   :  { %v368_v29 = vmul.f32 %v3657_v26, %v4445_v56  ;;  %v3659_v32 = vpop.eup %3658  ;;  %v304_v37 = vpop.xlane.xlu0 %303  ;;  %v399_v44 = vadd.f32 %v383_v31, %v4525_v40 }
 0x22b   :  { %v369_v34 = vmul.f32 %v3659_v32, %v4437_v51  ;;  %3666 = vrsqrt.f32 %v342_v36  ;;  %v328_v47 = vmul.f32 0.03125, %v304_v37  ;;  %v307_v61 = vpop.xlane.xlu1 %306 }
 0x22c   :  { %v384_v38 = vmul.f32 %v368_v29, %v4521_v3  ;;  %3668 = vrsqrt.f32 %v341_v42  ;;  %v329_v13 = vmul.f32 0.03125, %v307_v61 }
 0x22d   :  { %v3661_v41 = vpop.eup %3660  ;;  %v385_v53 = vmul.f32 %v369_v34, %v4521_v3  ;;  %v344_v55 = vadd.f32 1e-05, %v328_v47 }
 0x22e   :  { %v400_v52 = vadd.f32 %v384_v38, %v4525_v40  ;;  %v370_v56 = vmul.f32 %v3661_v41, %v4456_v1  ;;  %v310_v57 = vpop.xlane.xlu0 %309  ;;  %v343_v1 = vadd.f32 1e-05, %v327_v39  ;;  %v345_v26 = vadd.f32 1e-05, %v329_v13 }
 0x22f   :  { %v401_v62 = vadd.f32 %v385_v53, %v4525_v40  ;;  %3670 = vrsqrt.f32 %v344_v55  ;;  %v330_v4 = vmul.f32 0.03125, %v310_v57  ;;  %v313_v28 = vpop.xlane.xlu1 %312 }
 0x230   :  { %v414_v48 = vpack.c.bf16 %v400_v52, %v399_v44  ;;  %v386_v50 = vmul.f32 %v370_v56, %v4521_v3  ;;  %3672 = vrsqrt.f32 %v343_v1  ;;  %v331_v41 = vmul.f32 0.03125, %v313_v28 }
 0x231   :  { %v3663_v49 = vpop.eup %3662 }
 0x232   :  { %3087 = vmatmul.mubr.msk.bf16.gmra.mrb[4].mxu0 %vm171_vm0, %v414_v48  ;;  %v3665_v54 = vpop.eup %3664  ;;  %v402_v51 = vadd.f32 %v386_v50, %v4525_v40  ;;  %v372_v60 = vmul.f32 %v3663_v49, %v4468_v21  ;;  %v346_v21 = vadd.f32 1e-05, %v330_v4  ;;  %v316_v22 = vpop.xlane.xlu0 %315  ;;  %v347_v52 = vadd.f32 1e-05, %v331_v41 }
 0x233   :  { %532 = vmatprep.mubr.bf16.mxu0 %v4175_v45  ;;  %v371_v63 = vmul.f32 %v3665_v54, %v4453_v0  ;;  %v332_v32 = vmul.f32 0.03125, %v316_v22 }
 0x234   :  { %v415_v5 = vpack.c.bf16 %v402_v51, %v401_v62  ;;  %v388_v9 = vmul.f32 %v372_v60, %v4521_v3  ;;  %3674 = vrsqrt.f32 %v346_v21 }
 0x235   :  { %v3667_v12 = vpop.eup %3666  ;;  %v387_v16 = vmul.f32 %v371_v63, %v4521_v3  ;;  %3676 = vrsqrt.f32 %v345_v26 }
 0x236   :  { %v3669_v17 = vpop.eup %3668  ;;  %v404_v25 = vadd.f32 %v388_v9, %v4525_v40  ;;  %v374_v0 = vmul.f32 %v3667_v12, %v4480_v35  ;;  %v348_v35 = vadd.f32 1e-05, %v332_v32 }
 0x237   :  { %v403_v29 = vadd.f32 %v387_v16, %v4525_v40  ;;  %v373_v31 = vmul.f32 %v3669_v17, %v4465_v18 }
 0x238   :  { %v390_v37 = vmul.f32 %v374_v0, %v4521_v3  ;;  %3678 = vrsqrt.f32 %v348_v35 }
 0x239   :  { %v416_v36 = vpack.c.bf16 %v404_v25, %v403_v29  ;;  %v3671_v38 = vpop.eup %3670  ;;  %v389_v42 = vmul.f32 %v373_v31, %v4521_v3  ;;  %3680 = vrsqrt.f32 %v347_v52 }
 0x23a   :  { %3088 = vmatmul.mubr.msk.bf16.gmra.mrb[8].mxu0 %vm171_vm0, %v415_v5  ;;  %v3673_v43 = vpop.eup %3672  ;;  %v406_v44 = vadd.f32 %v390_v37, %v4525_v40  ;;  %v376_v18 = vmul.f32 %v3671_v38, %v4492_v2 }
 0x23b   :  { %542 = vmatprep.mubr.bf16.mxu0 %v4175_v45  ;;  %v405_v34 = vadd.f32 %v389_v42, %v4525_v40  ;;  %v375_v47 = vmul.f32 %v3673_v43, %v4477_v33 }
 0x23c   :  { %v392_v48 = vmul.f32 %v376_v18, %v4521_v3 }
 0x23d   :  { %v417_v56 = vpack.c.bf16 %v406_v44, %v405_v34  ;;  %v391_v39 = vmul.f32 %v375_v47, %v4521_v3 }
 0x23e   :  { %v3675_v49 = vpop.eup %3674  ;;  %v408_v2 = vadd.f32 %v392_v48, %v4525_v40 }
 0x23f   :  { %v3677_v50 = vpop.eup %3676  ;;  %v378_v53 = vmul.f32 %v3675_v49, %v4504_v59  ;;  %v407_v54 = vadd.f32 %v391_v39, %v4525_v40 }
 0x240   :  { %v377_v33 = vmul.f32 %v3677_v50, %v4489_v46 }
 0x241   :  { %v418_v55 = vpack.c.bf16 %v408_v2, %v407_v54  ;;  %v394_v57 = vmul.f32 %v378_v53, %v4521_v3 }
 0x242   :  { %3089 = vmatmul.mubr.msk.bf16.gmra.mrb[12].mxu0 %vm171_vm0, %v416_v36  ;;  %v3679_v51 = vpop.eup %3678  ;;  %v393_v60 = vmul.f32 %v377_v33, %v4521_v3 }
 0x243   :  { %552 = vmatprep.mubr.bf16.mxu0 %v4175_v45  ;;  %v3681_v1 = vpop.eup %3680  ;;  %v410_v61 = vadd.f32 %v394_v57, %v4525_v40  ;;  %v380_v62 = vmul.f32 %v3679_v51, %v4513_v8  ;;  %v426_v8 = vlaneseq }
 0x244   :  { %v409_v59 = vadd.f32 %v393_v60, %v4525_v40  ;;  %v379_v63 = vmul.f32 %v3681_v1, %v4501_v58  ;;  %v163_v58 = vld [vmem:[#allocation13] ss:$8 sm:$0x3] }
 0x245   :  { %v396_v4 = vmul.f32 %v380_v62, %v4521_v3  ;;  %v427_v16 = vshrl.u32 %v426_v8, 7 }
 0x246   :  { %v419_v46 = vpack.c.bf16 %v410_v61, %v409_v59  ;;  %v395_v5 = vmul.f32 %v379_v63, %v4521_v3 }
 0x247   :  { %v412_v9 = vadd.f32 %v396_v4, %v4525_v40  ;;  %v428_v17 = vsub.s32 0, %v427_v16  ;;  %v432_v21 = vsub.s32 1, %v427_v16 }
 0x248   :  { %v411_v12 = vadd.f32 %v395_v5, %v4525_v40 }
 0x249   :  { %v4587_v22 = vrot.slane %v163_v58, %v428_v17  ;;  %v4589_v0 = vrot.slane %v163_v58, %v432_v21 }
 0x24a   :  { %3090 = vmatmul.mubr.msk.bf16.gmra.mrb[16].mxu0 %vm171_vm0, %v417_v56  ;;  %v420_v13 = vpack.c.bf16 %v412_v9, %v411_v12 }
 0x24b   :  { %562 = vmatprep.mubr.bf16.mxu0 %v4175_v45 }
 0x252   :  { %3091 = vmatmul.mubr.msk.bf16.gmra.mrb[20].mxu0 %vm171_vm0, %v418_v55 }
 0x253   :  { %572 = vmatprep.mubr.bf16.mxu0 %v4175_v45 }
 0x25a   :  { %3092 = vmatmul.mubr.msk.bf16.gmra.mrb[24].mxu0 %vm171_vm0, %v419_v46 }
 0x25b   :  { %582 = vmatprep.mubr.bf16.mxu0 %v4175_v45 }
 0x262   :  { %3093 = vmatmul.mubr.msk.bf16.gmra.mrb[28].mxu0 %vm171_vm0, %v420_v13 }
 0x2c5   :  { %v514_v25 = vpop.f32.mrb[0].mxu0 }
 0x2c6   :  { %v516_v3 = vpop.f32.mrb[1].mxu0  ;;  %v4592_v28 = vadd.f32 %v514_v25, %v4587_v22 }
 0x2c7   :  { %v518_v26 = vpop.f32.mrb[2].mxu0  ;;  %v517_v31 = vadd.f32 %v516_v3, %v4589_v0 }
 0x2c8   :  { %v4595_v40 = vadd.f32 %v518_v26, %v4587_v22  ;;  %v520_v29 = vpop.f32.mrb[3].mxu0 }
 0x2c9   :  { %v521_v32 = vadd.f32 %v520_v29, %v4589_v0 }
 0x2ca   :  { %v4601_v36 = vpack.i.bf16 %v4595_v40, %v4592_v28  ;;  %v6144_v23 = vpack.c.bf16 %v4595_v40, %v4592_v28 }
 0x2cb   :  { %v3476_v38 = vpack.i.bf16 %v521_v32, %v517_v31  ;;  %v4605_v41 = vpack.c.bf16 %v521_v32, %v517_v31 }
 0x2cd   :  { %3477 = vrot.lane.b32.xlu1 %v3476_v38, %s4173_s12  ;;  %3337 = vmatprep.mubr.msk.bf16.mxu1 %vm833_vm1, %v4605_v41 }
 0x305   :  { %v524_v42 = vpop.f32.mrb[4].mxu0 }
 0x306   :  { %v526_v43 = vpop.f32.mrb[5].mxu0  ;;  %v4611_v44 = vadd.f32 %v524_v42, %v4587_v22 }
 0x307   :  { %v528_v35 = vpop.f32.mrb[6].mxu0  ;;  %v527_v34 = vadd.f32 %v526_v43, %v4589_v0  ;;  %v608_v43 = vld [vmem:[#allocation7 + $0x78] sm:$0xff] }
 0x308   :  { %v4614_v18 = vadd.f32 %v528_v35, %v4587_v22  ;;  %v530_v52 = vpop.f32.mrb[7].mxu0 }
 0x309   :  { %v531_v47 = vadd.f32 %v530_v52, %v4589_v0 }
 0x30a   :  { %v4620_v56 = vpack.i.bf16 %v4614_v18, %v4611_v44 }
 0x30b   :  { %v3481_v49 = vpack.i.bf16 %v531_v47, %v527_v34  ;;  %v4624_v39 = vpack.c.bf16 %v531_v47, %v527_v34 }
 0x30d   :  { %3482 = vrot.lane.b32.xlu0 %v3481_v49, %s4173_s12  ;;  %v534_v50 = vpop.f32.mrb[8].mxu0 }
 0x30e   :  { %v536_v2 = vpop.f32.mrb[9].mxu0  ;;  %v4628_v54 = vadd.f32 %v534_v50, %v4587_v22 }
 0x30f   :  { %v538_v53 = vpop.f32.mrb[10].mxu0  ;;  %v537_v57 = vadd.f32 %v536_v2, %v4589_v0 }
 0x310   :  { %v4631_v33 = vadd.f32 %v538_v53, %v4587_v22  ;;  %v540_v55 = vpop.f32.mrb[11].mxu0 }
 0x311   :  { %v541_v51 = vadd.f32 %v540_v55, %v4589_v0 }
 0x312   :  { %v4637_v60 = vpack.i.bf16 %v4631_v33, %v4628_v54 }
 0x313   :  { %v3486_v61 = vpack.i.bf16 %v541_v51, %v537_v57  ;;  %v4641_v62 = vpack.c.bf16 %v541_v51, %v537_v57 }
 0x315   :  { %3487 = vrot.lane.b32.xlu1 %v3486_v61, %s4173_s12  ;;  %v544_v59 = vpop.f32.mrb[12].mxu0 }
 0x316   :  { %v546_v63 = vpop.f32.mrb[13].mxu0  ;;  %v4645_v4 = vadd.f32 %v544_v59, %v4587_v22 }
 0x317   :  { %v548_v46 = vpop.f32.mrb[14].mxu0  ;;  %v547_v12 = vadd.f32 %v546_v63, %v4589_v0 }
 0x318   :  { %v4648_v5 = vadd.f32 %v548_v46, %v4587_v22  ;;  %v550_v9 = vpop.f32.mrb[15].mxu0 }
 0x319   :  { %v551_v13 = vadd.f32 %v550_v9, %v4589_v0 }
 0x31a   :  { %v4654_v8 = vpack.i.bf16 %v4648_v5, %v4645_v4 }
 0x31b   :  { %v3491_v17 = vpack.i.bf16 %v551_v13, %v547_v12  ;;  %v4658_v58 = vpack.c.bf16 %v551_v13, %v547_v12 }
 0x31d   :  { %3492 = vrot.lane.b32.xlu1 %v3491_v17, %s4173_s12  ;;  %v554_v21 = vpop.f32.mrb[16].mxu0 }
 0x31e   :  { %v556_v25 = vpop.f32.mrb[17].mxu0  ;;  %v4662_v26 = vadd.f32 %v554_v21, %v4587_v22 }
 0x31f   :  { %v558_v3 = vpop.f32.mrb[18].mxu0  ;;  %v557_v32 = vadd.f32 %v556_v25, %v4589_v0 }
 0x320   :  { %v4665_v29 = vadd.f32 %v558_v3, %v4587_v22  ;;  %v560_v31 = vpop.f32.mrb[19].mxu0 }
 0x321   :  { %v561_v38 = vadd.f32 %v560_v31, %v4589_v0 }
 0x322   :  { %v4671_v42 = vpack.i.bf16 %v4665_v29, %v4662_v26 }
 0x323   :  { %v3496_v35 = vpack.i.bf16 %v561_v38, %v557_v32  ;;  %v4675_v52 = vpack.c.bf16 %v561_v38, %v557_v32  ;;  %v606_v32 = vld [vmem:[#allocation7 + $0x68] sm:$0xff] }
 0x325   :  { %3497 = vrot.lane.b32.xlu0 %v3496_v35, %s4173_s12  ;;  %v564_v34 = vpop.f32.mrb[20].mxu0 }
 0x326   :  { %v566_v47 = vpop.f32.mrb[21].mxu0  ;;  %v4679_v50 = vadd.f32 %v564_v34, %v4587_v22 }
 0x327   :  { %v568_v49 = vpop.f32.mrb[22].mxu0  ;;  %v567_v55 = vadd.f32 %v566_v47, %v4589_v0 }
 0x328   :  { %v4682_v2 = vadd.f32 %v568_v49, %v4587_v22  ;;  %v570_v53 = vpop.f32.mrb[23].mxu0 }
 0x329   :  { %v571_v57 = vadd.f32 %v570_v53, %v4589_v0 }
 0x32a   :  { %v4688_v51 = vpack.i.bf16 %v4682_v2, %v4679_v50 }
 0x32b   :  { %v3501_v59 = vpack.i.bf16 %v571_v57, %v567_v55  ;;  %v4692_v63 = vpack.c.bf16 %v571_v57, %v567_v55 }
 0x32d   :  { %3502 = vrot.lane.b32.xlu1 %v3501_v59, %s4173_s12  ;;  %v574_v46 = vpop.f32.mrb[24].mxu0 }
 0x32e   :  { %v576_v9 = vpop.f32.mrb[25].mxu0  ;;  %v4696_v13 = vadd.f32 %v574_v46, %v4587_v22 }
 0x32f   :  { %v578_v12 = vpop.f32.mrb[26].mxu0  ;;  %v577_v25 = vadd.f32 %v576_v9, %v4589_v0 }
 0x330   :  { %v4699_v17 = vadd.f32 %v578_v12, %v4587_v22  ;;  %v580_v21 = vpop.f32.mrb[27].mxu0  ;;  %v597_v12 = vld [vmem:[#allocation7 + $0x20] sm:$0xff] }
 0x331   :  { %v581_v3 = vadd.f32 %v580_v21, %v4589_v0 }
 0x332   :  { %v4705_v31 = vpack.i.bf16 %v4699_v17, %v4696_v13 }
 0x333   :  { %v3506_v38 = vpack.i.bf16 %v581_v3, %v577_v25  ;;  %v4709_v35 = vpack.c.bf16 %v581_v3, %v577_v25 }
 0x335   :  { %3507 = vrot.lane.b32.xlu0 %v3506_v38, %s4173_s12  ;;  %v584_v34 = vpop.f32.mrb[28].mxu0 }
 0x336   :  { %v586_v47 = vpop.f32.mrb[29].mxu0  ;;  %v4713_v53 = vadd.f32 %v584_v34, %v4587_v22 }
 0x337   :  { %v588_v49 = vpop.f32.mrb[30].mxu0  ;;  %v587_v59 = vadd.f32 %v586_v47, %v4589_v0 }
 0x338   :  { %v4716_v55 = vadd.f32 %v588_v49, %v4587_v22  ;;  %v590_v57 = vpop.f32.mrb[31].mxu0 }
 0x339   :  { %v591_v46 = vadd.f32 %v590_v57, %v4589_v0 }
 0x33a   :  { %v4722_v9 = vpack.i.bf16 %v4716_v55, %v4713_v53 }
 0x33b   :  { %v3511_v21 = vpack.i.bf16 %v591_v46, %v587_v59  ;;  %v4726_v25 = vpack.c.bf16 %v591_v46, %v587_v59 }
 0x33c   :  { %6143 = vst [vmem:[#allocation32_spill] sm:$0xff] %v4722_v9 }
 0x33d   :  { %3512 = vrot.lane.b32.xlu1 %v3511_v21, %s4173_s12 }
 0x33f   :  { %v3478_v22 = vpop.permute.xlu1 %3477 }
 0x340   :  { %v3479_v0 = vunpack.i.l.bf16 %v3478_v22  ;;  %v3480_v3 = vunpack.i.h.bf16 %v3478_v22 }
 0x341   :  { %1120 = vrot.lane.b32.xlu1 %v4605_v41, %s4176_s0 }
 0x345   :  { %1122 = vrot.lane.b32.xlu1 %v4624_v39, %s4176_s0 }
 0x349   :  { %1124 = vrot.lane.b32.xlu1 %v4641_v62, %s4176_s0 }
 0x34d   :  { %1126 = vrot.lane.b32.xlu1 %v4658_v58, %s4176_s0 }
 0x351   :  { %1128 = vrot.lane.b32.xlu1 %v4675_v52, %s4176_s0 }
 0x353   :  { %792 = vxpose.xlu0.b32.start [1/16] (narrow) %v3479_v0, 32 }
 0x355   :  { %1130 = vrot.lane.b32.xlu1 %v4692_v63, %s4176_s0 }
 0x357   :  { %793 = vxpose.xlu0.b32.cont [2/16] (narrow) %v3480_v3, 32  ;;  %v593_v3 = vld [vmem:[#allocation7] sm:$0xff] }
 0x359   :  { %1132 = vrot.lane.b32.xlu1 %v4709_v35, %s4176_s0 }
 0x35d   :  { %1134 = vrot.lane.b32.xlu1 %v4726_v25, %s4176_s0 }
 0x361   :  { %1706 = vrot.lane.b32.xlu1 %v4605_v41, %s4177_s30 }
 0x365   :  { %1413 = vrot.lane.b32.xlu1 %v4605_v41, %s4178_s21 }
 0x369   :  { %1708 = vrot.lane.b32.xlu1 %v4624_v39, %s4177_s30 }
 0x36d   :  { %1415 = vrot.lane.b32.xlu1 %v4624_v39, %s4178_s21 }
 0x371   :  { %1710 = vrot.lane.b32.xlu1 %v4641_v62, %s4177_s30 }
 0x375   :  { %1417 = vrot.lane.b32.xlu1 %v4641_v62, %s4178_s21 }
 0x379   :  { %1712 = vrot.lane.b32.xlu1 %v4658_v58, %s4177_s30 }
 0x37d   :  { %1419 = vrot.lane.b32.xlu1 %v4658_v58, %s4178_s21 }
 0x37f   :  { %v3483_v38 = vpop.permute.xlu0 %3482 }
 0x380   :  { %v3484_v41 = vunpack.i.l.bf16 %v3483_v38  ;;  %v3485_v34 = vunpack.i.h.bf16 %v3483_v38 }
 0x381   :  { %1714 = vrot.lane.b32.xlu1 %v4675_v52, %s4177_s30 }
 0x382   :  { %794 = vxpose.xlu0.b32.cont [3/16] (narrow) %v3484_v41, 32  ;;  %v594_v41 = vld [vmem:[#allocation7 + $0x8] sm:$0xff] }
 0x385   :  { %1421 = vrot.lane.b32.xlu1 %v4675_v52, %s4178_s21 }
 0x386   :  { %795 = vxpose.xlu0.b32.cont [4/16] (narrow) %v3485_v34, 32 }
 0x387   :  { %v3488_v47 = vpop.permute.xlu1 %3487 }
 0x388   :  { %v3489_v49 = vunpack.i.l.bf16 %v3488_v47  ;;  %v3490_v57 = vunpack.i.h.bf16 %v3488_v47 }
 0x389   :  { %1716 = vrot.lane.b32.xlu1 %v4692_v63, %s4177_s30 }
 0x38a   :  { %796 = vxpose.xlu0.b32.cont [5/16] (narrow) %v3489_v49, 32  ;;  %v595_v49 = vld [vmem:[#allocation7 + $0x10] sm:$0xff] }
 0x38d   :  { %1423 = vrot.lane.b32.xlu1 %v4692_v63, %s4178_s21 }
 0x38e   :  { %797 = vxpose.xlu0.b32.cont [6/16] (narrow) %v3490_v57, 32 }
 0x38f   :  { %v3493_v59 = vpop.permute.xlu1 %3492 }
 0x390   :  { %v3494_v46 = vunpack.i.l.bf16 %v3493_v59  ;;  %v3495_v21 = vunpack.i.h.bf16 %v3493_v59  ;;  %v596_v59 = vld [vmem:[#allocation7 + $0x18] sm:$0xff] }
 0x391   :  { %1718 = vrot.lane.b32.xlu1 %v4709_v35, %s4177_s30 }
 0x392   :  { %798 = vxpose.xlu0.b32.cont [7/16] (narrow) %v3494_v46, 32 }
 0x395   :  { %1425 = vrot.lane.b32.xlu1 %v4709_v35, %s4178_s21 }
 0x396   :  { %799 = vxpose.xlu0.b32.cont [8/16] (narrow) %v3495_v21, 32 }
 0x397   :  { %v3498_v22 = vpop.permute.xlu0 %3497 }
 0x398   :  { %v3499_v0 = vunpack.i.l.bf16 %v3498_v22  ;;  %v3500_v38 = vunpack.i.h.bf16 %v3498_v22  ;;  %v598_v22 = vld [vmem:[#allocation7 + $0x28] sm:$0xff] }
 0x399   :  { %1720 = vrot.lane.b32.xlu1 %v4726_v25, %s4177_s30 }
 0x39a   :  { %800 = vxpose.xlu0.b32.cont [9/16] (narrow) %v3499_v0, 32 }
 0x39d   :  { %612 = vperm.xlu1 %3516, %v593_v3  }
 0x39e   :  { %801 = vxpose.xlu0.b32.cont [10/16] (narrow) %v3500_v38, 32 }
 0x39f   :  { %v3503_v34 = vpop.permute.xlu1 %3502 }
 0x3a0   :  { %v3504_v47 = vunpack.i.l.bf16 %v3503_v34  ;;  %v3505_v57 = vunpack.i.h.bf16 %v3503_v34 }
 0x3a1   :  { %617 = vperm.xlu1 %3516, %v594_v41   ;;  %v599_v41 = vld [vmem:[#allocation7 + $0x30] sm:$0xff] }
 0x3a2   :  { %802 = vxpose.xlu0.b32.cont [11/16] (narrow) %v3504_v47, 32 }
 0x3a5   :  { %622 = vperm.xlu1 %3516, %v595_v49   ;;  %v600_v49 = vld [vmem:[#allocation7 + $0x38] sm:$0xff] }
 0x3a6   :  { %803 = vxpose.xlu0.b32.cont [12/16] (narrow) %v3505_v57, 32 }
 0x3a7   :  { %v3508_v46 = vpop.permute.xlu0 %3507 }
 0x3a8   :  { %v3509_v21 = vunpack.i.l.bf16 %v3508_v46  ;;  %v3510_v0 = vunpack.i.h.bf16 %v3508_v46 }
 0x3a9   :  { %627 = vperm.xlu1 %3516, %v596_v59   ;;  %v601_v59 = vld [vmem:[#allocation7 + $0x40] sm:$0xff] }
 0x3aa   :  { %804 = vxpose.xlu0.b32.cont [13/16] (narrow) %v3509_v21, 32 }
 0x3ad   :  { %632 = vperm.xlu1 %3516, %v597_v12   ;;  %v602_v12 = vld [vmem:[#allocation7 + $0x48] sm:$0xff] }
 0x3ae   :  { %805 = vxpose.xlu0.b32.cont [14/16] (narrow) %v3510_v0, 32  ;;  %v604_v0 = vld [vmem:[#allocation7 + $0x58] sm:$0xff] }
 0x3af   :  { %v3513_v3 = vpop.permute.xlu1 %3512 }
 0x3b0   :  { %v3514_v38 = vunpack.i.l.bf16 %v3513_v3  ;;  %v3515_v34 = vunpack.i.h.bf16 %v3513_v3 }
 0x3b1   :  { %637 = vperm.xlu1 %3516, %v598_v22  }
 0x3b2   :  { %806 = vxpose.xlu0.b32.cont [15/16] (narrow) %v3514_v38, 32  ;;  %v605_v38 = vld [vmem:[#allocation7 + $0x60] sm:$0xff] }
 0x3b3   :  { %v4767_v47 = vpop.permute.xlu1 %1120 }
 0x3b5   :  { %642 = vperm.xlu1 %3516, %v599_v41   ;;  %v607_v41 = vld [vmem:[#allocation7 + $0x70] sm:$0xff] }
 0x3b6   :  { %807 = vxpose.xlu0.b32.end [16/16] (narrow) %v3515_v34, 32 }
 0x3b7   :  { %v4769_v57 = vpop.permute.xlu1 %1122 }
 0x3b9   :  { %647 = vperm.xlu1 %3516, %v600_v49  }
 0x3bb   :  { %v4771_v21 = vpop.permute.xlu1 %1124 }
 0x3bd   :  { %652 = vperm.xlu1 %3516, %v601_v59  }
 0x3bf   :  { %v4773_v46 = vpop.permute.xlu1 %1126 }
 0x3c1   :  { %657 = vperm.xlu1 %3516, %v602_v12  }
 0x3c3   :  { %v4775_v22 = vpop.permute.xlu1 %1128 }
 0x3c5   :  { %667 = vperm.xlu1 %3516, %v604_v0  }
 0x3c7   :  { %v4777_v3 = vpop.permute.xlu1 %1130 }
 0x3c9   :  { %672 = vperm.xlu1 %3516, %v605_v38  }
 0x3cb   :  { %v4779_v34 = vpop.permute.xlu1 %1132 }
 0x3cd   :  { %682 = vperm.xlu1 %3516, %v607_v41   ;;  %v603_v41 = vld [vmem:[#allocation7 + $0x50] sm:$0xff] }
 0x3cf   :  { %v4781_v49 = vpop.permute.xlu1 %1134 }
 0x3d1   :  { %3524 = vrot.lane.b32.xlu1 %v4601_v36, %s4174_s6 }
 0x3d3   :  { %v1707_v59 = vpop.permute.xlu1 %1706 }
 0x3d4   :  { %3391 = vmatprep.mubr.msk.bf16.mxu0 %vm833_vm1, %v1707_v59 }
 0x3d5   :  { %3529 = vrot.lane.b32.xlu1 %v4601_v36, %s4166_s15 }
 0x3d7   :  { %v4788_v12 = vpop.permute.xlu1 %1413 }
 0x3d9   :  { %3534 = vrot.lane.b32.xlu1 %v4620_v56, %s4173_s12 }
 0x3db   :  { %v1709_v0 = vpop.permute.xlu1 %1708 }
 0x3dd   :  { %3544 = vrot.lane.b32.xlu1 %v4620_v56, %s4166_s15 }
 0x3df   :  { %v4794_v38 = vpop.permute.xlu1 %1415  ;;  %1427 = vrot.lane.b32.xlu0 %v4726_v25, %s4178_s21 }
 0x3e0   :  { %3517 = vset.pattern.permute.xlu0 %v4175_v45 }
 0x3e1   :  { %3554 = vrot.lane.b32.xlu1 %v4637_v60, %s4174_s6 }
 0x3e3   :  { %v1711_v59 = vpop.permute.xlu1 %1710  ;;  %662 = vperm.xlu0 %3517, %v603_v41  }
 0x3e5   :  { %3559 = vrot.lane.b32.xlu1 %v4637_v60, %s4166_s15 }
 0x3e7   :  { %v4803_v61 = vpop.permute.xlu1 %1417  ;;  %677 = vperm.xlu0 %3517, %v606_v32  }
 0x3e9   :  { %3564 = vrot.lane.b32.xlu1 %v4654_v8, %s4173_s12 }
 0x3eb   :  { %v1713_v16 = vpop.permute.xlu1 %1712  ;;  %687 = vperm.xlu0 %3517, %v608_v43  }
 0x3ed   :  { %3574 = vrot.lane.b32.xlu1 %v4654_v8, %s4166_s15 }
 0x3ef   :  { %v4809_v45 = vpop.permute.xlu1 %1419  ;;  %3519 = vrot.lane.b32.xlu0 %v4601_v36, %s4173_s12 }
 0x3f1   :  { %3584 = vrot.lane.b32.xlu1 %v4671_v42, %s4174_s6 }
 0x3f3   :  { %3539 = vrot.lane.b32.xlu0 %v4620_v56, %s4174_s6  ;;  %v1715_v32 = vpop.permute.xlu1 %1714 }
 0x3f5   :  { %3589 = vrot.lane.b32.xlu1 %v4671_v42, %s4166_s15 }
 0x3f7   :  { %3549 = vrot.lane.b32.xlu0 %v4637_v60, %s4173_s12  ;;  %v4823_v43 = vpop.permute.xlu1 %1421 }
 0x3f9   :  { %3594 = vrot.lane.b32.xlu1 %v4688_v51, %s4173_s12 }
 0x3fa   :  { %v808_v41 = vpop.trf.xlu0 }
 0x3fb   :  { %3569 = vrot.lane.b32.xlu0 %v4654_v8, %s4174_s6  ;;  %v832_v36 = vpack.c.bf16 %v808_v41, %v808_v41  ;;  %v1717_v48 = vpop.permute.xlu1 %1716 }
 0x3fd   :  { %3604 = vrot.lane.b32.xlu1 %v4688_v51, %s4166_s15  ;;  %3451 = vmatprep.subr.msk.bf16.mxu1 %vm858_vm2, %v832_v36  ;;  %v860_v56 = vsel %vm858_vm2, %v832_v36, 0 }
 0x3fe   :  { %3336 = vmatpush3.bf16.msra.mxu1 %v860_v56  ;;  %v809_v60 = vpop.trf.xlu0 }
 0x3ff   :  { %v1111_v1 = vpack.c.bf16 %v809_v60, %v809_v60  ;;  %3579 = vrot.lane.b32.xlu0 %v4671_v42, %s4173_s12  ;;  %v1424_v42 = vpop.permute.xlu1 %1423 }
 0x401   :  { %3614 = vrot.lane.b32.xlu1 %v4705_v31, %s4174_s6  ;;  %3338 = vmatmul.mubr.msk.bf16.vlgmr.msra.gmra.mrb[0].mxu1 %vm833_vm1, %v4624_v39  ;;  %v1161_v8 = vsel %vm858_vm2, %v1111_v1, 0 }
 0x402   :  { %3452 = vmatprep.subr.msk.bf16.mxu1 %vm858_vm2, %v1111_v1  ;;  %3341 = vmatprep.mubr.msk.bf16.mxu1 %vm833_vm1, %v4641_v62  ;;  %v810_v41 = vpop.trf.xlu0 }
 0x403   :  { %3354 = vmatpush3.bf16.msra.mxu1 %v1161_v8  ;;  %v1412_v36 = vpack.c.bf16 %v810_v41, %v810_v41  ;;  %3599 = vrot.lane.b32.xlu0 %v4688_v51, %s4174_s6  ;;  %v1719_v62 = vpop.permute.xlu1 %1718 }
 0x405   :  { %3619 = vrot.lane.b32.xlu1 %v4705_v31, %s4166_s15  ;;  %3453 = vmatprep.subr.msk.bf16.mxu1 %vm858_vm2, %v1412_v36 }
 0x406   :  { %v811_v39 = vpop.trf.xlu0 }
 0x407   :  { %v1705_v56 = vpack.c.bf16 %v811_v39, %v811_v39  ;;  %3609 = vrot.lane.b32.xlu0 %v4705_v31, %s4173_s12 }
 0x409   :  { %3624 = vrot.lane.b32.xlu1 %v4722_v9, %s4173_s12  ;;  %3342 = vmatmul.mubr.msk.bf16.gmra.mrb[4].mxu1 %vm833_vm1, %v4658_v58  ;;  %v1747_v1 = vsel %vm858_vm2, %v1705_v56, 0  ;;  %v1426_v58 = vpop.permute.xlu1 %1425 }
 0x40a   :  { %3454 = vmatprep.subr.msk.bf16.mxu0 %vm858_vm2, %v1705_v56  ;;  %3345 = vmatprep.mubr.msk.bf16.mxu1 %vm833_vm1, %v4675_v52 }
 0x40b   :  { %3390 = vmatpush3.bf16.msra.mxu0 %v1747_v1  ;;  %3629 = vrot.lane.b32.xlu0 %v4722_v9, %s4174_s6 }
 0x40d   :  { %v1721_v52 = vpop.permute.xlu1 %1720 }
 0x40e   :  { %3392 = vmatmul.mubr.msk.bf16.vlgmr.msra.gmra.mrb[32].mxu0 %vm833_vm1, %v1709_v0 }
 0x40f   :  { %3395 = vmatprep.mubr.msk.bf16.mxu0 %vm833_vm1, %v1711_v59 }
 0x411   :  { %3346 = vmatmul.mubr.msk.bf16.gmra.mrb[8].mxu1 %vm833_vm1, %v4692_v63 }
 0x412   :  { %3349 = vmatprep.mubr.msk.bf16.mxu1 %vm833_vm1, %v4709_v35 }
 0x416   :  { %3396 = vmatmul.mubr.msk.bf16.gmra.mrb[36].mxu0 %vm833_vm1, %v1713_v16  ;;  %v1454_v16 = vsel %vm858_vm2, %v1412_v36, 0 }
 0x417   :  { %3399 = vmatprep.mubr.msk.bf16.mxu0 %vm833_vm1, %v1715_v32 }
 0x419   :  { %3350 = vmatmul.mubr.msk.bf16.gmra.mrb[12].mxu1 %vm833_vm1, %v4726_v25 }
 0x41a   :  { %3355 = vmatprep.mubr.msk.bf16.mxu1 %vm833_vm1, %v4767_v47 }
 0x41c   :  { %v4870_v51 = vpop.permute.xlu1 %612 }
 0x41e   :  { %3400 = vmatmul.mubr.msk.bf16.gmra.mrb[40].mxu0 %vm833_vm1, %v1717_v48 }
 0x41f   :  { %3403 = vmatprep.mubr.msk.bf16.mxu0 %vm833_vm1, %v1719_v62 }
 0x420   :  { %v4874_v63 = vpop.permute.xlu1 %617 }
 0x421   :  { %3356 = vmatmul.mubr.msk.bf16.vlgmr.msra.gmra.mrb[16].mxu1 %vm833_vm1, %v4769_v57 }
 0x422   :  { %3372 = vmatpush3.bf16.msra.mxu1 %v1454_v16  ;;  %3359 = vmatprep.mubr.msk.bf16.mxu1 %vm833_vm1, %v4771_v21 }
 0x424   :  { %v4881_v31 = vpop.permute.xlu1 %622 }
 0x426   :  { %3404 = vmatmul.mubr.msk.bf16.gmra.mrb[44].mxu0 %vm833_vm1, %v1721_v52 }
 0x428   :  { %v4884_v35 = vpop.permute.xlu1 %627 }
 0x429   :  { %3360 = vmatmul.mubr.msk.bf16.gmra.mrb[20].mxu1 %vm833_vm1, %v4773_v46 }
 0x42a   :  { %3363 = vmatprep.mubr.msk.bf16.mxu1 %vm833_vm1, %v4775_v22 }
 0x42c   :  { %v4890_v48 = vpop.permute.xlu1 %632 }
 0x430   :  { %v4892_v25 = vpop.permute.xlu1 %637 }
 0x431   :  { %3364 = vmatmul.mubr.msk.bf16.gmra.mrb[24].mxu1 %vm833_vm1, %v4777_v3 }
 0x432   :  { %3367 = vmatprep.mubr.msk.bf16.mxu1 %vm833_vm1, %v4779_v34 }
 0x434   :  { %v4898_v47 = vpop.permute.xlu1 %642 }
 0x438   :  { %v4900_v57 = vpop.permute.xlu1 %647 }
 0x439   :  { %3368 = vmatmul.mubr.msk.bf16.gmra.mrb[28].mxu1 %vm833_vm1, %v4781_v49 }
 0x43a   :  { %3373 = vmatprep.mubr.msk.bf16.mxu1 %vm833_vm1, %v4788_v12 }
 0x43c   :  { %v4906_v21 = vpop.permute.xlu1 %652 }
 0x440   :  { %v4908_v46 = vpop.permute.xlu1 %657 }
 0x441   :  { %3374 = vmatmul.mubr.msk.bf16.vlgmr.msra.gmra.mrb[32].mxu1 %vm833_vm1, %v4794_v38 }
 0x442   :  { %3377 = vmatprep.mubr.msk.bf16.mxu1 %vm833_vm1, %v4803_v61 }
 0x444   :  { %v4914_v22 = vpop.permute.xlu1 %667 }
 0x448   :  { %v4916_v3 = vpop.permute.xlu1 %672 }
 0x449   :  { %3378 = vmatmul.mubr.msk.bf16.gmra.mrb[36].mxu1 %vm833_vm1, %v4809_v45 }
 0x44a   :  { %3381 = vmatprep.mubr.msk.bf16.mxu1 %vm833_vm1, %v4823_v43 }
 0x44c   :  { %v4922_v34 = vpop.permute.xlu1 %682 }
 0x450   :  { %v3525_v49 = vpop.permute.xlu1 %3524 }
 0x451   :  { %v3527_v12 = vunpack.i.h.bf16 %v3525_v49  ;;  %v3526_v0 = vunpack.i.l.bf16 %v3525_v49  ;;  %3382 = vmatmul.mubr.msk.bf16.gmra.mrb[40].mxu1 %vm833_vm1, %v1424_v42  ;;  %v1428_v8 = vpop.permute.xlu0 %1427 }
 0x452   :  { %3385 = vmatprep.mubr.msk.bf16.mxu1 %vm833_vm1, %v1426_v58 }
 0x453   :  { %v2182_v61 = vpack.c.bf16 %v3527_v12, %v3526_v0 }
 0x454   :  { %v3530_v38 = vpop.permute.xlu1 %3529 }
 0x455   :  { %v3532_v59 = vunpack.i.h.bf16 %v3530_v38  ;;  %v3531_v32 = vunpack.i.l.bf16 %v3530_v38  ;;  %3249 = vmatprep.subr.bf16.mxu0 %v2182_v61 }
 0x457   :  { %v2174_v60 = vpack.c.bf16 %v3532_v59, %v3531_v32 }
 0x458   :  { %v3535_v45 = vpop.permute.xlu1 %3534 }
 0x459   :  { %3386 = vmatmul.mubr.msk.bf16.gmra.mrb[44].mxu1 %vm833_vm1, %v1428_v8  ;;  %3250 = vmatpush3.bf16.msra.mxu0 %v2174_v60  ;;  %v3537_v58 = vunpack.i.h.bf16 %v3535_v45  ;;  %v3536_v52 = vunpack.i.l.bf16 %v3535_v45 }
 0x45b   :  { %v2167_v60 = vpack.c.bf16 %v3537_v58, %v3536_v52 }
 0x45c   :  { %v3545_v43 = vpop.permute.xlu1 %3544 }
 0x45d   :  { %v3547_v61 = vunpack.i.h.bf16 %v3545_v43  ;;  %v3546_v38 = vunpack.i.l.bf16 %v3545_v43 }
 0x45f   :  { %v2175_v45 = vpack.c.bf16 %v3547_v61, %v3546_v38 }
 0x460   :  { %v3555_v41 = vpop.permute.xlu1 %3554 }
 0x461   :  { %v3557_v8 = vunpack.i.h.bf16 %v3555_v41  ;;  %v3556_v37 = vunpack.i.l.bf16 %v3555_v41 }
 0x462   :  { %v4927_v36 = vpop.permute.xlu0 %662 }
 0x463   :  { %v2184_v41 = vpack.c.bf16 %v3557_v8, %v3556_v37  ;;  %v6146_v37 = vpack.c.bf16 %v4631_v33, %v4628_v54 }
 0x464   :  { %v3560_v39 = vpop.permute.xlu1 %3559 }
 0x465   :  { %v3561_v19 = vunpack.i.l.bf16 %v3560_v39 }
 0x466   :  { %v4929_v56 = vpop.permute.xlu0 %677 }
 0x468   :  { %v3565_v42 = vpop.permute.xlu1 %3564 }
 0x469   :  { %v3567_v15 = vunpack.i.h.bf16 %v3565_v42  ;;  %v3566_v43 = vunpack.i.l.bf16 %v3565_v42 }
 0x46a   :  { %v4931_v1 = vpop.permute.xlu0 %687 }
 0x46c   :  { %v3575_v62 = vpop.permute.xlu1 %3574 }
 0x46d   :  { %v3577_v28 = vunpack.i.h.bf16 %v3575_v62 }
 0x46e   :  { %v3520_v16 = vpop.permute.xlu0 %3519 }
 0x46f   :  { %v3522_v49 = vunpack.i.h.bf16 %v3520_v16  ;;  %v3521_v12 = vunpack.i.l.bf16 %v3520_v16  ;;  %v3562_v16 = vunpack.i.h.bf16 %v3560_v39  ;;  %v2169_v39 = vpack.c.bf16 %v3567_v15, %v3566_v43 }
 0x470   :  { %v3585_v0 = vpop.permute.xlu1 %3584 }
 0x471   :  { %v2166_v59 = vpack.c.bf16 %v3522_v49, %v3521_v12  ;;  %v3587_v61 = vunpack.i.h.bf16 %v3585_v0  ;;  %v3586_v42 = vunpack.i.l.bf16 %v3585_v0 }
 0x472   :  { %v3540_v32 = vpop.permute.xlu0 %3539 }
 0x473   :  { %v3542_v30 = vunpack.i.h.bf16 %v3540_v32  ;;  %v3541_v27 = vunpack.i.l.bf16 %v3540_v32  ;;  %3185 = vmatprep.subr.bf16.mxu1 %v2166_v59  ;;  %v6145_v59 = vpack.c.bf16 %v4614_v18, %v4611_v44  ;;  %v2186_v0 = vpack.c.bf16 %v3587_v61, %v3586_v42 }
 0x474   :  { %v3590_v24 = vpop.permute.xlu1 %3589  ;;  %3186 = vmatpush3.bf16.msra.mxu1 %v6144_v23  ;;  %v3576_v23 = vunpack.i.l.bf16 %v3575_v62 }
 0x475   :  { %3187 = vmatprep.subr.bf16.mxu1 %v2167_v60  ;;  %v2183_v20 = vpack.c.bf16 %v3542_v30, %v3541_v27  ;;  %v2176_v27 = vpack.c.bf16 %v3562_v16, %v3561_v19  ;;  %v3592_v62 = vunpack.i.h.bf16 %v3590_v24  ;;  %v3591_v60 = vunpack.i.l.bf16 %v3590_v24 }
 0x476   :  { %v3550_v49 = vpop.permute.xlu0 %3549  ;;  %v2177_v44 = vpack.c.bf16 %v3577_v28, %v3576_v23 }
 0x477   :  { %v3552_v12 = vunpack.i.h.bf16 %v3550_v49  ;;  %v3551_v58 = vunpack.i.l.bf16 %v3550_v49  ;;  %3251 = vmatprep.subr.bf16.mxu0 %v2183_v20  ;;  %v6147_v49 = vpack.c.bf16 %v4648_v5, %v4645_v4  ;;  %v2178_v33 = vpack.c.bf16 %v3592_v62, %v3591_v60 }
 0x478   :  { %v3595_v52 = vpop.permute.xlu1 %3594  ;;  %3188 = vmatpush3.bf16.msra.mxu1 %v6145_v59  ;;  %3252 = vmatpush3.bf16.msra.mxu0 %v2175_v45 }
 0x479   :  { %3253 = vmatprep.subr.bf16.mxu0 %v2184_v41  ;;  %v2168_v40 = vpack.c.bf16 %v3552_v12, %v3551_v58  ;;  %v3597_v8 = vunpack.i.h.bf16 %v3595_v52  ;;  %v3596_v19 = vunpack.i.l.bf16 %v3595_v52 }
 0x47a   :  { %v3570_v30 = vpop.permute.xlu0 %3569 }
 0x47b   :  { %v3572_v38 = vunpack.i.h.bf16 %v3570_v30  ;;  %v3571_v32 = vunpack.i.l.bf16 %v3570_v30  ;;  %3189 = vmatprep.subr.bf16.mxu1 %v2168_v40  ;;  %v2171_v24 = vpack.c.bf16 %v3597_v8, %v3596_v19 }
 0x47c   :  { %v3605_v20 = vpop.permute.xlu1 %3604  ;;  %3190 = vmatpush3.bf16.msra.mxu1 %v6146_v37  ;;  %3254 = vmatpush3.bf16.msra.mxu0 %v2176_v27  ;;  %v6148_v27 = vpack.c.bf16 %v4665_v29, %v4662_v26  ;;  %v6149_v37 = vpack.c.bf16 %v4682_v2, %v4679_v50  ;;  %v6151_v50 = vpack.c.bf16 %v4716_v55, %v4713_v53  ;;  %v4957_v2 = vld [vmem:[#allocation5] ss:$0 sm:$0xff] }
 0x47d   :  { %3191 = vmatprep.subr.bf16.mxu1 %v2169_v39  ;;  %v2185_v18 = vpack.c.bf16 %v3572_v38, %v3571_v32  ;;  %v3607_v12 = vunpack.i.h.bf16 %v3605_v20  ;;  %v3606_v58 = vunpack.i.l.bf16 %v3605_v20  ;;  %vm698_vm3 = vcmp.eq.f32.partialorder %v4881_v31, %v4957_v2 }
 0x47e   :  { %v3580_v45 = vpop.permute.xlu0 %3579  ;;  %vm699_vm4 = vcmp.eq.f32.partialorder %v4884_v35, %v4957_v2  ;;  %vm696_vm5 = vcmp.eq.f32.partialorder %v4870_v51, %v4957_v2  ;;  %vm697_vm6 = vcmp.eq.f32.partialorder %v4874_v63, %v4957_v2  ;;  %vm702_vm7 = vcmp.eq.f32.partialorder %v4898_v47, %v4957_v2 }
 0x47f   :  { %v3582_v15 = vunpack.i.h.bf16 %v3580_v45  ;;  %v3581_v16 = vunpack.i.l.bf16 %v3580_v45  ;;  %3255 = vmatprep.subr.bf16.mxu0 %v2185_v18  ;;  %v2179_v5 = vpack.c.bf16 %v3607_v12, %v3606_v58  ;;  %v6150_v45 = vpack.c.bf16 %v4699_v17, %v4696_v13 }
 0x480   :  { %v3615_v43 = vpop.permute.xlu1 %3614  ;;  %3192 = vmatpush3.bf16.msra.mxu1 %v6147_v49  ;;  %3256 = vmatpush3.bf16.msra.mxu0 %v2177_v44  ;;  %vm703_vm8 = vcmp.eq.f32.partialorder %v4900_v57, %v4957_v2  ;;  %vm700_vm9 = vcmp.eq.f32.partialorder %v4890_v48, %v4957_v2  ;;  %vm701_vm10 = vcmp.eq.f32.partialorder %v4892_v25, %v4957_v2 }
 0x481   :  { %3257 = vmatprep.subr.bf16.mxu0 %v2186_v0  ;;  %v2170_v54 = vpack.c.bf16 %v3582_v15, %v3581_v16  ;;  %v3617_v59 = vunpack.i.h.bf16 %v3615_v43  ;;  %v3616_v52 = vunpack.i.l.bf16 %v3615_v43  ;;  %v4179_v16 = vmov -1e+09  }
 0x482   :  { %v3600_v41 = vpop.permute.xlu0 %3599  ;;  %v4964_v13 = vsel %vm698_vm3, 0.0, %v4179_v16  ;;  %v4972_v55 = vsel %vm699_vm4, 0.0, %v4179_v16  ;;  %v4981_v49 = vsel %vm696_vm5, 0.0, %v4179_v16  ;;  %v5008_v57 = vsel %vm703_vm8, 0.0, %v4179_v16 }
 0x483   :  { %v3602_v28 = vunpack.i.h.bf16 %v3600_v41  ;;  %v3601_v23 = vunpack.i.l.bf16 %v3600_v41  ;;  %3193 = vmatprep.subr.bf16.mxu1 %v2170_v54  ;;  %v2188_v32 = vpack.c.bf16 %v3617_v59, %v3616_v52  ;;  %v4990_v54 = vsel %vm697_vm6, 0.0, %v4179_v16 }
 0x484   :  { %v3620_v40 = vpop.permute.xlu1 %3619  ;;  %3194 = vmatpush3.bf16.msra.mxu1 %v6148_v27  ;;  %3258 = vmatpush3.bf16.msra.mxu0 %v2178_v33  ;;  %v4999_v33 = vsel %vm702_vm7, 0.0, %v4179_v16  ;;  %v5017_v48 = vsel %vm700_vm9, 0.0, %v4179_v16  ;;  %vm706_vm11 = vcmp.eq.f32.partialorder %v4927_v36, %v4957_v2  ;;  %vm707_vm12 = vcmp.eq.f32.partialorder %v4914_v22, %v4957_v2 }
 0x485   :  { %3195 = vmatprep.subr.bf16.mxu1 %v2171_v24  ;;  %v2187_v4 = vpack.c.bf16 %v3602_v28, %v3601_v23  ;;  %v3622_v30 = vunpack.i.h.bf16 %v3620_v40  ;;  %v3621_v39 = vunpack.i.l.bf16 %v3620_v40  ;;  %v5024_v23 = vsel %vm701_vm10, 0.0, %v4179_v16 }
 0x486   :  { %v3610_v61 = vpop.permute.xlu0 %3609  ;;  %vm704_vm13 = vcmp.eq.f32.partialorder %v4906_v21, %v4957_v2  ;;  %vm705_vm14 = vcmp.eq.f32.partialorder %v4908_v46, %v4957_v2  ;;  %vm710_vm15 = vcmp.eq.f32.partialorder %v4922_v34, %v4957_v2  ;;  %vm711_vm1 = vcmp.eq.f32.partialorder %v4931_v1, %v4957_v2 }
 0x487   :  { %v3612_v42 = vunpack.i.h.bf16 %v3610_v61  ;;  %v3611_v38 = vunpack.i.l.bf16 %v3610_v61  ;;  %3259 = vmatprep.subr.bf16.mxu0 %v2187_v4  ;;  %v2180_v18 = vpack.c.bf16 %v3622_v30, %v3621_v39  ;;  %v5069_v21 = vsel %vm704_vm13, 0.0, %v4179_v16 }
 0x488   :  { %v3625_v20 = vpop.permute.xlu1 %3624  ;;  %3196 = vmatpush3.bf16.msra.mxu1 %v6149_v37  ;;  %3260 = vmatpush3.bf16.msra.mxu0 %v2179_v5  ;;  %v5045_v37 = vsel %vm706_vm11, 0.0, %v4179_v16  ;;  %vm708_vm2 = vcmp.eq.f32.partialorder %v4916_v3, %v4957_v2  ;;  %vm709_vm3 = vcmp.eq.f32.partialorder %v4929_v56, %v4957_v2  ;;  %vm2857_vm4 = vcmask 523264  }
 0x489   :  { %v3627_v44 = vunpack.i.h.bf16 %v3625_v20  ;;  %v3626_v26 = vunpack.i.l.bf16 %v3625_v20  ;;  %3261 = vmatprep.subr.bf16.mxu0 %v2188_v32  ;;  %v2172_v29 = vpack.c.bf16 %v3612_v42, %v3611_v38  ;;  %v5132_v6 = vsel %vm708_vm2, 0.0, %v4179_v16 }
 0x48a   :  { %v3630_v62 = vpop.permute.xlu0 %3629  ;;  %v5142_v56 = vsel %vm709_vm3, 0.0, %v4179_v16  ;;  %vm3016_vm5 = vcmask 785920   ;;  %vm3027_vm6 = vcmask 1048320  }
 0x48b   :  { %v3632_v60 = vunpack.i.h.bf16 %v3630_v62  ;;  %v3631_v8 = vunpack.i.l.bf16 %v3630_v62  ;;  %3197 = vmatprep.subr.bf16.mxu1 %v2172_v29  ;;  %v2173_v19 = vpack.c.bf16 %v3627_v44, %v3626_v26 }
 0x48c   :  { %3198 = vmatpush3.bf16.msra.mxu1 %v6150_v45  ;;  %3262 = vmatpush3.bf16.msra.mxu0 %v2180_v18 }
 0x48d   :  { %3199 = vmatprep.subr.bf16.mxu1 %v2173_v19  ;;  %v2189_v15 = vpack.c.bf16 %v3632_v60, %v3631_v8  ;;  %v5060_v8 = vsel %vm707_vm12, 0.0, %v4179_v16 }
 0x48f   :  { %3263 = vmatprep.subr.bf16.mxu0 %v2189_v15 }
 0x490   :  { %3200 = vmatpush3.bf16.msra.mxu1 %v6151_v50 }
 0x4d4   :  { %v3339_v17 = vpop.f32.mrb[0].mxu1 }
 0x4d5   :  { %v4969_v0 = vadd.f32 %v3339_v17, %v4964_v13  ;;  %v896_v53 = vpop.f32.mrb[1].mxu1  ;;  %v5076_v17 = vsel %vm705_vm14, 0.0, %v4179_v16 }
 0x4d6   :  { %v3340_v43 = vpop.f32.mrb[2].mxu1  ;;  %v4986_v51 = vadd.f32 %v896_v53, %v4981_v49 }
 0x4d7   :  { %v4977_v31 = vadd.f32 %v3340_v43, %v4972_v55  ;;  %963 = vmax.xlane.f32.xlu0 %v4969_v0  ;;  %v899_v35 = vpop.f32.mrb[3].mxu1 }
 0x4d8   :  { %v4995_v63 = vadd.f32 %v899_v35, %v4990_v54 }
 0x4d9   :  { %965 = vmax.xlane.f32.xlu1 %v4977_v31 }
 0x4db   :  { %959 = vmax.xlane.f32.xlu0 %v4986_v51 }
 0x4dc   :  { %v3343_v47 = vpop.f32.mrb[4].mxu1 }
 0x4dd   :  { %v5004_v12 = vadd.f32 %v3343_v47, %v4999_v33  ;;  %v912_v58 = vpop.f32.mrb[5].mxu1  ;;  %961 = vmax.xlane.f32.xlu1 %v4995_v63 }
 0x4de   :  { %v3344_v41 = vpop.f32.mrb[6].mxu1  ;;  %v5020_v52 = vadd.f32 %v912_v58, %v5017_v48 }
 0x4df   :  { %v5013_v24 = vadd.f32 %v3344_v41, %v5008_v57  ;;  %v915_v59 = vpop.f32.mrb[7].mxu1  ;;  %971 = vmax.xlane.f32.xlu0 %v5004_v12 }
 0x4e0   :  { %v5027_v25 = vadd.f32 %v915_v59, %v5024_v23 }
 0x4e1   :  { %v3393_v28 = vpop.f32.mrb[32].mxu0  ;;  %973 = vmax.xlane.f32.xlu1 %v5013_v24 }
 0x4e2   :  { %v1783_v40 = vpop.f32.mrb[33].mxu0  ;;  %v5031_v30 = vadd.f32 %v3393_v28, %v4964_v13 }
 0x4e3   :  { %v3394_v27 = vpop.f32.mrb[34].mxu0  ;;  %967 = vmax.xlane.f32.xlu0 %v5020_v52  ;;  %v5041_v32 = vadd.f32 %v1783_v40, %v4981_v49 }
 0x4e4   :  { %v1786_v4 = vpop.f32.mrb[35].mxu0  ;;  %v3347_v5 = vpop.f32.mrb[8].mxu1  ;;  %v5037_v42 = vadd.f32 %v3394_v27, %v4972_v55 }
 0x4e5   :  { %v928_v39 = vpop.f32.mrb[9].mxu1  ;;  %969 = vmax.xlane.f32.xlu1 %v5027_v25  ;;  %v5050_v36 = vadd.f32 %v1786_v4, %v4990_v54  ;;  %v5056_v62 = vadd.f32 %v3347_v5, %v5045_v37 }
 0x4e6   :  { %v3348_v61 = vpop.f32.mrb[10].mxu1  ;;  %v5072_v15 = vadd.f32 %v928_v39, %v5069_v21 }
 0x4e7   :  { %v931_v38 = vpop.f32.mrb[11].mxu1  ;;  %1850 = vmax.xlane.f32.xlu0 %v5031_v30  ;;  %6152 = vst [vmem:[#allocation33_spill] sm:$0xff] %v5056_v62  ;;  %v5065_v19 = vadd.f32 %v3348_v61, %v5060_v8 }
 0x4e8   :  { %6154 = vst [vmem:[#allocation35_spill] sm:$0xff] %v5072_v15  ;;  %v5079_v46 = vadd.f32 %v931_v38, %v5076_v17  ;;  %v5105_v38 = vsel %vm710_vm15, 0.0, %v4179_v16 }
 0x4e9   :  { %v3397_v20 = vpop.f32.mrb[36].mxu0  ;;  %1852 = vmax.xlane.f32.xlu1 %v5037_v42  ;;  %6153 = vst [vmem:[#allocation34_spill] sm:$0xff] %v5065_v19 }
 0x4ea   :  { %v1799_v44 = vpop.f32.mrb[37].mxu0  ;;  %v5083_v58 = vadd.f32 %v3397_v20, %v4999_v33 }
 0x4eb   :  { %v3398_v26 = vpop.f32.mrb[38].mxu0  ;;  %1846 = vmax.xlane.f32.xlu0 %v5041_v32  ;;  %v5093_v27 = vadd.f32 %v1799_v44, %v5017_v48 }
 0x4ec   :  { %v1802_v29 = vpop.f32.mrb[39].mxu0  ;;  %v3351_v18 = vpop.f32.mrb[12].mxu1  ;;  %v5087_v28 = vadd.f32 %v3398_v26, %v5008_v57 }
 0x4ed   :  { %v944_v60 = vpop.f32.mrb[13].mxu1  ;;  %1848 = vmax.xlane.f32.xlu1 %v5050_v36  ;;  %v5101_v39 = vadd.f32 %v1802_v29, %v5024_v23  ;;  %v5110_v44 = vadd.f32 %v3351_v18, %v5105_v38  ;;  %v5117_v29 = vsel %vm711_vm1, 0.0, %v4179_v16 }
 0x4ee   :  { %v3352_v22 = vpop.f32.mrb[14].mxu1 }
 0x4ef   :  { %v947_v45 = vpop.f32.mrb[15].mxu1  ;;  %979 = vmax.xlane.f32.xlu0 %v5056_v62  ;;  %6155 = vst [vmem:[#allocation36_spill] sm:$0xff] %v5110_v44  ;;  %v5125_v3 = vadd.f32 %v3352_v22, %v5117_v29 }
 0x4f1   :  { %v3401_v50 = vpop.f32.mrb[40].mxu0  ;;  %981 = vmax.xlane.f32.xlu1 %v5065_v19  ;;  %6156 = vst [vmem:[#allocation37_spill] sm:$0xff] %v5125_v3 }
 0x4f2   :  { %v1815_v53 = vpop.f32.mrb[41].mxu0  ;;  %v5149_v22 = vadd.f32 %v3401_v50, %v5045_v37 }
 0x4f3   :  { %v3402_v43 = vpop.f32.mrb[42].mxu0  ;;  %975 = vmax.xlane.f32.xlu0 %v5072_v15  ;;  %v5157_v16 = vadd.f32 %v1815_v53, %v5069_v21 }
 0x4f4   :  { %v1818_v35 = vpop.f32.mrb[43].mxu0  ;;  %v3357_v47 = vpop.f32.mrb[16].mxu1  ;;  %6159 = vst [vmem:[#allocation40_spill] sm:$0xff] %v5149_v22 }
 0x4f5   :  { %v1197_v41 = vpop.f32.mrb[17].mxu1  ;;  %977 = vmax.xlane.f32.xlu1 %v5079_v46 }
 0x4f6   :  { %v3358_v59 = vpop.f32.mrb[18].mxu1 }
 0x4f7   :  { %v1200_v40 = vpop.f32.mrb[19].mxu1  ;;  %1858 = vmax.xlane.f32.xlu0 %v5083_v58 }
 0x4f9   :  { %v3405_v4 = vpop.f32.mrb[44].mxu0  ;;  %1860 = vmax.xlane.f32.xlu1 %v5087_v28 }
 0x4fa   :  { %v5096_v5 = vpop.f32.mrb[45].mxu0  ;;  %v5185_v9 = vadd.f32 %v3405_v4, %v5105_v38 }
 0x4fb   :  { %v3406_v61 = vpop.f32.mrb[46].mxu0  ;;  %1854 = vmax.xlane.f32.xlu0 %v5093_v27 }
 0x4fc   :  { %v1834_v34 = vpop.f32.mrb[47].mxu0  ;;  %v3361_v20 = vpop.f32.mrb[20].mxu1  ;;  %6161 = vst [vmem:[#allocation42_spill] sm:$0xff] %v5185_v9 }
 0x4fd   :  { %v5113_v26 = vadd.f32 %v3361_v20, %v4999_v33  ;;  %v1213_v1 = vpop.f32.mrb[21].mxu1  ;;  %1856 = vmax.xlane.f32.xlu1 %v5101_v39 }
 0x4fe   :  { %v5120_v14 = vadd.f32 %v1213_v1, %v5017_v48  ;;  %v3362_v11 = vpop.f32.mrb[22].mxu1  ;;  %v5138_v1 = vadd.f32 %v944_v60, %v5132_v6  ;;  %v5153_v60 = vadd.f32 %v3402_v43, %v5060_v8 }
 0x4ff   :  { %v5128_v18 = vadd.f32 %v3362_v11, %v5008_v57  ;;  %v1216_v20 = vpop.f32.mrb[23].mxu1  ;;  %987 = vmax.xlane.f32.xlu0 %v5110_v44  ;;  %v5145_v11 = vadd.f32 %v947_v45, %v5142_v56  ;;  %v5161_v45 = vadd.f32 %v1818_v35, %v5076_v17  ;;  %v5177_v35 = vadd.f32 %v1200_v40, %v4990_v54 }
 0x500   :  { %v5135_v10 = vadd.f32 %v1216_v20, %v5024_v23  ;;  %6157 = vst [vmem:[#allocation38_spill] sm:$0xff] %v5138_v1  ;;  %6160 = vst [vmem:[#allocation41_spill] sm:$0xff] %v5153_v60 }
 0x501   :  { %989 = vmax.xlane.f32.xlu1 %v5125_v3  ;;  %6158 = vst [vmem:[#allocation39_spill] sm:$0xff] %v5145_v11  ;;  %v5165_v3 = vadd.f32 %v3357_v47, %v4964_v13  ;;  %v5181_v47 = vadd.f32 %v3358_v59, %v4972_v55 }
 0x503   :  { %983 = vmax.xlane.f32.xlu0 %v5138_v1 }
 0x504   :  { %v3365_v2 = vpop.f32.mrb[24].mxu1 }
 0x505   :  { %v1229_v7 = vpop.f32.mrb[25].mxu1  ;;  %985 = vmax.xlane.f32.xlu1 %v5145_v11  ;;  %v5171_v11 = vadd.f32 %v1197_v41, %v4981_v49 }
 0x506   :  { %v3366_v20 = vpop.f32.mrb[26].mxu1 }
 0x507   :  { %v1232_v44 = vpop.f32.mrb[27].mxu1  ;;  %1866 = vmax.xlane.f32.xlu0 %v5149_v22 }
 0x509   :  { %1868 = vmax.xlane.f32.xlu1 %v5153_v60  ;;  %v5195_v60 = vadd.f32 %v3406_v61, %v5117_v29 }
 0x50b   :  { %1862 = vmax.xlane.f32.xlu0 %v5157_v16 }
 0x50c   :  { %v3369_v50 = vpop.f32.mrb[28].mxu1 }
 0x50d   :  { %v5167_v1 = vpop.f32.mrb[29].mxu1  ;;  %1864 = vmax.xlane.f32.xlu1 %v5161_v45 }
 0x50e   :  { %v3370_v43 = vpop.f32.mrb[30].mxu1 }
 0x50f   :  { %v5173_v53 = vpop.f32.mrb[31].mxu1  ;;  %1264 = vmax.xlane.f32.xlu0 %v5165_v3 }
 0x511   :  { %1260 = vmax.xlane.f32.xlu1 %v5171_v11 }
 0x513   :  { %1262 = vmax.xlane.f32.xlu0 %v5177_v35 }
 0x514   :  { %v3375_v15 = vpop.f32.mrb[32].mxu1 }
 0x515   :  { %v5188_v41 = vadd.f32 %v3375_v15, %v4964_v13  ;;  %v1490_v19 = vpop.f32.mrb[33].mxu1  ;;  %1266 = vmax.xlane.f32.xlu1 %v5181_v47  ;;  %v5206_v13 = vadd.f32 %v5096_v5, %v5132_v6 }
 0x516   :  { %v5192_v40 = vadd.f32 %v1490_v19, %v4981_v49  ;;  %v3376_v62 = vpop.f32.mrb[34].mxu1  ;;  %v5210_v49 = vadd.f32 %v1834_v34, %v5142_v56 }
 0x517   :  { %v5198_v59 = vadd.f32 %v3376_v62, %v4972_v55  ;;  %v1493_v22 = vpop.f32.mrb[35].mxu1  ;;  %1874 = vmax.xlane.f32.xlu0 %v5185_v9 }
 0x518   :  { %v5202_v4 = vadd.f32 %v1493_v22, %v4990_v54  ;;  %v5230_v22 = vadd.f32 %v3365_v2, %v5045_v37 }
 0x519   :  { %1876 = vmax.xlane.f32.xlu1 %v5195_v60 }
 0x51b   :  { %1870 = vmax.xlane.f32.xlu0 %v5206_v13 }
 0x51c   :  { %v3379_v19 = vpop.f32.mrb[36].mxu1 }
 0x51d   :  { %v5214_v55 = vadd.f32 %v3379_v19, %v4999_v33  ;;  %v1506_v62 = vpop.f32.mrb[37].mxu1  ;;  %1872 = vmax.xlane.f32.xlu1 %v5210_v49 }
 0x51e   :  { %v5218_v54 = vadd.f32 %v1506_v62, %v5017_v48  ;;  %v3380_v15 = vpop.f32.mrb[38].mxu1 }
 0x51f   :  { %v5221_v5 = vadd.f32 %v3380_v15, %v5008_v57  ;;  %v1509_v61 = vpop.f32.mrb[39].mxu1  ;;  %1272 = vmax.xlane.f32.xlu0 %v5113_v26 }
 0x520   :  { %v5225_v34 = vadd.f32 %v1509_v61, %v5024_v23  ;;  %v5240_v23 = vadd.f32 %v3366_v20, %v5060_v8 }
 0x521   :  { %1274 = vmax.xlane.f32.xlu1 %v5128_v18 }
 0x523   :  { %1268 = vmax.xlane.f32.xlu0 %v5120_v14 }
 0x524   :  { %v3383_v33 = vpop.f32.mrb[40].mxu1 }
 0x525   :  { %v5233_v48 = vadd.f32 %v3383_v33, %v5045_v37  ;;  %v1522_v19 = vpop.f32.mrb[41].mxu1  ;;  %1270 = vmax.xlane.f32.xlu1 %v5135_v10  ;;  %v5250_v37 = vadd.f32 %v1229_v7, %v5069_v21  ;;  %v5254_v33 = vadd.f32 %v1232_v44, %v5076_v17 }
 0x526   :  { %v5237_v57 = vadd.f32 %v1522_v19, %v5069_v21  ;;  %v3384_v62 = vpop.f32.mrb[42].mxu1 }
 0x527   :  { %v5243_v15 = vadd.f32 %v3384_v62, %v5060_v8  ;;  %v1525_v61 = vpop.f32.mrb[43].mxu1  ;;  %1280 = vmax.xlane.f32.xlu0 %v5230_v22  ;;  %v5258_v8 = vadd.f32 %v3369_v50, %v5105_v38 }
 0x528   :  { %v5247_v2 = vadd.f32 %v1525_v61, %v5076_v17  ;;  %v5268_v61 = vadd.f32 %v3370_v43, %v5117_v29 }
 0x529   :  { %1282 = vmax.xlane.f32.xlu1 %v5240_v23  ;;  %6162 = vst [vmem:[#allocation43_spill] sm:$0xff] %v5258_v8 }
 0x52b   :  { %1276 = vmax.xlane.f32.xlu0 %v5250_v37 }
 0x52c   :  { %v3387_v20 = vpop.f32.mrb[44].mxu1 }
 0x52d   :  { %v5261_v19 = vadd.f32 %v3387_v20, %v5105_v38  ;;  %v1538_v62 = vpop.f32.mrb[45].mxu1  ;;  %1278 = vmax.xlane.f32.xlu1 %v5254_v33  ;;  %v5279_v38 = vadd.f32 %v5167_v1, %v5132_v6  ;;  %v5284_v20 = vadd.f32 %v5173_v53, %v5142_v56 }
 0x52e   :  { %v5265_v7 = vadd.f32 %v1538_v62, %v5132_v6  ;;  %v3388_v21 = vpop.f32.mrb[46].mxu1 }
 0x52f   :  { %6163 = vst [vmem:[#allocation44_spill] sm:$0xff] %v5261_v19  ;;  %v5271_v17 = vadd.f32 %v3388_v21, %v5117_v29  ;;  %v1541_v44 = vpop.f32.mrb[47].mxu1  ;;  %1288 = vmax.xlane.f32.xlu0 %v5258_v8 }
 0x530   :  { %6164 = vst [vmem:[#allocation45_spill] sm:$0xff] %v5265_v7  ;;  %v5275_v50 = vadd.f32 %v1541_v44, %v5142_v56 }
 0x531   :  { %6165 = vst [vmem:[#allocation46_spill] sm:$0xff] %v5271_v17  ;;  %1290 = vmax.xlane.f32.xlu1 %v5268_v61 }
 0x533   :  { %1284 = vmax.xlane.f32.xlu0 %v5279_v38 }
 0x535   :  { %1286 = vmax.xlane.f32.xlu1 %v5284_v20 }
 0x537   :  { %1557 = vmax.xlane.f32.xlu0 %v5188_v41 }
 0x539   :  { %1559 = vmax.xlane.f32.xlu1 %v5198_v59 }
 0x53b   :  { %1553 = vmax.xlane.f32.xlu0 %v5192_v40 }
 0x53d   :  { %1555 = vmax.xlane.f32.xlu1 %v5202_v4 }
 0x53f   :  { %1565 = vmax.xlane.f32.xlu0 %v5214_v55 }
 0x541   :  { %1567 = vmax.xlane.f32.xlu1 %v5221_v5 }
 0x543   :  { %1561 = vmax.xlane.f32.xlu0 %v5218_v54 }
 0x545   :  { %1563 = vmax.xlane.f32.xlu1 %v5225_v34 }
 0x547   :  { %1573 = vmax.xlane.f32.xlu0 %v5233_v48 }
 0x549   :  { %1575 = vmax.xlane.f32.xlu1 %v5243_v15 }
 0x54b   :  { %1569 = vmax.xlane.f32.xlu0 %v5237_v57 }
 0x54d   :  { %1571 = vmax.xlane.f32.xlu1 %v5247_v2 }
 0x54f   :  { %1581 = vmax.xlane.f32.xlu0 %v5261_v19 }
 0x551   :  { %1583 = vmax.xlane.f32.xlu1 %v5271_v17 }
 0x553   :  { %1577 = vmax.xlane.f32.xlu0 %v5265_v7 }
 0x555   :  { %1579 = vmax.xlane.f32.xlu1 %v5275_v50 }
 0x564   :  { %v964_v6 = vpop.xlane.xlu0 %963 }
 0x565   :  { %v993_v29 = vsub.f32 %v4969_v0, %v964_v6 }
 0x566   :  { %v966_v1 = vpop.xlane.xlu1 %965 }
 0x567   :  { %v1011_v56 = vmul.f32 1.442695, %v993_v29  ;;  %v994_v43 = vsub.f32 %v4977_v31, %v966_v1 }
 0x568   :  { %v960_v53 = vpop.xlane.xlu0 %959 }
 0x569   :  { %3682 = vpow2.f32 %v1011_v56  ;;  %v1013_v62 = vmul.f32 1.442695, %v994_v43  ;;  %v991_v21 = vsub.f32 %v4986_v51, %v960_v53 }
 0x56a   :  { %v962_v44 = vpop.xlane.xlu1 %961 }
 0x56b   :  { %3684 = vpow2.f32 %v1013_v62  ;;  %v1007_v19 = vmul.f32 1.442695, %v991_v21  ;;  %v992_v9 = vsub.f32 %v4995_v63, %v962_v44 }
 0x56c   :  { %v972_v7 = vpop.xlane.xlu0 %971 }
 0x56d   :  { %3686 = vpow2.f32 %v1007_v19  ;;  %v1009_v17 = vmul.f32 1.442695, %v992_v9  ;;  %v997_v8 = vsub.f32 %v5004_v12, %v972_v7 }
 0x56e   :  { %v974_v0 = vpop.xlane.xlu1 %973 }
 0x56f   :  { %3688 = vpow2.f32 %v1009_v17  ;;  %v1019_v6 = vmul.f32 1.442695, %v997_v8  ;;  %v998_v31 = vsub.f32 %v5013_v24, %v974_v0 }
 0x570   :  { %v968_v29 = vpop.xlane.xlu0 %967 }
 0x571   :  { %3690 = vpow2.f32 %v1019_v6  ;;  %v1021_v1 = vmul.f32 1.442695, %v998_v31  ;;  %v995_v51 = vsub.f32 %v5020_v52, %v968_v29 }
 0x572   :  { %v970_v56 = vpop.xlane.xlu1 %969 }
 0x573   :  { %v5311_v43 = vpop.eup %3682  ;;  %3692 = vpow2.f32 %v1021_v1  ;;  %v1015_v63 = vmul.f32 1.442695, %v995_v51  ;;  %v996_v19 = vsub.f32 %v5027_v25, %v970_v56 }
 0x574   :  { %6166 = vst [vmem:[#allocation47_spill] sm:$0xff] %v5311_v43  ;;  %1043 = vadd.xlane.f32.xlu1 %v5311_v43  ;;  %v1851_v9 = vpop.xlane.xlu0 %1850 }
 0x575   :  { %v5315_v12 = vpop.eup %3684  ;;  %3694 = vpow2.f32 %v1015_v63  ;;  %v1017_v8 = vmul.f32 1.442695, %v996_v19  ;;  %v1880_v24 = vsub.f32 %v5031_v30, %v1851_v9 }
 0x576   :  { %v1853_v7 = vpop.xlane.xlu1 %1852  ;;  %1045 = vadd.xlane.f32.xlu0 %v5315_v12 }
 0x577   :  { %v5319_v52 = vpop.eup %3686  ;;  %3696 = vpow2.f32 %v1017_v8  ;;  %v1898_v17 = vmul.f32 1.442695, %v1880_v24  ;;  %v1881_v30 = vsub.f32 %v5037_v42, %v1853_v7 }
 0x578   :  { %1039 = vadd.xlane.f32.xlu1 %v5319_v52  ;;  %v1847_v53 = vpop.xlane.xlu0 %1846 }
 0x579   :  { %v5322_v25 = vpop.eup %3688  ;;  %v1878_v62 = vsub.f32 %v5041_v32, %v1847_v53  ;;  %3698 = vpow2.f32 %v1898_v17  ;;  %v1900_v1 = vmul.f32 1.442695, %v1881_v30 }
 0x57a   :  { %v1849_v21 = vpop.xlane.xlu1 %1848  ;;  %1041 = vadd.xlane.f32.xlu0 %v5322_v25 }
 0x57b   :  { %v5326_v44 = vpop.eup %3690  ;;  %v1894_v0 = vmul.f32 1.442695, %v1878_v62  ;;  %v1879_v51 = vsub.f32 %v5050_v36, %v1849_v21 }
 0x57c   :  { %6167 = vst [vmem:[#allocation48_spill] sm:$0xff] %v5326_v44  ;;  %1051 = vadd.xlane.f32.xlu1 %v5326_v44  ;;  %v5330_v6 = vpop.xlane.xlu0 %979 }
 0x57d   :  { %v5332_v31 = vpop.eup %3692  ;;  %3700 = vpow2.f32 %v1894_v0  ;;  %v1896_v19 = vmul.f32 1.442695, %v1879_v51 }
 0x57e   :  { %6168 = vst [vmem:[#allocation49_spill] sm:$0xff] %v5332_v31  ;;  %v5334_v29 = vpop.xlane.xlu1 %981  ;;  %1053 = vadd.xlane.f32.xlu0 %v5332_v31  ;;  %3702 = vpow2.f32 %v1900_v1 }
 0x57f   :  { %v5337_v32 = vpop.eup %3694  ;;  %3704 = vpow2.f32 %v1896_v19 }
 0x580   :  { %6169 = vst [vmem:[#allocation50_spill] sm:$0xff] %v5337_v32  ;;  %1047 = vadd.xlane.f32.xlu1 %v5337_v32  ;;  %v5341_v42 = vpop.xlane.xlu0 %975 }
 0x581   :  { %v5343_v56 = vpop.eup %3696 }
 0x582   :  { %6170 = vst [vmem:[#allocation51_spill] sm:$0xff] %v5343_v56  ;;  %v5345_v63 = vpop.xlane.xlu1 %977  ;;  %1049 = vadd.xlane.f32.xlu0 %v5343_v56 }
 0x583   :  { %v5348_v8 = vpop.eup %3698 }
 0x584   :  { %v1859_v9 = vpop.xlane.xlu0 %1858  ;;  %6171 = vst [vmem:[#allocation52_spill] sm:$0xff] %v5348_v8 }
 0x585   :  { %v1884_v24 = vsub.f32 %v5083_v58, %v1859_v9 }
 0x586   :  { %v1861_v7 = vpop.xlane.xlu1 %1860  ;;  %1930 = vadd.xlane.f32.xlu0 %v5348_v8 }
 0x587   :  { %v1906_v36 = vmul.f32 1.442695, %v1884_v24  ;;  %v5352_v53 = vpop.eup %3700  ;;  %v1885_v30 = vsub.f32 %v5087_v28, %v1861_v7 }
 0x588   :  { %v1855_v17 = vpop.xlane.xlu0 %1854  ;;  %v5359_v58 = vpop.eup %3702 }
 0x589   :  { %v1882_v62 = vsub.f32 %v5093_v27, %v1855_v17  ;;  %3706 = vpow2.f32 %v1906_v36  ;;  %6172 = vst [vmem:[#allocation53_spill] sm:$0xff] %v5359_v58  ;;  %v1908_v19 = vmul.f32 1.442695, %v1885_v30  ;;  %v5367_v24 = vpop.eup %3704 }
 0x58a   :  { %v1857_v21 = vpop.xlane.xlu1 %1856  ;;  %1926 = vadd.xlane.f32.xlu0 %v5352_v53 }
 0x58b   :  { %v1902_v0 = vmul.f32 1.442695, %v1882_v62  ;;  %v1883_v9 = vsub.f32 %v5101_v39, %v1857_v21 }
 0x58c   :  { %v5357_v1 = vpop.xlane.xlu0 %987 }
 0x58d   :  { %3708 = vpow2.f32 %v1902_v0  ;;  %v1904_v28 = vmul.f32 1.442695, %v1883_v9 }
 0x58e   :  { %v5361_v51 = vpop.xlane.xlu1 %989  ;;  %1932 = vadd.xlane.f32.xlu0 %v5359_v58  ;;  %3710 = vpow2.f32 %v1908_v19 }
 0x58f   :  { %3712 = vpow2.f32 %v1904_v28 }
 0x590   :  { %v5365_v27 = vpop.xlane.xlu0 %983 }
 0x592   :  { %v5369_v36 = vpop.xlane.xlu1 %985  ;;  %1928 = vadd.xlane.f32.xlu0 %v5367_v24 }
 0x593   :  { %v5374_v17 = vpop.eup %3706 }
 0x594   :  { %v5372_v7 = vpop.xlane.xlu0 %1866  ;;  %6173 = vst [vmem:[#allocation54_spill] sm:$0xff] %v5374_v17 }
 0x596   :  { %v5376_v62 = vpop.xlane.xlu1 %1868  ;;  %1938 = vadd.xlane.f32.xlu0 %v5374_v17 }
 0x597   :  { %v5381_v21 = vpop.eup %3708 }
 0x598   :  { %v5379_v39 = vpop.xlane.xlu0 %1862  ;;  %6174 = vst [vmem:[#allocation55_spill] sm:$0xff] %v5381_v21  ;;  %v5386_v19 = vpop.eup %3710 }
 0x599   :  { %6175 = vst [vmem:[#allocation56_spill] sm:$0xff] %v5386_v19  ;;  %v5391_v44 = vpop.eup %3712 }
 0x59a   :  { %v5383_v30 = vpop.xlane.xlu1 %1864  ;;  %1934 = vadd.xlane.f32.xlu0 %v5381_v21  ;;  %6176 = vst [vmem:[#allocation57_spill] sm:$0xff] %v5391_v44 }
 0x59c   :  { %v1265_v0 = vpop.xlane.xlu0 %1264 }
 0x59d   :  { %v1294_v9 = vsub.f32 %v5165_v3, %v1265_v0 }
 0x59e   :  { %v1261_v8 = vpop.xlane.xlu1 %1260  ;;  %1940 = vadd.xlane.f32.xlu0 %v5386_v19 }
 0x59f   :  { %v1312_v58 = vmul.f32 1.442695, %v1294_v9  ;;  %v1292_v17 = vsub.f32 %v5171_v11, %v1261_v8 }
 0x5a0   :  { %v1263_v28 = vpop.xlane.xlu0 %1262 }
 0x5a1   :  { %3714 = vpow2.f32 %v1312_v58  ;;  %v1308_v31 = vmul.f32 1.442695, %v1292_v17  ;;  %v1293_v21 = vsub.f32 %v5177_v35, %v1263_v28 }
 0x5a2   :  { %v1267_v32 = vpop.xlane.xlu1 %1266  ;;  %1936 = vadd.xlane.f32.xlu0 %v5391_v44 }
 0x5a3   :  { %v1295_v56 = vsub.f32 %v5181_v47, %v1267_v32  ;;  %3716 = vpow2.f32 %v1308_v31  ;;  %v1310_v9 = vmul.f32 1.442695, %v1293_v21 }
 0x5a4   :  { %v5396_v43 = vpop.xlane.xlu0 %1874 }
 0x5a5   :  { %v1314_v3 = vmul.f32 1.442695, %v1295_v56 }
 0x5a6   :  { %v5398_v0 = vpop.xlane.xlu1 %1876 }
 0x5a7   :  { %3718 = vpow2.f32 %v1314_v3 }
 0x5a8   :  { %v5400_v11 = vpop.xlane.xlu0 %1870  ;;  %3720 = vpow2.f32 %v1310_v9 }
 0x5aa   :  { %v5402_v8 = vpop.xlane.xlu1 %1872 }
 0x5ab   :  { %v5404_v58 = vpop.eup %3714 }
 0x5ac   :  { %1344 = vadd.xlane.f32.xlu0 %v5404_v58  ;;  %v1273_v35 = vpop.xlane.xlu0 %1272 }
 0x5ad   :  { %v1298_v47 = vsub.f32 %v5113_v26, %v1273_v35  ;;  %v5408_v17 = vpop.eup %3716 }
 0x5ae   :  { %v1275_v32 = vpop.xlane.xlu1 %1274 }
 0x5af   :  { %v1320_v31 = vmul.f32 1.442695, %v1298_v47  ;;  %v1299_v56 = vsub.f32 %v5128_v18, %v1275_v32 }
 0x5b0   :  { %1340 = vadd.xlane.f32.xlu0 %v5408_v17  ;;  %v1269_v21 = vpop.xlane.xlu0 %1268 }
 0x5b1   :  { %v5412_v28 = vpop.eup %3718  ;;  %3722 = vpow2.f32 %v1320_v31  ;;  %v1322_v3 = vmul.f32 1.442695, %v1299_v56  ;;  %v1296_v9 = vsub.f32 %v5120_v14, %v1269_v21 }
 0x5b2   :  { %v1271_v19 = vpop.xlane.xlu1 %1270  ;;  %1346 = vadd.xlane.f32.xlu1 %v5412_v28  ;;  %v5419_v47 = vpop.eup %3720 }
 0x5b3   :  { %3724 = vpow2.f32 %v1322_v3  ;;  %v1316_v26 = vmul.f32 1.442695, %v1296_v9  ;;  %v1297_v35 = vsub.f32 %v5135_v10, %v1271_v19 }
 0x5b4   :  { %v5417_v44 = vpop.xlane.xlu0 %1280 }
 0x5b5   :  { %3726 = vpow2.f32 %v1316_v26  ;;  %v1318_v18 = vmul.f32 1.442695, %v1297_v35  ;;  %v1886_v26 = vsub.f32 %v5157_v16, %v5379_v39 }
 0x5b6   :  { %v5421_v32 = vpop.xlane.xlu1 %1282  ;;  %1342 = vadd.xlane.f32.xlu1 %v5419_v47 }
 0x5b7   :  { %3728 = vpow2.f32 %v1318_v18 }
 0x5b8   :  { %v1277_v31 = vpop.xlane.xlu0 %1276 }
 0x5b9   :  { %v1300_v14 = vsub.f32 %v5250_v37, %v1277_v31 }
 0x5ba   :  { %v1279_v56 = vpop.xlane.xlu1 %1278 }
 0x5bb   :  { %v5425_v21 = vpop.eup %3722  ;;  %v1324_v3 = vmul.f32 1.442695, %v1300_v14  ;;  %v1301_v10 = vsub.f32 %v5254_v33, %v1279_v56  ;;  %v1887_v33 = vsub.f32 %v5161_v45, %v5383_v30  ;;  %v1910_v56 = vmul.f32 1.442695, %v1886_v26 }
 0x5bc   :  { %6177 = vst [vmem:[#allocation58_spill] sm:$0xff] %v5425_v21  ;;  %1352 = vadd.xlane.f32.xlu0 %v5425_v21  ;;  %v5429_v19 = vpop.xlane.xlu0 %1288 }
 0x5bd   :  { %v5431_v9 = vpop.eup %3724  ;;  %3730 = vpow2.f32 %v1324_v3  ;;  %v1326_v35 = vmul.f32 1.442695, %v1301_v10  ;;  %v1912_v39 = vmul.f32 1.442695, %v1887_v33 }
 0x5be   :  { %6178 = vst [vmem:[#allocation59_spill] sm:$0xff] %v5431_v9  ;;  %v5435_v18 = vpop.xlane.xlu1 %1290  ;;  %1354 = vadd.xlane.f32.xlu1 %v5431_v9 }
 0x5bf   :  { %v5438_v37 = vpop.eup %3726  ;;  %3732 = vpow2.f32 %v1326_v35 }
 0x5c0   :  { %6179 = vst [vmem:[#allocation60_spill] sm:$0xff] %v5438_v37  ;;  %1348 = vadd.xlane.f32.xlu0 %v5438_v37  ;;  %v5443_v31 = vpop.xlane.xlu0 %1284  ;;  %3734 = vpow2.f32 %v1910_v56 }
 0x5c1   :  { %v5445_v14 = vpop.eup %3728  ;;  %3736 = vpow2.f32 %v1912_v39 }
 0x5c2   :  { %6180 = vst [vmem:[#allocation61_spill] sm:$0xff] %v5445_v14  ;;  %v5447_v16 = vpop.xlane.xlu1 %1286  ;;  %1350 = vadd.xlane.f32.xlu1 %v5445_v14 }
 0x5c4   :  { %v1558_v3 = vpop.xlane.xlu0 %1557 }
 0x5c5   :  { %v1587_v10 = vsub.f32 %v5188_v41, %v1558_v3 }
 0x5c6   :  { %v1560_v21 = vpop.xlane.xlu1 %1559 }
 0x5c7   :  { %v5451_v9 = vpop.eup %3730  ;;  %v1605_v45 = vmul.f32 1.442695, %v1587_v10  ;;  %v1588_v30 = vsub.f32 %v5198_v59, %v1560_v21  ;;  %v1000_v59 = vsub.f32 %v5079_v46, %v5345_v63  ;;  %v1303_v63 = vsub.f32 %v5240_v23, %v5421_v32  ;;  %v6182_v23 = vld [vmem:[#allocation41_spill] sm:$0xff] }
 0x5c8   :  { %1356 = vadd.xlane.f32.xlu0 %v5451_v9  ;;  %v1554_v26 = vpop.xlane.xlu0 %1553  ;;  %v1889_v32 = vsub.f32 %v6182_v23, %v5376_v62 }
 0x5c9   :  { %3738 = vpow2.f32 %v1605_v45  ;;  %v1607_v35 = vmul.f32 1.442695, %v1588_v30  ;;  %v1585_v37 = vsub.f32 %v5192_v40, %v1554_v26  ;;  %v5456_v33 = vpop.eup %3732  ;;  %v1025_v3 = vmul.f32 1.442695, %v1000_v59 }
 0x5ca   :  { %v1556_v14 = vpop.xlane.xlu1 %1555  ;;  %v5462_v39 = vpop.eup %3734  ;;  %v1302_v40 = vsub.f32 %v5230_v22, %v5417_v44  ;;  %v6181_v22 = vld [vmem:[#allocation40_spill] sm:$0xff]  ;;  %v1330_v45 = vmul.f32 1.442695, %v1303_v63 }
 0x5cb   :  { %v1601_v56 = vmul.f32 1.442695, %v1585_v37  ;;  %v1586_v41 = vsub.f32 %v5202_v4, %v1556_v14  ;;  %3740 = vpow2.f32 %v1607_v35  ;;  %v5467_v37 = vpop.eup %3736  ;;  %v1888_v44 = vsub.f32 %v6181_v22, %v5372_v7 }
 0x5cc   :  { %1358 = vadd.xlane.f32.xlu0 %v5456_v33  ;;  %v1328_v46 = vmul.f32 1.442695, %v1302_v40  ;;  %v1916_v7 = vmul.f32 1.442695, %v1889_v32  ;;  %v1566_v59 = vpop.xlane.xlu0 %1565  ;;  %v6184_v40 = vld [vmem:[#allocation34_spill] sm:$0xff] }
 0x5cd   :  { %3742 = vpow2.f32 %v1601_v56  ;;  %v1603_v21 = vmul.f32 1.442695, %v1586_v41  ;;  %v1914_v26 = vmul.f32 1.442695, %v1888_v44  ;;  %v6183_v56 = vld [vmem:[#allocation33_spill] sm:$0xff]  ;;  %v1305_v44 = vsub.f32 %v5284_v20, %v5447_v16 }
 0x5ce   :  { %v1001_v41 = vsub.f32 %v6183_v56, %v5330_v6  ;;  %v1568_v22 = vpop.xlane.xlu1 %1567 }
 0x5cf   :  { %3744 = vpow2.f32 %v1603_v21  ;;  %v1592_v23 = vsub.f32 %v5221_v5, %v1568_v22 }
 0x5d0   :  { %1942 = vadd.xlane.f32.xlu0 %v5462_v39  ;;  %3746 = vpow2.f32 %v1025_v3  ;;  %v1027_v3 = vmul.f32 1.442695, %v1001_v41  ;;  %v1562_v63 = vpop.xlane.xlu0 %1561 }
 0x5d1   :  { %3748 = vpow2.f32 %v1328_v46  ;;  %v1002_v46 = vsub.f32 %v6184_v40, %v5334_v29  ;;  %v1334_v29 = vmul.f32 1.442695, %v1305_v44  ;;  %v1615_v20 = vmul.f32 1.442695, %v1592_v23 }
 0x5d2   :  { %3750 = vpow2.f32 %v1330_v45  ;;  %v6185_v45 = vld [vmem:[#allocation32_spill] sm:$0xff]  ;;  %v1564_v56 = vpop.xlane.xlu1 %1563  ;;  %v1891_v40 = vsub.f32 %v5210_v49, %v5402_v8 }
 0x5d3   :  { %v5469_v4 = vpop.eup %3738  ;;  %3752 = vpow2.f32 %v1914_v26  ;;  %v1029_v6 = vmul.f32 1.442695, %v1002_v46  ;;  %v1590_v16 = vsub.f32 %v5225_v34, %v1564_v56  ;;  %v1589_v56 = vsub.f32 %v5218_v54, %v1562_v63  ;;  %v6187_v54 = vld [vmem:[#allocation39_spill] sm:$0xff] }
 0x5d4   :  { %1944 = vadd.xlane.f32.xlu0 %v5467_v37  ;;  %1637 = vadd.xlane.f32.xlu1 %v5469_v4  ;;  %3754 = vpow2.f32 %v1916_v7  ;;  %v5509_v32 = vpop.xlane.xlu0 %1573  ;;  %v1004_v63 = vsub.f32 %v6187_v54, %v5369_v36  ;;  %v1890_v36 = vsub.f32 %v5206_v13, %v5400_v11 }
 0x5d5   :  { %v5475_v14 = vpop.eup %3740  ;;  %3756 = vpow2.f32 %v1027_v3  ;;  %v1611_v5 = vmul.f32 1.442695, %v1590_v16 }
 0x5d6   :  { %3758 = vpow2.f32 %v1029_v6  ;;  %v1576_v22 = vpop.xlane.xlu1 %1575  ;;  %v1920_v6 = vmul.f32 1.442695, %v1891_v40  ;;  %v1918_v13 = vmul.f32 1.442695, %v1890_v36 }
 0x5d7   :  { %v5477_v10 = vpop.eup %3742  ;;  %3760 = vpow2.f32 %v1334_v29  ;;  %v1596_v49 = vsub.f32 %v5243_v15, %v1576_v22  ;;  %v1609_v15 = vmul.f32 1.442695, %v1589_v56 }
 0x5d8   :  { %1639 = vadd.xlane.f32.xlu0 %v5475_v14  ;;  %1633 = vadd.xlane.f32.xlu1 %v5477_v10  ;;  %v1570_v3 = vpop.xlane.xlu0 %1569  ;;  %3762 = vpow2.f32 %v1615_v20 }
 0x5d9   :  { %v5483_v30 = vpop.eup %3744  ;;  %3764 = vpow2.f32 %v1611_v5  ;;  %v1593_v44 = vsub.f32 %v5237_v57, %v1570_v3  ;;  %v1623_v57 = vmul.f32 1.442695, %v1596_v49 }
 0x5da   :  { %v5488_v35 = vpop.eup %3746  ;;  %3766 = vpow2.f32 %v1920_v6  ;;  %v1572_v20 = vpop.xlane.xlu1 %1571 }
 0x5db   :  { %v5493_v21 = vpop.eup %3748  ;;  %v1617_v8 = vmul.f32 1.442695, %v1593_v44 }
 0x5dc   :  { %1635 = vadd.xlane.f32.xlu0 %v5483_v30  ;;  %v5498_v62 = vpop.eup %3750  ;;  %v5524_v34 = vpop.xlane.xlu0 %1581 }
 0x5dd   :  { %v5505_v26 = vpop.eup %3752  ;;  %3768 = vpow2.f32 %v1617_v8  ;;  %v1033_v8 = vmul.f32 1.442695, %v1004_v63 }
 0x5de   :  { %v5511_v41 = vpop.eup %3754  ;;  %v1584_v49 = vpop.xlane.xlu1 %1583 }
 0x5df   :  { %v5515_v7 = vpop.eup %3756 }
 0x5e0   :  { %1057 = vadd.xlane.f32.xlu0 %v5488_v35  ;;  %v5520_v46 = vpop.eup %3758  ;;  %v5534_v40 = vpop.xlane.xlu0 %1577 }
 0x5e1   :  { %v5527_v29 = vpop.eup %3760 }
 0x5e2   :  { %v5532_v16 = vpop.eup %3762  ;;  %v1580_v11 = vpop.xlane.xlu1 %1579 }
 0x5e3   :  { %v5540_v5 = vpop.eup %3764 }
 0x5e4   :  { %1360 = vadd.xlane.f32.xlu0 %v5493_v21 }
 0x5e8   :  { %1362 = vadd.xlane.f32.xlu0 %v5498_v62 }
 0x5e9   :  { %3634 = vrot.lane.b32.xlu1 %v6185_v45, %s4166_s15  ;;  %v1591_v45 = vsub.f32 %v5214_v55, %v1566_v59  ;;  %v1594_v55 = vsub.f32 %v5247_v2, %v1572_v20  ;;  %v6186_v59 = vld [vmem:[#allocation35_spill] sm:$0xff]  ;;  %v1304_v2 = vsub.f32 %v5279_v38, %v5443_v31 }
 0x5ea   :  { %v999_v3 = vsub.f32 %v6186_v59, %v5341_v42 }
 0x5eb   :  { %v1613_v23 = vmul.f32 1.442695, %v1591_v45  ;;  %v1619_v6 = vmul.f32 1.442695, %v1594_v55  ;;  %v5549_v45 = vpop.eup %3766  ;;  %v1332_v56 = vmul.f32 1.442695, %v1304_v2 }
 0x5ec   :  { %1946 = vadd.xlane.f32.xlu0 %v5505_v26  ;;  %v1023_v44 = vmul.f32 1.442695, %v999_v3  ;;  %6188 = vst [vmem:[#allocation40_spill] sm:$0xff] %v5549_v45  ;;  %v5558_v20 = vpop.eup %3768  ;;  %v6191_v2 = vld [vmem:[#allocation37_spill] sm:$0xff] }
 0x5ed   :  { %3770 = vpow2.f32 %v1613_v23  ;;  %v1307_v23 = vsub.f32 %v5268_v61, %v5435_v18  ;;  %v6189_v61 = vld [vmem:[#allocation38_spill] sm:$0xff] }
 0x5ee   :  { %3772 = vpow2.f32 %v1623_v57  ;;  %v1893_v57 = vsub.f32 %v5195_v60, %v5398_v0  ;;  %v1003_v18 = vsub.f32 %v6189_v61, %v5365_v27  ;;  %v1598_v60 = vsub.f32 %v5275_v50, %v1580_v11  ;;  %v6192_v50 = vld [vmem:[#allocation43_spill] sm:$0xff]  ;;  %v6193_v61 = vld [vmem:[#allocation46_spill] sm:$0xff] }
 0x5ef   :  { %3774 = vpow2.f32 %v1609_v15  ;;  %v1338_v55 = vmul.f32 1.442695, %v1307_v23  ;;  %v1595_v27 = vsub.f32 %v5233_v48, %v5509_v32  ;;  %v1306_v23 = vsub.f32 %v6192_v50, %v5429_v19  ;;  %v6194_v19 = vld [vmem:[#allocation42_spill] sm:$0xff] }
 0x5f0   :  { %1948 = vadd.xlane.f32.xlu0 %v5511_v41  ;;  %3776 = vpow2.f32 %v1619_v6  ;;  %v1924_v54 = vmul.f32 1.442695, %v1893_v57  ;;  %v1031_v0 = vmul.f32 1.442695, %v1003_v18  ;;  %v1627_v36 = vmul.f32 1.442695, %v1598_v60 }
 0x5f1   :  { %3778 = vpow2.f32 %v1023_v44  ;;  %v1621_v48 = vmul.f32 1.442695, %v1595_v27  ;;  %v1600_v18 = vsub.f32 %v6193_v61, %v1584_v49  ;;  %v6196_v27 = vld [vmem:[#allocation45_spill] sm:$0xff] }
 0x5f2   :  { %3780 = vpow2.f32 %v1033_v8  ;;  %v1006_v8 = vsub.f32 %v6191_v2, %v5361_v51  ;;  %v1336_v51 = vmul.f32 1.442695, %v1306_v23  ;;  %v1597_v2 = vsub.f32 %v6196_v27, %v5534_v40  ;;  %v6198_v23 = vld [vmem:[#allocation36_spill] sm:$0xff] }
 0x5f3   :  { %3782 = vpow2.f32 %v1332_v56 }
 0x5f4   :  { %1059 = vadd.xlane.f32.xlu0 %v5515_v7  ;;  %3784 = vpow2.f32 %v1338_v55  ;;  %v1037_v55 = vmul.f32 1.442695, %v1006_v8 }
 0x5f5   :  { %3786 = vpow2.f32 %v1918_v13  ;;  %v1892_v13 = vsub.f32 %v6194_v19, %v5396_v43 }
 0x5f6   :  { %3788 = vpow2.f32 %v1924_v54 }
 0x5f7   :  { %v5562_v31 = vpop.eup %3770  ;;  %3790 = vpow2.f32 %v1031_v0  ;;  %v1631_v0 = vmul.f32 1.442695, %v1600_v18  ;;  %v1922_v49 = vmul.f32 1.442695, %v1892_v13  ;;  %v6201_v18 = vld [vmem:[#allocation44_spill] sm:$0xff] }
 0x5f8   :  { %1061 = vadd.xlane.f32.xlu0 %v5520_v46  ;;  %v5570_v59 = vpop.eup %3772  ;;  %3792 = vpow2.f32 %v1627_v36  ;;  %v1005_v36 = vsub.f32 %v6198_v23, %v5357_v1  ;;  %v1599_v19 = vsub.f32 %v6201_v18, %v5524_v34 }
 0x5f9   :  { %6190 = vst [vmem:[#allocation41_spill] sm:$0xff] %v5570_v59  ;;  %v5574_v15 = vpop.eup %3774  ;;  %3794 = vpow2.f32 %v1621_v48  ;;  %v1625_v48 = vmul.f32 1.442695, %v1597_v2 }
 0x5fa   :  { %v5581_v63 = vpop.eup %3776  ;;  %3796 = vpow2.f32 %v1037_v55  ;;  %v1035_v61 = vmul.f32 1.442695, %v1005_v36  ;;  %v1629_v2 = vmul.f32 1.442695, %v1599_v19 }
 0x5fb   :  { %v5585_v44 = vpop.eup %3778  ;;  %3798 = vpow2.f32 %v1336_v51 }
 0x5fc   :  { %1366 = vadd.xlane.f32.xlu0 %v5527_v29  ;;  %v5593_v32 = vpop.eup %3780 }
 0x5fd   :  { %v5595_v57 = vpop.eup %3782 }
 0x5fe   :  { %v5602_v11 = vpop.eup %3784 }
 0x5ff   :  { %6195 = vst [vmem:[#allocation33_spill] sm:$0xff] %v5602_v11  ;;  %v5606_v60 = vpop.eup %3786 }
 0x600   :  { %1647 = vadd.xlane.f32.xlu0 %v5532_v16  ;;  %v5612_v43 = vpop.eup %3788 }
 0x601   :  { %6197 = vst [vmem:[#allocation34_spill] sm:$0xff] %v5612_v43  ;;  %v5614_v50 = vpop.eup %3790 }
 0x602   :  { %v5620_v55 = vpop.eup %3792 }
 0x603   :  { %v5542_v22 = vpop.xlane.xlu0 %1045  ;;  %6199 = vst [vmem:[#allocation32_spill] sm:$0xff] %v5620_v55 }
 0x604   :  { %1643 = vadd.xlane.f32.xlu0 %v5540_v5 }
 0x607   :  { %v5551_v42 = vpop.xlane.xlu0 %1041 }
 0x608   :  { %1952 = vadd.xlane.f32.xlu0 %v5549_v45 }
 0x60b   :  { %v5560_v38 = vpop.xlane.xlu0 %1053 }
 0x60c   :  { %1649 = vadd.xlane.f32.xlu0 %v5558_v20 }
 0x60d   :  { %1645 = vadd.xlane.f32.xlu1 %v5562_v31 }
 0x60f   :  { %v5572_v3 = vpop.xlane.xlu0 %1049 }
 0x610   :  { %1655 = vadd.xlane.f32.xlu0 %v5570_v59 }
 0x611   :  { %1641 = vadd.xlane.f32.xlu1 %v5574_v15 }
 0x613   :  { %v5583_v6 = vpop.xlane.xlu0 %1930 }
 0x614   :  { %1651 = vadd.xlane.f32.xlu0 %v5581_v63 }
 0x615   :  { %1055 = vadd.xlane.f32.xlu1 %v5585_v44 }
 0x617   :  { %v1927_v56 = vpop.xlane.xlu0 %1926 }
 0x618   :  { %1065 = vadd.xlane.f32.xlu0 %v5593_v32  ;;  %3800 = vrcp.f32 %v1927_v56  ;;  %v5624_v56 = vpop.eup %3794 }
 0x619   :  { %1364 = vadd.xlane.f32.xlu1 %v5595_v57  ;;  %v5628_v51 = vpop.eup %3796 }
 0x61a   :  { %6200 = vst [vmem:[#allocation35_spill] sm:$0xff] %v5628_v51  ;;  %v5632_v1 = vpop.eup %3798 }
 0x61b   :  { %v5604_v54 = vpop.xlane.xlu0 %1932  ;;  %6202 = vst [vmem:[#allocation39_spill] sm:$0xff] %v5632_v1 }
 0x61c   :  { %1370 = vadd.xlane.f32.xlu0 %v5602_v11 }
 0x61d   :  { %1950 = vadd.xlane.f32.xlu1 %v5606_v60 }
 0x61f   :  { %v1929_v8 = vpop.xlane.xlu0 %1928 }
 0x620   :  { %3802 = vrcp.f32 %v1929_v8  ;;  %1956 = vadd.xlane.f32.xlu0 %v5612_v43 }
 0x621   :  { %3804 = vpow2.f32 %v1631_v0  ;;  %1063 = vadd.xlane.f32.xlu1 %v5614_v50  ;;  %v1044_v0 = vpop.xlane.xlu1 %1043 }
 0x622   :  { %3806 = vpow2.f32 %v1922_v49  ;;  %v3801_v13 = vpop.eup %3800 }
 0x623   :  { %v5622_v40 = vpop.xlane.xlu0 %1938  ;;  %3808 = vpow2.f32 %v1625_v48  ;;  %v1974_v23 = vmul.f32 %v3801_v13, %v5352_v53 }
 0x624   :  { %1659 = vadd.xlane.f32.xlu0 %v5620_v55  ;;  %3810 = vpow2.f32 %v1035_v61 }
 0x625   :  { %1653 = vadd.xlane.f32.xlu1 %v5624_v56  ;;  %3812 = vpow2.f32 %v1629_v2  ;;  %v1040_v18 = vpop.xlane.xlu1 %1039 }
 0x626   :  { %3814 = vrcp.f32 %v1040_v18 }
 0x627   :  { %v5635_v49 = vpop.xlane.xlu0 %1934  ;;  %3816 = vrcp.f32 %v5551_v42 }
 0x628   :  { %1069 = vadd.xlane.f32.xlu0 %v5628_v51 }
 0x629   :  { %1368 = vadd.xlane.f32.xlu1 %v5632_v1  ;;  %v1052_v53 = vpop.xlane.xlu1 %1051 }
 0x62a   :  { %v3803_v27 = vpop.eup %3802 }
 0x62b   :  { %v5638_v8 = vpop.eup %3804  ;;  %v1975_v34 = vmul.f32 %v3803_v27, %v5367_v24  ;;  %v5646_v51 = vpop.xlane.xlu0 %1940 }
 0x62c   :  { %6203 = vst [vmem:[#allocation38_spill] sm:$0xff] %v5638_v8  ;;  %v5642_v36 = vpop.eup %3806  ;;  %1663 = vadd.xlane.f32.xlu0 %v5638_v8 }
 0x62d   :  { %6204 = vst [vmem:[#allocation37_spill] sm:$0xff] %v5642_v36  ;;  %1954 = vadd.xlane.f32.xlu1 %v5642_v36  ;;  %v1990_v48 = vpack.c.bf16 %v1975_v34, %v1974_v23  ;;  %v5648_v61 = vpop.eup %3808  ;;  %v1048_v2 = vpop.xlane.xlu1 %1047 }
 0x62e   :  { %6205 = vst [vmem:[#allocation43_spill] sm:$0xff] %v5648_v61  ;;  %v5651_v19 = vpop.eup %3810 }
 0x62f   :  { %2319 = vmatprep.mubr.bf16.mxu0 %v1990_v48  ;;  %6206 = vst [vmem:[#allocation46_spill] sm:$0xff] %v5651_v19  ;;  %v5653_v24 = vpop.xlane.xlu0 %1936  ;;  %v5656_v13 = vpop.eup %3812 }
 0x630   :  { %6207 = vst [vmem:[#allocation42_spill] sm:$0xff] %v5656_v13  ;;  %v3815_v8 = vpop.eup %3814 }
 0x631   :  { %1657 = vadd.xlane.f32.xlu1 %v5648_v61  ;;  %v3817_v43 = vpop.eup %3816 }
 0x632   :  { %v1088_v59 = vmul.f32 %v3817_v43, %v5322_v25 }
 0x635   :  { %1067 = vadd.xlane.f32.xlu1 %v5651_v19 }
 0x639   :  { %1661 = vadd.xlane.f32.xlu1 %v5656_v13  ;;  %v1345_v27 = vpop.xlane.xlu0 %1344 }
 0x63d   :  { %v1341_v23 = vpop.xlane.xlu0 %1340 }
 0x63e   :  { %3818 = vrcp.f32 %v1341_v23 }
 0x63f   :  { %v1347_v34 = vpop.xlane.xlu1 %1346 }
 0x640   :  { %3820 = vrcp.f32 %v1347_v34 }
 0x641   :  { %3822 = vrcp.f32 %v1345_v27 }
 0x643   :  { %v1343_v48 = vpop.xlane.xlu1 %1342 }
 0x644   :  { %3824 = vrcp.f32 %v1343_v48 }
 0x645   :  { %3826 = vrcp.f32 %v5542_v22  ;;  %v1087_v22 = vmul.f32 %v3815_v8, %v5319_v52  ;;  %v6209_v8 = vld [vmem:[#allocation60_spill] sm:$0xff] }
 0x646   :  { %3828 = vrcp.f32 %v1044_v0 }
 0x647   :  { %v1103_v11 = vpack.c.bf16 %v1088_v59, %v1087_v22 }
 0x648   :  { %v3819_v55 = vpop.eup %3818 }
 0x649   :  { %v1353_v19 = vpop.xlane.xlu0 %1352  ;;  %v1388_v27 = vmul.f32 %v3819_v55, %v5408_v17 }
 0x64a   :  { %v3821_v61 = vpop.eup %3820 }
 0x64b   :  { %v1355_v13 = vpop.xlane.xlu1 %1354  ;;  %v3823_v36 = vpop.eup %3822  ;;  %v1391_v34 = vmul.f32 %v3821_v61, %v5412_v28  ;;  %v6210_v61 = vld [vmem:[#allocation61_spill] sm:$0xff] }
 0x64c   :  { %v1390_v48 = vmul.f32 %v3823_v36, %v5404_v58 }
 0x64d   :  { %v1349_v45 = vpop.xlane.xlu0 %1348 }
 0x64e   :  { %v3825_v18 = vpop.eup %3824  ;;  %3830 = vrcp.f32 %v1349_v45  ;;  %v1405_v25 = vpack.c.bf16 %v1391_v34, %v1390_v48  ;;  %v6208_v45 = vld [vmem:[#allocation47_spill] sm:$0xff] }
 0x64f   :  { %v1351_v42 = vpop.xlane.xlu1 %1350  ;;  %v1389_v23 = vmul.f32 %v3825_v18, %v5419_v47  ;;  %v3827_v1 = vpop.eup %3826  ;;  %v6211_v18 = vld [vmem:[#allocation51_spill] sm:$0xff] }
 0x650   :  { %3832 = vrcp.f32 %v1351_v42  ;;  %v3829_v17 = vpop.eup %3828  ;;  %v1090_v28 = vmul.f32 %v3827_v1, %v5315_v12 }
 0x651   :  { %3834 = vrcp.f32 %v5572_v3  ;;  %v1404_v0 = vpack.c.bf16 %v1389_v23, %v1388_v27  ;;  %v1089_v43 = vmul.f32 %v3829_v17, %v6208_v45  ;;  %v6213_v23 = vld [vmem:[#allocation50_spill] sm:$0xff] }
 0x652   :  { %3836 = vrcp.f32 %v1355_v13 }
 0x653   :  { %3838 = vrcp.f32 %v1048_v2  ;;  %2222 = vmatprep.mubr.bf16.mxu1 %v1404_v0  ;;  %v1104_v59 = vpack.c.bf16 %v1090_v28, %v1089_v43  ;;  %v6214_v0 = vld [vmem:[#allocation58_spill] sm:$0xff] }
 0x654   :  { %3840 = vrcp.f32 %v1353_v19  ;;  %2223 = vmatmul.mubr.bf16.vlgmr.msra.gmra.mrb[48].mxu1 %v1103_v11 }
 0x655   :  { %v1357_v47 = vpop.xlane.xlu0 %1356  ;;  %2230 = vmatprep.mubr.bf16.mxu1 %v1405_v25  ;;  %3842 = vrcp.f32 %v5560_v38  ;;  %v6212_v38 = vld [vmem:[#allocation59_spill] sm:$0xff] }
 0x658   :  { %v3831_v52 = vpop.eup %3830 }
 0x659   :  { %v1359_v3 = vpop.xlane.xlu0 %1358  ;;  %v1392_v36 = vmul.f32 %v3831_v52, %v6209_v8  ;;  %v6216_v8 = vld [vmem:[#allocation48_spill] sm:$0xff] }
 0x65a   :  { %v3833_v58 = vpop.eup %3832  ;;  %3844 = vrcp.f32 %v1359_v3 }
 0x65b   :  { %v3835_v55 = vpop.eup %3834  ;;  %3846 = vrcp.f32 %v1052_v53  ;;  %v1393_v11 = vmul.f32 %v3833_v58, %v6210_v61  ;;  %v6215_v58 = vld [vmem:[#allocation49_spill] sm:$0xff] }
 0x65c   :  { %v3837_v19 = vpop.eup %3836  ;;  %3848 = vrcp.f32 %v1357_v47  ;;  %2231 = vmatmul.mubr.bf16.gmra.mrb[52].mxu1 %v1104_v59  ;;  %v1092_v42 = vmul.f32 %v3835_v55, %v6211_v18 }
 0x65d   :  { %v3839_v13 = vpop.eup %3838  ;;  %v1943_v12 = vpop.xlane.xlu0 %1942  ;;  %v1406_v1 = vpack.c.bf16 %v1393_v11, %v1392_v36  ;;  %v1395_v27 = vmul.f32 %v3837_v19, %v6212_v38 }
 0x65e   :  { %v3841_v2 = vpop.eup %3840  ;;  %v1091_v34 = vmul.f32 %v3839_v13, %v6213_v23  ;;  %3850 = vrcp.f32 %v1943_v12 }
 0x65f   :  { %2238 = vmatprep.mubr.bf16.mxu1 %v1406_v1  ;;  %v1394_v48 = vmul.f32 %v3841_v2, %v6214_v0  ;;  %v3843_v17 = vpop.eup %3842 }
 0x660   :  { %v1105_v25 = vpack.c.bf16 %v1092_v42, %v1091_v34  ;;  %v1094_v59 = vmul.f32 %v3843_v17, %v6215_v58 }
 0x661   :  { %v1638_v53 = vpop.xlane.xlu1 %1637  ;;  %v1945_v22 = vpop.xlane.xlu0 %1944  ;;  %v1407_v47 = vpack.c.bf16 %v1395_v27, %v1394_v48  ;;  %v6217_v48 = vld [vmem:[#allocation53_spill] sm:$0xff] }
 0x662   :  { %3852 = vrcp.f32 %v1945_v22 }
 0x663   :  { %3854 = vrcp.f32 %v5604_v54 }
 0x664   :  { %v3845_v28 = vpop.eup %3844  ;;  %2239 = vmatmul.mubr.bf16.gmra.mrb[56].mxu1 %v1105_v25 }
 0x665   :  { %v3847_v52 = vpop.eup %3846  ;;  %v1634_v45 = vpop.xlane.xlu1 %1633  ;;  %2246 = vmatprep.mubr.bf16.mxu1 %v1407_v47  ;;  %v1397_v55 = vmul.f32 %v3845_v28, %v5456_v33  ;;  %v6218_v47 = vld [vmem:[#allocation52_spill] sm:$0xff] }
 0x666   :  { %v1640_v43 = vpop.xlane.xlu0 %1639  ;;  %v3849_v3 = vpop.eup %3848  ;;  %3856 = vrcp.f32 %v1634_v45  ;;  %v1093_v36 = vmul.f32 %v3847_v52, %v6216_v8  ;;  %v6220_v8 = vld [vmem:[#allocation55_spill] sm:$0xff] }
 0x667   :  { %3858 = vrcp.f32 %v5583_v6  ;;  %v1396_v19 = vmul.f32 %v3849_v3, %v5451_v9 }
 0x668   :  { %v1106_v1 = vpack.c.bf16 %v1094_v59, %v1093_v36  ;;  %v3851_v2 = vpop.eup %3850  ;;  %v6219_v59 = vld [vmem:[#allocation57_spill] sm:$0xff] }
 0x669   :  { %v3635_v61 = vpop.permute.xlu1 %3634  ;;  %v1408_v18 = vpack.c.bf16 %v1397_v55, %v1396_v19  ;;  %v5684_v33 = vmul.f32 %v3851_v2, %v5462_v39 }
 0x66a   :  { %v1636_v11 = vpop.xlane.xlu0 %1635  ;;  %v3637_v13 = vunpack.i.h.bf16 %v3635_v61  ;;  %v3636_v12 = vunpack.i.l.bf16 %v3635_v61 }
 0x66b   :  { %3860 = vrcp.f32 %v1636_v11 }
 0x66c   :  { %v2181_v42 = vpack.c.bf16 %v3637_v13, %v3636_v12  ;;  %2247 = vmatmul.mubr.bf16.gmra.mrb[60].mxu1 %v1106_v1  ;;  %v3853_v54 = vpop.eup %3852  ;;  %3862 = vrcp.f32 %v1640_v43 }
 0x66d   :  { %2254 = vmatprep.mubr.bf16.mxu1 %v1408_v18  ;;  %v5687_v6 = vmul.f32 %v3853_v54, %v5467_v37  ;;  %3864 = vrcp.f32 %v5653_v24  ;;  %v3855_v27 = vpop.eup %3854 }
 0x66e   :  { %v1058_v38 = vpop.xlane.xlu0 %1057  ;;  %3264 = vmatpush3.bf16.msra.mxu0 %v2181_v42  ;;  %3866 = vrcp.f32 %v1638_v53  ;;  %v1977_v25 = vmul.f32 %v3855_v27, %v6217_v48 }
 0x66f   :  { %v1994_v9 = vpack.c.bf16 %v5687_v6, %v5684_v33  ;;  %3868 = vrcp.f32 %v5635_v49 }
 0x670   :  { %v3857_v34 = vpop.eup %3856  ;;  %3870 = vrcp.f32 %v5622_v40 }
 0x671   :  { %v3859_v22 = vpop.eup %3858  ;;  %v1681_v39 = vmul.f32 %v3857_v34, %v5477_v10  ;;  %3872 = vrcp.f32 %v5646_v51 }
 0x672   :  { %v1361_v23 = vpop.xlane.xlu0 %1360  ;;  %v1976_v24 = vmul.f32 %v3859_v22, %v6218_v47 }
 0x674   :  { %v1991_v52 = vpack.c.bf16 %v1977_v25, %v1976_v24 }
 0x675   :  { %v3861_v0 = vpop.eup %3860 }
 0x676   :  { %v1682_v37 = vmul.f32 %v3861_v0, %v5483_v30  ;;  %v1363_v17 = vpop.xlane.xlu0 %1362  ;;  %v3863_v28 = vpop.eup %3862 }
 0x677   :  { %v3865_v45 = vpop.eup %3864  ;;  %v1684_v58 = vmul.f32 %v3863_v28, %v5475_v14 }
 0x678   :  { %v1697_v53 = vpack.c.bf16 %v1682_v37, %v1681_v39  ;;  %v3867_v49 = vpop.eup %3866  ;;  %v1979_v55 = vmul.f32 %v3865_v45, %v6219_v59 }
 0x679   :  { %v3869_v3 = vpop.eup %3868  ;;  %v1683_v30 = vmul.f32 %v3867_v49, %v5469_v4 }
 0x67a   :  { %v5697_v43 = vpop.xlane.xlu0 %1946  ;;  %2320 = vmatmul.mubr.bf16.vlgmr.msra.gmra.mrb[48].mxu0 %v1697_v53  ;;  %v1978_v36 = vmul.f32 %v3869_v3, %v6220_v8  ;;  %v3871_v22 = vpop.eup %3870 }
 0x67b   :  { %2327 = vmatprep.mubr.bf16.mxu0 %v1991_v52  ;;  %v1698_v61 = vpack.c.bf16 %v1684_v58, %v1683_v30  ;;  %v3873_v48 = vpop.eup %3872  ;;  %v6222_v52 = vld [vmem:[#allocation54_spill] sm:$0xff] }
 0x67c   :  { %v1992_v11 = vpack.c.bf16 %v1979_v55, %v1978_v36  ;;  %v1980_v45 = vmul.f32 %v3871_v22, %v6222_v52  ;;  %v6224_v52 = vld [vmem:[#allocation33_spill] sm:$0xff] }
 0x67e   :  { %v1949_v10 = vpop.xlane.xlu0 %1948 }
 0x682   :  { %v1060_v19 = vpop.xlane.xlu0 %1059  ;;  %2328 = vmatmul.mubr.bf16.gmra.mrb[52].mxu0 %v1698_v61 }
 0x683   :  { %2335 = vmatprep.mubr.bf16.mxu0 %v1992_v11 }
 0x686   :  { %v1062_v13 = vpop.xlane.xlu0 %1061 }
 0x68a   :  { %v1367_v12 = vpop.xlane.xlu0 %1366 }
 0x68e   :  { %v1648_v1 = vpop.xlane.xlu0 %1647 }
 0x692   :  { %v1644_v2 = vpop.xlane.xlu0 %1643 }
 0x693   :  { %3874 = vrcp.f32 %v1644_v2 }
 0x694   :  { %3876 = vrcp.f32 %v1058_v38  ;;  %v6221_v38 = vld [vmem:[#allocation56_spill] sm:$0xff] }
 0x695   :  { %v1981_v37 = vmul.f32 %v3873_v48, %v6221_v38 }
 0x696   :  { %v5703_v18 = vpop.xlane.xlu0 %1952 }
 0x697   :  { %v1993_v59 = vpack.c.bf16 %v1981_v37, %v1980_v45 }
 0x69a   :  { %v1650_v42 = vpop.xlane.xlu0 %1649  ;;  %v1646_v14 = vpop.xlane.xlu1 %1645 }
 0x69d   :  { %v3875_v39 = vpop.eup %3874 }
 0x69e   :  { %v1656_v4 = vpop.xlane.xlu0 %1655  ;;  %v1642_v54 = vpop.xlane.xlu1 %1641  ;;  %v1686_v53 = vmul.f32 %v3875_v39, %v5540_v5 }
 0x69f   :  { %3878 = vrcp.f32 %v1642_v54  ;;  %v3877_v40 = vpop.eup %3876 }
 0x6a0   :  { %3880 = vrcp.f32 %v1363_v17  ;;  %v1096_v5 = vmul.f32 %v3877_v40, %v5488_v35 }
 0x6a1   :  { %3882 = vrcp.f32 %v1361_v23 }
 0x6a2   :  { %v1652_v27 = vpop.xlane.xlu0 %1651  ;;  %3884 = vrcp.f32 %v1646_v14  ;;  %v1056_v34 = vpop.xlane.xlu1 %1055 }
 0x6a3   :  { %3886 = vrcp.f32 %v1056_v34 }
 0x6a4   :  { %3888 = vrcp.f32 %v1648_v1 }
 0x6a5   :  { %3890 = vrcp.f32 %v1062_v13 }
 0x6a6   :  { %v1066_v0 = vpop.xlane.xlu0 %1065  ;;  %v1365_v25 = vpop.xlane.xlu1 %1364 }
 0x6a7   :  { %3892 = vrcp.f32 %v1365_v25 }
 0x6a8   :  { %3894 = vrcp.f32 %v1060_v19 }
 0x6a9   :  { %v3879_v51 = vpop.eup %3878  ;;  %3896 = vrcp.f32 %v1367_v12 }
 0x6aa   :  { %v3881_v47 = vpop.eup %3880  ;;  %v1371_v23 = vpop.xlane.xlu0 %1370  ;;  %v1685_v24 = vmul.f32 %v3879_v51, %v5574_v15  ;;  %3898 = vrcp.f32 %v1652_v27 }
 0x6ab   :  { %v1951_v17 = vpop.xlane.xlu1 %1950  ;;  %v3883_v28 = vpop.eup %3882  ;;  %3900 = vrcp.f32 %v1949_v10  ;;  %v1399_v55 = vmul.f32 %v3881_v47, %v5498_v62 }
 0x6ac   :  { %v3885_v49 = vpop.eup %3884  ;;  %v1699_v3 = vpack.c.bf16 %v1686_v53, %v1685_v24  ;;  %3902 = vrcp.f32 %v1650_v42  ;;  %v1398_v36 = vmul.f32 %v3883_v28, %v5493_v21  ;;  %v6223_v53 = vld [vmem:[#allocation39_spill] sm:$0xff] }
 0x6ad   :  { %v3887_v58 = vpop.eup %3886  ;;  %3904 = vrcp.f32 %v5697_v43  ;;  %v1687_v11 = vmul.f32 %v3885_v49, %v5562_v31  ;;  %v6225_v49 = vld [vmem:[#allocation41_spill] sm:$0xff] }
 0x6ae   :  { %2336 = vmatmul.mubr.bf16.gmra.mrb[56].mxu0 %v1699_v3  ;;  %v1095_v15 = vmul.f32 %v3887_v58, %v5585_v44  ;;  %v3889_v8 = vpop.eup %3888  ;;  %v1957_v10 = vpop.xlane.xlu0 %1956  ;;  %v1409_v62 = vpack.c.bf16 %v1399_v55, %v1398_v36  ;;  %v6226_v3 = vld [vmem:[#allocation40_spill] sm:$0xff]  ;;  %v6227_v36 = vld [vmem:[#allocation37_spill] sm:$0xff] }
 0x6af   :  { %v1064_v30 = vpop.xlane.xlu1 %1063  ;;  %2343 = vmatprep.mubr.bf16.mxu0 %v1993_v59  ;;  %v3891_v19 = vpop.eup %3890  ;;  %v1688_v44 = vmul.f32 %v3889_v8, %v5532_v16 }
 0x6b0   :  { %3906 = vrcp.f32 %v1064_v30  ;;  %v1107_v61 = vpack.c.bf16 %v1096_v5, %v1095_v15  ;;  %v1098_v21 = vmul.f32 %v3891_v19, %v5520_v46  ;;  %v6229_v19 = vld [vmem:[#allocation32_spill] sm:$0xff] }
 0x6b1   :  { %3908 = vrcp.f32 %v1066_v0  ;;  %v3893_v13 = vpop.eup %3892  ;;  %v1700_v1 = vpack.c.bf16 %v1688_v44, %v1687_v11 }
 0x6b2   :  { %3910 = vrcp.f32 %v1656_v4  ;;  %2255 = vmatmul.mubr.bf16.gmra.mrb[64].mxu1 %v1107_v61  ;;  %v3895_v12 = vpop.eup %3894  ;;  %v1400_v31 = vmul.f32 %v3893_v13, %v5595_v57  ;;  %v1660_v14 = vpop.xlane.xlu0 %1659  ;;  %v6228_v61 = vld [vmem:[#allocation43_spill] sm:$0xff] }
 0x6b3   :  { %v1654_v43 = vpop.xlane.xlu1 %1653  ;;  %2262 = vmatprep.mubr.bf16.mxu1 %v1409_v62  ;;  %v3897_v35 = vpop.eup %3896  ;;  %v1097_v16 = vmul.f32 %v3895_v12, %v5515_v7 }
 0x6b4   :  { %3912 = vrcp.f32 %v1654_v43  ;;  %v3899_v2 = vpop.eup %3898  ;;  %v1401_v46 = vmul.f32 %v3897_v35, %v5527_v29  ;;  %v6230_v43 = vld [vmem:[#allocation34_spill] sm:$0xff] }
 0x6b5   :  { %3914 = vrcp.f32 %v1951_v17  ;;  %v3901_v42 = vpop.eup %3900  ;;  %v1108_v34 = vpack.c.bf16 %v1098_v21, %v1097_v16  ;;  %v1690_v57 = vmul.f32 %v3899_v2, %v5581_v63  ;;  %v6231_v21 = vld [vmem:[#allocation46_spill] sm:$0xff] }
 0x6b6   :  { %3916 = vrcp.f32 %v1371_v23  ;;  %2344 = vmatmul.mubr.bf16.gmra.mrb[60].mxu0 %v1700_v1  ;;  %v3903_v54 = vpop.eup %3902  ;;  %v1410_v0 = vpack.c.bf16 %v1401_v46, %v1400_v31  ;;  %v1070_v6 = vpop.xlane.xlu0 %1069  ;;  %v6232_v31 = vld [vmem:[#allocation35_spill] sm:$0xff] }
 0x6b7   :  { %3918 = vrcp.f32 %v5703_v18  ;;  %v1369_v4 = vpop.xlane.xlu1 %1368  ;;  %2351 = vmatprep.mubr.bf16.mxu0 %v1994_v9  ;;  %v3905_v27 = vpop.eup %3904  ;;  %v1985_v18 = vmul.f32 %v3901_v42, %v5511_v41  ;;  %v1689_v7 = vmul.f32 %v3903_v54, %v5558_v20  ;;  %v6233_v54 = vld [vmem:[#allocation42_spill] sm:$0xff] }
 0x6b8   :  { %3920 = vrcp.f32 %v1369_v4  ;;  %v1984_v39 = vmul.f32 %v3905_v27, %v5505_v26  ;;  %v6234_v27 = vld [vmem:[#allocation38_spill] sm:$0xff] }
 0x6b9   :  { %v1701_v29 = vpack.c.bf16 %v1690_v57, %v1689_v7 }
 0x6ba   :  { %v3907_v22 = vpop.eup %3906  ;;  %2263 = vmatmul.mubr.bf16.gmra.mrb[68].mxu1 %v1108_v34  ;;  %v1995_v63 = vpack.c.bf16 %v1985_v18, %v1984_v39  ;;  %v1664_v17 = vpop.xlane.xlu0 %1663 }
 0x6bb   :  { %v1955_v48 = vpop.xlane.xlu1 %1954  ;;  %v3909_v25 = vpop.eup %3908  ;;  %2270 = vmatprep.mubr.bf16.mxu1 %v1410_v0  ;;  %v1099_v9 = vmul.f32 %v3907_v22, %v5614_v50 }
 0x6bc   :  { %v3911_v33 = vpop.eup %3910  ;;  %3922 = vrcp.f32 %v1955_v48  ;;  %v1100_v38 = vmul.f32 %v3909_v25, %v5593_v32 }
 0x6bd   :  { %3924 = vrcp.f32 %v1660_v14  ;;  %v1692_v32 = vmul.f32 %v3911_v33, %v6225_v49 }
 0x6be   :  { %v3913_v40 = vpop.eup %3912  ;;  %3926 = vrcp.f32 %v1957_v10  ;;  %2352 = vmatmul.mubr.bf16.gmra.mrb[64].mxu0 %v1701_v29  ;;  %v1109_v26 = vpack.c.bf16 %v1100_v38, %v1099_v9 }
 0x6bf   :  { %v3915_v51 = vpop.eup %3914  ;;  %v1658_v41 = vpop.xlane.xlu1 %1657  ;;  %2359 = vmatprep.mubr.bf16.mxu0 %v1995_v63  ;;  %v1691_v47 = vmul.f32 %v3913_v40, %v5624_v56 }
 0x6c0   :  { %v3917_v20 = vpop.eup %3916  ;;  %3928 = vrcp.f32 %v1658_v41  ;;  %v1986_v50 = vmul.f32 %v3915_v51, %v5606_v60 }
 0x6c1   :  { %v3919_v37 = vpop.eup %3918  ;;  %3930 = vrcp.f32 %v1070_v6  ;;  %v1403_v45 = vmul.f32 %v3917_v20, %v6224_v52  ;;  %v1702_v55 = vpack.c.bf16 %v1692_v32, %v1691_v47 }
 0x6c2   :  { %v3921_v23 = vpop.eup %3920  ;;  %2271 = vmatmul.mubr.bf16.gmra.mrb[72].mxu1 %v1109_v26  ;;  %v1987_v58 = vmul.f32 %v3919_v37, %v6226_v3 }
 0x6c3   :  { %v1068_v24 = vpop.xlane.xlu1 %1067  ;;  %v1402_v28 = vmul.f32 %v3921_v23, %v6223_v53 }
 0x6c4   :  { %3932 = vrcp.f32 %v1068_v24  ;;  %v1996_v56 = vpack.c.bf16 %v1987_v58, %v1986_v50  ;;  %v5750_v58 = vld [vmem:[#allocation13 + $0x6] ss:$0 sm:$0xff] }
 0x6c5   :  { %v1411_v59 = vpack.c.bf16 %v1403_v45, %v1402_v28  ;;  %3934 = vrcp.f32 %v1664_v17 }
 0x6c6   :  { %v3923_v30 = vpop.eup %3922  ;;  %2360 = vmatmul.mubr.bf16.gmra.mrb[68].mxu0 %v1702_v55 }
 0x6c7   :  { %v1662_v15 = vpop.xlane.xlu1 %1661  ;;  %2278 = vmatprep.mubr.bf16.mxu1 %v1411_v59  ;;  %v3925_v60 = vpop.eup %3924  ;;  %2367 = vmatprep.mubr.bf16.mxu0 %v1996_v56  ;;  %v1988_v10 = vmul.f32 %v3923_v30, %v6227_v36  ;;  %v3970_v59 = vld [vmem:[#allocation2] sm:$0xff]  ;;  %v3971_v30 = vld [vmem:[#allocation2 + $0x10] sm:$0xff] }
 0x6c8   :  { %3936 = vrcp.f32 %v1662_v15  ;;  %v3927_v5 = vpop.eup %3926  ;;  %v1694_v62 = vmul.f32 %v3925_v60, %v6229_v19 }
 0x6c9   :  { %v1989_v44 = vmul.f32 %v3927_v5, %v6230_v43 }
 0x6ca   :  { %v3929_v8 = vpop.eup %3928 }
 0x6cb   :  { %v1693_v11 = vmul.f32 %v3929_v8, %v6228_v61  ;;  %v3931_v13 = vpop.eup %3930  ;;  %v1997_v1 = vpack.c.bf16 %v1989_v44, %v1988_v10  ;;  %v6235_v44 = vld [vmem:[#allocation21_spill] sm:$0xff] }
 0x6cc   :  { %v1102_v42 = vmul.f32 %v3931_v13, %v6232_v31 }
 0x6cd   :  { %v1703_v12 = vpack.c.bf16 %v1694_v62, %v1693_v11 }
 0x6ce   :  { %v3933_v35 = vpop.eup %3932 }
 0x6cf   :  { %2368 = vmatmul.mubr.bf16.gmra.mrb[72].mxu0 %v1703_v12  ;;  %v1101_v2 = vmul.f32 %v3933_v35, %v6231_v21  ;;  %v3935_v14 = vpop.eup %3934 }
 0x6d0   :  { %2375 = vmatprep.mubr.bf16.mxu0 %v1997_v1  ;;  %v1696_v34 = vmul.f32 %v3935_v14, %v6234_v27  ;;  %v6236_v1 = vld [vmem:[#allocation22_spill] sm:$0xff] }
 0x6d1   :  { %v1110_v4 = vpack.c.bf16 %v1102_v42, %v1101_v2 }
 0x6d2   :  { %v3937_v16 = vpop.eup %3936 }
 0x6d3   :  { %2279 = vmatmul.mubr.bf16.gmra.mrb[76].mxu1 %v1110_v4  ;;  %v1695_v46 = vmul.f32 %v3937_v16, %v6233_v54 }
 0x6d5   :  { %v1704_v57 = vpack.c.bf16 %v1696_v34, %v1695_v46 }
 0x6d7   :  { %2376 = vmatmul.mubr.bf16.gmra.mrb[76].mxu0 %v1704_v57 }
 0x727   :  { %v3201_v22 = vpop.f32.mrb[48].mxu1 }
 0x728   :  { %v3202_v0 = vpop.f32.mrb[49].mxu1 }
 0x729   :  { %v3203_v18 = vadd.f32 %v3202_v0, %v3201_v22  ;;  %v3204_v48 = vpop.f32.mrb[50].mxu1 }
 0x72a   :  { %v3205_v7 = vpop.f32.mrb[51].mxu1 }
 0x72b   :  { %v3206_v25 = vadd.f32 %v3205_v7, %v3204_v48 }
 0x72f   :  { %v3207_v39 = vpop.f32.mrb[52].mxu1 }
 0x730   :  { %v3208_v33 = vpop.f32.mrb[53].mxu1 }
 0x731   :  { %v3209_v6 = vadd.f32 %v3208_v33, %v3207_v39  ;;  %v3210_v29 = vpop.f32.mrb[54].mxu1 }
 0x732   :  { %v3211_v9 = vpop.f32.mrb[55].mxu1 }
 0x733   :  { %v3212_v40 = vadd.f32 %v3211_v9, %v3210_v29 }
 0x737   :  { %v3213_v63 = vpop.f32.mrb[56].mxu1 }
 0x738   :  { %v3214_v51 = vpop.f32.mrb[57].mxu1 }
 0x739   :  { %v3215_v41 = vadd.f32 %v3214_v51, %v3213_v63  ;;  %v3216_v38 = vpop.f32.mrb[58].mxu1 }
 0x73a   :  { %v3217_v20 = vpop.f32.mrb[59].mxu1 }
 0x73b   :  { %v3218_v37 = vadd.f32 %v3217_v20, %v3216_v38 }
 0x73f   :  { %v3219_v26 = vpop.f32.mrb[60].mxu1 }
 0x740   :  { %v3220_v47 = vpop.f32.mrb[61].mxu1 }
 0x741   :  { %v5746_v23 = vadd.f32 %v3220_v47, %v3219_v26  ;;  %v3222_v50 = vpop.f32.mrb[62].mxu1 }
 0x742   :  { %v3223_v17 = vpop.f32.mrb[63].mxu1 }
 0x743   :  { %v5748_v24 = vadd.f32 %v3223_v17, %v3222_v50 }
 0x74d   :  { %v3265_v53 = vpop.f32.mrb[48].mxu0 }
 0x74e   :  { %v3266_v28 = vpop.f32.mrb[49].mxu0 }
 0x74f   :  { %v3267_v52 = vadd.f32 %v3266_v28, %v3265_v53  ;;  %v3268_v45 = vpop.f32.mrb[50].mxu0 }
 0x750   :  { %v3269_v49 = vpop.f32.mrb[51].mxu0 }
 0x751   :  { %v2322_v32 = vadd.f32 %v3267_v52, %v3203_v18  ;;  %v3270_v3 = vadd.f32 %v3269_v49, %v3268_v45  ;;  %v6237_v18 = vld [vmem:[#allocation20_spill] sm:$0xff] }
 0x752   :  { %v6239_v52 = vld [vmem:[#allocation24_spill] sm:$0xff] }
 0x753   :  { %v2384_v55 = vadd.f32 %v3970_v59, %v2322_v32  ;;  %v2325_v56 = vadd.f32 %v3270_v3, %v3206_v25 }
 0x755   :  { %v2385_v15 = vadd.f32 %v3971_v30, %v2325_v56  ;;  %v3271_v60 = vpop.f32.mrb[52].mxu0  ;;  %v5753_v5 = vadd.f32 %v2384_v55, %v5750_v58  ;;  %v6240_v55 = vld [vmem:[#allocation25_spill] sm:$0xff] }
 0x756   :  { %v3272_v8 = vpop.f32.mrb[53].mxu0 }
 0x757   :  { %v3273_v36 = vadd.f32 %v3272_v8, %v3271_v60  ;;  %v3274_v10 = vpop.f32.mrb[54].mxu0  ;;  %v2416_v61 = vsel %vm171_vm0, %v5753_v5, 0.0  ;;  %v5758_v11 = vadd.f32 %v2385_v15, %v5750_v58 }
 0x758   :  { %v3275_v19 = vpop.f32.mrb[55].mxu0  ;;  %2417 = vadd.xlane.f32.xlu1 %v2416_v61 }
 0x759   :  { %v2330_v62 = vadd.f32 %v3273_v36, %v3209_v6  ;;  %v3276_v13 = vadd.f32 %v3275_v19, %v3274_v10  ;;  %v2419_v43 = vsel %vm171_vm0, %v5758_v11, 0.0  ;;  %v6238_v6 = vld [vmem:[#allocation23_spill] sm:$0xff] }
 0x75a   :  { %2420 = vadd.xlane.f32.xlu0 %v2419_v43 }
 0x75b   :  { %v2386_v12 = vadd.f32 %v2330_v62, %v6235_v44  ;;  %v2333_v35 = vadd.f32 %v3276_v13, %v3212_v40 }
 0x75d   :  { %v2387_v21 = vadd.f32 %v2333_v35, %v6236_v1  ;;  %v5765_v2 = vadd.f32 %v2386_v12, %v5750_v58  ;;  %v3972_v12 = vld [vmem:[#allocation2 + $0x8] sm:$0xff] }
 0x75f   :  { %v2422_v31 = vsel %vm171_vm0, %v5765_v2, 0.0  ;;  %v5770_v42 = vadd.f32 %v2387_v21, %v5750_v58 }
 0x760   :  { %2423 = vadd.xlane.f32.xlu1 %v2422_v31 }
 0x761   :  { %v2425_v14 = vsel %vm171_vm0, %v5770_v42, 0.0 }
 0x762   :  { %2426 = vadd.xlane.f32.xlu0 %v2425_v14 }
 0x781   :  { %v3277_v4 = vpop.f32.mrb[56].mxu0 }
 0x782   :  { %v3278_v16 = vpop.f32.mrb[57].mxu0 }
 0x783   :  { %v3279_v54 = vadd.f32 %v3278_v16, %v3277_v4  ;;  %v3280_v46 = vpop.f32.mrb[58].mxu0  ;;  %v3973_v4 = vld [vmem:[#allocation2 + $0x18] sm:$0xff] }
 0x784   :  { %v3281_v27 = vpop.f32.mrb[59].mxu0 }
 0x785   :  { %v2338_v34 = vadd.f32 %v3279_v54, %v3215_v41  ;;  %v3282_v57 = vadd.f32 %v3281_v27, %v3280_v46  ;;  %v3225_v22 = vpop.f32.mrb[64].mxu1 }
 0x786   :  { %v3226_v0 = vpop.f32.mrb[65].mxu1 }
 0x787   :  { %v2388_v48 = vadd.f32 %v2338_v34, %v6237_v18  ;;  %v2341_v7 = vadd.f32 %v3282_v57, %v3218_v37  ;;  %v3227_v25 = vadd.f32 %v3226_v0, %v3225_v22  ;;  %v3228_v39 = vpop.f32.mrb[66].mxu1 }
 0x788   :  { %v3229_v33 = vpop.f32.mrb[67].mxu1 }
 0x789   :  { %v2389_v29 = vadd.f32 %v2341_v7, %v6238_v6  ;;  %v3230_v9 = vadd.f32 %v3229_v33, %v3228_v39  ;;  %v3283_v40 = vpop.f32.mrb[60].mxu0  ;;  %v5777_v63 = vadd.f32 %v2388_v48, %v5750_v58  ;;  %v6241_v33 = vld [vmem:[#allocation26_spill] sm:$0xff] }
 0x78a   :  { %v3284_v51 = vpop.f32.mrb[61].mxu0 }
 0x78b   :  { %v3285_v38 = vadd.f32 %v3284_v51, %v3283_v40  ;;  %v3286_v20 = vpop.f32.mrb[62].mxu0  ;;  %v2428_v41 = vsel %vm171_vm0, %v5777_v63, 0.0  ;;  %v5782_v26 = vadd.f32 %v2389_v29, %v5750_v58 }
 0x78c   :  { %v3287_v37 = vpop.f32.mrb[63].mxu0  ;;  %2429 = vadd.xlane.f32.xlu1 %v2428_v41 }
 0x78d   :  { %v2346_v47 = vadd.f32 %v3285_v38, %v5746_v23  ;;  %v3288_v50 = vadd.f32 %v3287_v37, %v3286_v20  ;;  %v3231_v17 = vpop.f32.mrb[68].mxu1  ;;  %v2431_v53 = vsel %vm171_vm0, %v5782_v26, 0.0 }
 0x78e   :  { %v3232_v28 = vpop.f32.mrb[69].mxu1  ;;  %2432 = vadd.xlane.f32.xlu0 %v2431_v53 }
 0x78f   :  { %v2390_v45 = vadd.f32 %v2346_v47, %v6239_v52  ;;  %v2349_v49 = vadd.f32 %v3288_v50, %v5748_v24  ;;  %v3233_v32 = vadd.f32 %v3232_v28, %v3231_v17  ;;  %v3234_v3 = vpop.f32.mrb[70].mxu1 }
 0x790   :  { %v3235_v59 = vpop.f32.mrb[71].mxu1 }
 0x791   :  { %v2391_v56 = vadd.f32 %v2349_v49, %v6240_v55  ;;  %v3236_v30 = vadd.f32 %v3235_v59, %v3234_v3  ;;  %v3289_v15 = vpop.f32.mrb[64].mxu0  ;;  %v5791_v23 = vadd.f32 %v2390_v45, %v5750_v58 }
 0x792   :  { %v3290_v60 = vpop.f32.mrb[65].mxu0 }
 0x793   :  { %v3291_v8 = vadd.f32 %v3290_v60, %v3289_v15  ;;  %v3292_v36 = vpop.f32.mrb[66].mxu0  ;;  %v2434_v10 = vsel %vm171_vm0, %v5791_v23, 0.0  ;;  %v5796_v61 = vadd.f32 %v2391_v56, %v5750_v58  ;;  %v6244_v15 = vld [vmem:[#allocation29_spill] sm:$0xff] }
 0x794   :  { %v3293_v24 = vpop.f32.mrb[67].mxu0  ;;  %2435 = vadd.xlane.f32.xlu1 %v2434_v10 }
 0x795   :  { %v2354_v19 = vadd.f32 %v3291_v8, %v3227_v25  ;;  %v3294_v62 = vadd.f32 %v3293_v24, %v3292_v36  ;;  %v3237_v13 = vpop.f32.mrb[72].mxu1  ;;  %v2437_v43 = vsel %vm171_vm0, %v5796_v61, 0.0 }
 0x796   :  { %v3238_v44 = vpop.f32.mrb[73].mxu1  ;;  %2438 = vadd.xlane.f32.xlu0 %v2437_v43 }
 0x797   :  { %v2392_v35 = vadd.f32 %v3972_v12, %v2354_v19  ;;  %v2357_v1 = vadd.f32 %v3294_v62, %v3230_v9  ;;  %v3239_v21 = vadd.f32 %v3238_v44, %v3237_v13  ;;  %v3240_v31 = vpop.f32.mrb[74].mxu1  ;;  %v6242_v9 = vld [vmem:[#allocation27_spill] sm:$0xff] }
 0x798   :  { %v3241_v14 = vpop.f32.mrb[75].mxu1 }
 0x799   :  { %v2393_v16 = vadd.f32 %v3973_v4, %v2357_v1  ;;  %v3242_v54 = vadd.f32 %v3241_v14, %v3240_v31  ;;  %v3295_v46 = vpop.f32.mrb[68].mxu0  ;;  %v5801_v27 = vadd.f32 %v2392_v35, %v5750_v58  ;;  %v6246_v4 = vld [vmem:[#allocation31_spill] sm:$0xff] }
 0x79a   :  { %v3296_v34 = vpop.f32.mrb[69].mxu0 }
 0x79b   :  { %v3297_v57 = vadd.f32 %v3296_v34, %v3295_v46  ;;  %v3298_v22 = vpop.f32.mrb[70].mxu0  ;;  %v2440_v0 = vsel %vm171_vm0, %v5801_v27, 0.0  ;;  %v5806_v18 = vadd.f32 %v2393_v16, %v5750_v58 }
 0x79c   :  { %v3299_v48 = vpop.f32.mrb[71].mxu0  ;;  %2441 = vadd.xlane.f32.xlu1 %v2440_v0 }
 0x79d   :  { %v2362_v7 = vadd.f32 %v3297_v57, %v3233_v32  ;;  %v3300_v25 = vadd.f32 %v3299_v48, %v3298_v22  ;;  %v2443_v39 = vsel %vm171_vm0, %v5806_v18, 0.0  ;;  %v6243_v32 = vld [vmem:[#allocation28_spill] sm:$0xff] }
 0x79e   :  { %2444 = vadd.xlane.f32.xlu0 %v2443_v39 }
 0x79f   :  { %v2394_v6 = vadd.f32 %v2362_v7, %v6241_v33  ;;  %v2365_v29 = vadd.f32 %v3300_v25, %v3236_v30 }
 0x7a1   :  { %v2395_v40 = vadd.f32 %v2365_v29, %v6242_v9  ;;  %v5813_v38 = vadd.f32 %v2394_v6, %v5750_v58 }
 0x7a2   :  { %v3301_v51 = vpop.f32.mrb[72].mxu0 }
 0x7a3   :  { %v3302_v20 = vpop.f32.mrb[73].mxu0  ;;  %v2446_v47 = vsel %vm171_vm0, %v5813_v38, 0.0  ;;  %v5818_v50 = vadd.f32 %v2395_v40, %v5750_v58 }
 0x7a4   :  { %v3303_v41 = vadd.f32 %v3302_v20, %v3301_v51  ;;  %v3304_v37 = vpop.f32.mrb[74].mxu0  ;;  %2447 = vadd.xlane.f32.xlu1 %v2446_v47 }
 0x7a5   :  { %v3305_v17 = vpop.f32.mrb[75].mxu0  ;;  %v2449_v45 = vsel %vm171_vm0, %v5818_v50, 0.0 }
 0x7a6   :  { %v2370_v53 = vadd.f32 %v3303_v41, %v3239_v21  ;;  %v3306_v28 = vadd.f32 %v3305_v17, %v3304_v37  ;;  %v3243_v52 = vpop.f32.mrb[76].mxu1  ;;  %2450 = vadd.xlane.f32.xlu0 %v2449_v45  ;;  %v6245_v21 = vld [vmem:[#allocation30_spill] sm:$0xff]  ;;  %v3645_v45 = vld [vmem:[#allocation10 + $0x8] sm:$0xff]  }
 0x7a7   :  { %v3244_v49 = vpop.f32.mrb[77].mxu1 }
 0x7a8   :  { %v2396_v3 = vadd.f32 %v2370_v53, %v6243_v32  ;;  %v2373_v59 = vadd.f32 %v3306_v28, %v3242_v54  ;;  %v3245_v55 = vadd.f32 %v3244_v49, %v3243_v52  ;;  %v3246_v56 = vpop.f32.mrb[78].mxu1  ;;  %v3644_v52 = vld [vmem:[#allocation10] sm:$0xff]  }
 0x7a9   :  { %v3247_v30 = vpop.f32.mrb[79].mxu1  ;;  %3407 = vmatprep.subr.bf16.mxu1 %v3644_v52 }
 0x7aa   :  { %v2397_v60 = vadd.f32 %v2373_v59, %v6244_v15  ;;  %v3248_v8 = vadd.f32 %v3247_v30, %v3246_v56  ;;  %v3307_v36 = vpop.f32.mrb[76].mxu0  ;;  %v5825_v10 = vadd.f32 %v2396_v3, %v5750_v58  ;;  %3408 = vmatpush3.bf16.msra.mxu1 %v3644_v52 }
 0x7ab   :  { %v3308_v24 = vpop.f32.mrb[77].mxu0  ;;  %3409 = vmatprep.subr.bf16.mxu1 %v3645_v45 }
 0x7ac   :  { %v3309_v19 = vadd.f32 %v3308_v24, %v3307_v36  ;;  %v3310_v62 = vpop.f32.mrb[78].mxu0  ;;  %v2452_v13 = vsel %vm171_vm0, %v5825_v10, 0.0  ;;  %v5830_v43 = vadd.f32 %v2397_v60, %v5750_v58 }
 0x7ad   :  { %v3311_v44 = vpop.f32.mrb[79].mxu0  ;;  %2453 = vadd.xlane.f32.xlu1 %v2452_v13 }
 0x7ae   :  { %v2378_v12 = vadd.f32 %v3309_v19, %v3245_v55  ;;  %v3312_v35 = vadd.f32 %v3311_v44, %v3310_v62  ;;  %v2455_v1 = vsel %vm171_vm0, %v5830_v43, 0.0  ;;  %3410 = vmatpush3.bf16.msra.mxu1 %v3645_v45 }
 0x7af   :  { %2456 = vadd.xlane.f32.xlu0 %v2455_v1 }
 0x7b0   :  { %v2398_v31 = vadd.f32 %v2378_v12, %v6245_v21  ;;  %v2381_v14 = vadd.f32 %v3312_v35, %v3248_v8 }
 0x7b2   :  { %v2399_v16 = vadd.f32 %v2381_v14, %v6246_v4  ;;  %v5837_v54 = vadd.f32 %v2398_v31, %v5750_v58 }
 0x7b4   :  { %v2458_v46 = vsel %vm171_vm0, %v5837_v54, 0.0  ;;  %v5842_v34 = vadd.f32 %v2399_v16, %v5750_v58 }
 0x7b5   :  { %2459 = vadd.xlane.f32.xlu1 %v2458_v46 }
 0x7b6   :  { %v2461_v57 = vsel %vm171_vm0, %v5842_v34, 0.0 }
 0x7b7   :  { %2462 = vadd.xlane.f32.xlu0 %v2461_v57 }
 0x7e5   :  { %v2418_v22 = vpop.xlane.xlu1 %2417 }
 0x7e6   :  { %v2464_v0 = vmul.f32 0.03125, %v2418_v22 }
 0x7e7   :  { %v2421_v48 = vpop.xlane.xlu0 %2420 }
 0x7e8   :  { %v5847_v7 = vsub.f32 %v5753_v5, %v2464_v0  ;;  %v2465_v25 = vmul.f32 0.03125, %v2421_v48 }
 0x7ea   :  { %v5850_v39 = vsub.f32 %v5758_v11, %v2465_v25  ;;  %v2496_v33 = vmul.f32 %v5847_v7, %v5847_v7 }
 0x7ec   :  { %v2512_v58 = vsel %vm171_vm0, %v2496_v33, 0.0  ;;  %v2497_v6 = vmul.f32 %v5850_v39, %v5850_v39 }
 0x7ed   :  { %2513 = vadd.xlane.f32.xlu1 %v2512_v58  ;;  %v2424_v29 = vpop.xlane.xlu1 %2423 }
 0x7ee   :  { %v2466_v9 = vmul.f32 0.03125, %v2424_v29  ;;  %v2515_v40 = vsel %vm171_vm0, %v2497_v6, 0.0 }
 0x7ef   :  { %2516 = vadd.xlane.f32.xlu0 %v2515_v40  ;;  %v2427_v51 = vpop.xlane.xlu0 %2426 }
 0x7f0   :  { %v5859_v20 = vsub.f32 %v5765_v2, %v2466_v9  ;;  %v2467_v41 = vmul.f32 0.03125, %v2427_v51 }
 0x7f2   :  { %v5862_v37 = vsub.f32 %v5770_v42, %v2467_v41  ;;  %v2498_v47 = vmul.f32 %v5859_v20, %v5859_v20 }
 0x7f4   :  { %v2518_v17 = vsel %vm171_vm0, %v2498_v47, 0.0  ;;  %v2499_v53 = vmul.f32 %v5862_v37, %v5862_v37 }
 0x7f5   :  { %2519 = vadd.xlane.f32.xlu1 %v2518_v17 }
 0x7f6   :  { %v2521_v28 = vsel %vm171_vm0, %v2499_v53, 0.0 }
 0x7f7   :  { %2522 = vadd.xlane.f32.xlu0 %v2521_v28 }
 0x819   :  { %v2430_v49 = vpop.xlane.xlu1 %2429 }
 0x81a   :  { %v2468_v32 = vmul.f32 0.03125, %v2430_v49 }
 0x81b   :  { %v2433_v3 = vpop.xlane.xlu0 %2432 }
 0x81c   :  { %v5871_v59 = vsub.f32 %v5777_v63, %v2468_v32  ;;  %v2469_v55 = vmul.f32 0.03125, %v2433_v3 }
 0x81e   :  { %v5874_v56 = vsub.f32 %v5782_v26, %v2469_v55  ;;  %v2500_v30 = vmul.f32 %v5871_v59, %v5871_v59 }
 0x820   :  { %v2524_v15 = vsel %vm171_vm0, %v2500_v30, 0.0  ;;  %v2501_v60 = vmul.f32 %v5874_v56, %v5874_v56 }
 0x821   :  { %2525 = vadd.xlane.f32.xlu1 %v2524_v15  ;;  %v2436_v8 = vpop.xlane.xlu1 %2435 }
 0x822   :  { %v2470_v36 = vmul.f32 0.03125, %v2436_v8  ;;  %v2527_v24 = vsel %vm171_vm0, %v2501_v60, 0.0 }
 0x823   :  { %2528 = vadd.xlane.f32.xlu0 %v2527_v24  ;;  %v2439_v19 = vpop.xlane.xlu0 %2438 }
 0x824   :  { %v5883_v62 = vsub.f32 %v5791_v23, %v2470_v36  ;;  %v2471_v13 = vmul.f32 0.03125, %v2439_v19 }
 0x826   :  { %v5886_v44 = vsub.f32 %v5796_v61, %v2471_v13  ;;  %v2502_v12 = vmul.f32 %v5883_v62, %v5883_v62 }
 0x828   :  { %v2530_v35 = vsel %vm171_vm0, %v2502_v12, 0.0  ;;  %v2503_v1 = vmul.f32 %v5886_v44, %v5886_v44 }
 0x829   :  { %2531 = vadd.xlane.f32.xlu1 %v2530_v35  ;;  %v2442_v21 = vpop.xlane.xlu1 %2441 }
 0x82a   :  { %v2472_v31 = vmul.f32 0.03125, %v2442_v21  ;;  %v2533_v14 = vsel %vm171_vm0, %v2503_v1, 0.0 }
 0x82b   :  { %2534 = vadd.xlane.f32.xlu0 %v2533_v14  ;;  %v2445_v4 = vpop.xlane.xlu0 %2444  ;;  %v3647_v14 = vld [vmem:[#allocation11 + $0x8] sm:$0xff]  }
 0x82c   :  { %v5895_v16 = vsub.f32 %v5801_v27, %v2472_v31  ;;  %v2473_v46 = vmul.f32 0.03125, %v2445_v4  ;;  %v3646_v31 = vld [vmem:[#allocation11] sm:$0xff]  }
 0x82d   :  { %3427 = vmatprep.subr.bf16.mxu0 %v3646_v31 }
 0x82e   :  { %v5898_v57 = vsub.f32 %v5806_v18, %v2473_v46  ;;  %v2504_v22 = vmul.f32 %v5895_v16, %v5895_v16  ;;  %3428 = vmatpush3.bf16.msra.mxu0 %v3646_v31 }
 0x82f   :  { %3429 = vmatprep.subr.bf16.mxu0 %v3647_v14 }
 0x830   :  { %v2536_v0 = vsel %vm171_vm0, %v2504_v22, 0.0  ;;  %v2505_v48 = vmul.f32 %v5898_v57, %v5898_v57 }
 0x831   :  { %2537 = vadd.xlane.f32.xlu1 %v2536_v0  ;;  %v2448_v25 = vpop.xlane.xlu1 %2447 }
 0x832   :  { %v2474_v33 = vmul.f32 0.03125, %v2448_v25  ;;  %v2539_v58 = vsel %vm171_vm0, %v2505_v48, 0.0  ;;  %3430 = vmatpush3.bf16.msra.mxu0 %v3647_v14 }
 0x833   :  { %2540 = vadd.xlane.f32.xlu0 %v2539_v58  ;;  %v2451_v6 = vpop.xlane.xlu0 %2450 }
 0x834   :  { %v5907_v29 = vsub.f32 %v5813_v38, %v2474_v33  ;;  %v2475_v9 = vmul.f32 0.03125, %v2451_v6 }
 0x836   :  { %v5910_v40 = vsub.f32 %v5818_v50, %v2475_v9  ;;  %v2506_v51 = vmul.f32 %v5907_v29, %v5907_v29 }
 0x838   :  { %v2542_v41 = vsel %vm171_vm0, %v2506_v51, 0.0  ;;  %v2507_v47 = vmul.f32 %v5910_v40, %v5910_v40 }
 0x839   :  { %2543 = vadd.xlane.f32.xlu1 %v2542_v41 }
 0x83a   :  { %v2454_v17 = vpop.xlane.xlu1 %2453  ;;  %v2545_v28 = vsel %vm171_vm0, %v2507_v47, 0.0 }
 0x83b   :  { %v2476_v53 = vmul.f32 0.03125, %v2454_v17  ;;  %2546 = vadd.xlane.f32.xlu0 %v2545_v28  ;;  %v5942_v17 = vld [vmem:[#allocation13 + $0x4] ss:$0 sm:$0xff] }
 0x83c   :  { %v2457_v52 = vpop.xlane.xlu0 %2456 }
 0x83d   :  { %v5919_v45 = vsub.f32 %v5825_v10, %v2476_v53  ;;  %v2477_v49 = vmul.f32 0.03125, %v2457_v52 }
 0x83f   :  { %v5922_v32 = vsub.f32 %v5830_v43, %v2477_v49  ;;  %v2508_v3 = vmul.f32 %v5919_v45, %v5919_v45 }
 0x841   :  { %v2548_v55 = vsel %vm171_vm0, %v2508_v3, 0.0  ;;  %v2509_v30 = vmul.f32 %v5922_v32, %v5922_v32  ;;  %v5947_v3 = vld [vmem:[#allocation13 + $0x5] ss:$0 sm:$0xff] }
 0x842   :  { %2549 = vadd.xlane.f32.xlu1 %v2548_v55  ;;  %v2460_v15 = vpop.xlane.xlu1 %2459 }
 0x843   :  { %v2478_v60 = vmul.f32 0.03125, %v2460_v15  ;;  %v2551_v8 = vsel %vm171_vm0, %v2509_v30, 0.0 }
 0x844   :  { %2552 = vadd.xlane.f32.xlu0 %v2551_v8  ;;  %v2463_v36 = vpop.xlane.xlu0 %2462 }
 0x845   :  { %v5931_v24 = vsub.f32 %v5837_v54, %v2478_v60  ;;  %v2479_v19 = vmul.f32 0.03125, %v2463_v36 }
 0x847   :  { %v5934_v13 = vsub.f32 %v5842_v34, %v2479_v19  ;;  %v2510_v12 = vmul.f32 %v5931_v24, %v5931_v24 }
 0x849   :  { %v2554_v35 = vsel %vm171_vm0, %v2510_v12, 0.0  ;;  %v2511_v1 = vmul.f32 %v5934_v13, %v5934_v13 }
 0x84a   :  { %2555 = vadd.xlane.f32.xlu1 %v2554_v35 }
 0x84b   :  { %v2557_v21 = vsel %vm171_vm0, %v2511_v1, 0.0 }
 0x84c   :  { %2558 = vadd.xlane.f32.xlu0 %v2557_v21 }
 0x87a   :  { %v2514_v4 = vpop.xlane.xlu1 %2513 }
 0x87b   :  { %v2560_v46 = vmul.f32 0.03125, %v2514_v4 }
 0x87c   :  { %v2517_v22 = vpop.xlane.xlu0 %2516 }
 0x87d   :  { %v2576_v0 = vadd.f32 1e-05, %v2560_v46  ;;  %v2561_v48 = vmul.f32 0.03125, %v2517_v22 }
 0x87f   :  { %3938 = vrsqrt.f32 %v2576_v0  ;;  %v2577_v25 = vadd.f32 1e-05, %v2561_v48 }
 0x881   :  { %3940 = vrsqrt.f32 %v2577_v25 }
 0x882   :  { %v2520_v33 = vpop.xlane.xlu1 %2519 }
 0x883   :  { %v2562_v58 = vmul.f32 0.03125, %v2520_v33 }
 0x884   :  { %v2523_v6 = vpop.xlane.xlu0 %2522 }
 0x885   :  { %v2578_v9 = vadd.f32 1e-05, %v2562_v58  ;;  %v2563_v51 = vmul.f32 0.03125, %v2523_v6 }
 0x887   :  { %3942 = vrsqrt.f32 %v2578_v9  ;;  %v2579_v41 = vadd.f32 1e-05, %v2563_v51 }
 0x889   :  { %v3939_v47 = vpop.eup %3938  ;;  %3944 = vrsqrt.f32 %v2579_v41 }
 0x88a   :  { %v2608_v53 = vmul.f32 %v3939_v47, %v5847_v7 }
 0x88b   :  { %v3941_v28 = vpop.eup %3940 }
 0x88c   :  { %v2609_v52 = vmul.f32 %v3941_v28, %v5850_v39  ;;  %v2624_v49 = vmul.f32 %v2608_v53, %v5942_v17 }
 0x88e   :  { %v2625_v55 = vmul.f32 %v2609_v52, %v5942_v17  ;;  %v2640_v30 = vadd.f32 %v2624_v49, %v5947_v3 }
 0x890   :  { %v2641_v15 = vadd.f32 %v2625_v55, %v5947_v3 }
 0x891   :  { %v3943_v60 = vpop.eup %3942 }
 0x892   :  { %v2610_v8 = vmul.f32 %v3943_v60, %v5859_v20  ;;  %v2656_v36 = vpack.c.bf16 %v2641_v15, %v2640_v30 }
 0x893   :  { %v3945_v19 = vpop.eup %3944 }
 0x894   :  { %v2626_v7 = vmul.f32 %v2610_v8, %v5942_v17  ;;  %v2611_v12 = vmul.f32 %v3945_v19, %v5862_v37  ;;  %3411 = vmatprep.mubr.msk.bf16.mxu1 %vm171_vm0, %v2656_v36 }
 0x896   :  { %v2627_v39 = vmul.f32 %v2611_v12, %v5942_v17  ;;  %v2642_v35 = vadd.f32 %v2626_v7, %v5947_v3 }
 0x898   :  { %v2643_v1 = vadd.f32 %v2627_v39, %v5947_v3 }
 0x89a   :  { %v2657_v21 = vpack.c.bf16 %v2643_v1, %v2642_v35 }
 0x89c   :  { %3412 = vmatmul.mubr.msk.bf16.vlgmr.msra.gmra.mrb[80].mxu1 %vm171_vm0, %v2657_v21 }
 0x8ae   :  { %v2526_v31 = vpop.xlane.xlu1 %2525 }
 0x8af   :  { %v2564_v14 = vmul.f32 0.03125, %v2526_v31 }
 0x8b0   :  { %v2529_v20 = vpop.xlane.xlu0 %2528 }
 0x8b1   :  { %v2580_v4 = vadd.f32 1e-05, %v2564_v14  ;;  %v2565_v46 = vmul.f32 0.03125, %v2529_v20 }
 0x8b3   :  { %3946 = vrsqrt.f32 %v2580_v4  ;;  %v2581_v22 = vadd.f32 1e-05, %v2565_v46 }
 0x8b5   :  { %3948 = vrsqrt.f32 %v2581_v22 }
 0x8b6   :  { %v2532_v37 = vpop.xlane.xlu1 %2531 }
 0x8b7   :  { %v2566_v0 = vmul.f32 0.03125, %v2532_v37 }
 0x8b8   :  { %v2535_v48 = vpop.xlane.xlu0 %2534 }
 0x8b9   :  { %v2582_v25 = vadd.f32 1e-05, %v2566_v0  ;;  %v2567_v33 = vmul.f32 0.03125, %v2535_v48 }
 0x8bb   :  { %3950 = vrsqrt.f32 %v2582_v25  ;;  %v2583_v58 = vadd.f32 1e-05, %v2567_v33 }
 0x8bd   :  { %v3947_v6 = vpop.eup %3946  ;;  %3952 = vrsqrt.f32 %v2583_v58 }
 0x8be   :  { %v2612_v9 = vmul.f32 %v3947_v6, %v5871_v59  ;;  %v2538_v51 = vpop.xlane.xlu1 %2537 }
 0x8bf   :  { %v3949_v41 = vpop.eup %3948  ;;  %v2568_v47 = vmul.f32 0.03125, %v2538_v51 }
 0x8c0   :  { %v2613_v53 = vmul.f32 %v3949_v41, %v5874_v56  ;;  %v2541_v28 = vpop.xlane.xlu0 %2540  ;;  %v2628_v52 = vmul.f32 %v2612_v9, %v5942_v17 }
 0x8c1   :  { %v2584_v49 = vadd.f32 1e-05, %v2568_v47  ;;  %v2569_v55 = vmul.f32 0.03125, %v2541_v28 }
 0x8c2   :  { %v2629_v30 = vmul.f32 %v2613_v53, %v5942_v17  ;;  %v2644_v60 = vadd.f32 %v2628_v52, %v5947_v3 }
 0x8c3   :  { %3954 = vrsqrt.f32 %v2584_v49  ;;  %v2585_v15 = vadd.f32 1e-05, %v2569_v55 }
 0x8c4   :  { %v2645_v8 = vadd.f32 %v2629_v30, %v5947_v3 }
 0x8c5   :  { %v3951_v36 = vpop.eup %3950  ;;  %3956 = vrsqrt.f32 %v2585_v15 }
 0x8c6   :  { %v2614_v59 = vmul.f32 %v3951_v36, %v5883_v62  ;;  %v2544_v19 = vpop.xlane.xlu1 %2543  ;;  %v2658_v7 = vpack.c.bf16 %v2645_v8, %v2644_v60 }
 0x8c7   :  { %v3953_v56 = vpop.eup %3952  ;;  %v2570_v12 = vmul.f32 0.03125, %v2544_v19 }
 0x8c8   :  { %v2615_v39 = vmul.f32 %v3953_v56, %v5886_v44  ;;  %v2547_v35 = vpop.xlane.xlu0 %2546  ;;  %3415 = vmatprep.mubr.msk.bf16.mxu1 %vm171_vm0, %v2658_v7  ;;  %v2630_v1 = vmul.f32 %v2614_v59, %v5942_v17 }
 0x8c9   :  { %v2586_v21 = vadd.f32 1e-05, %v2570_v12  ;;  %v2571_v31 = vmul.f32 0.03125, %v2547_v35 }
 0x8ca   :  { %v2631_v14 = vmul.f32 %v2615_v39, %v5942_v17  ;;  %v2646_v4 = vadd.f32 %v2630_v1, %v5947_v3 }
 0x8cb   :  { %3958 = vrsqrt.f32 %v2586_v21  ;;  %v2587_v20 = vadd.f32 1e-05, %v2571_v31 }
 0x8cc   :  { %v2647_v62 = vadd.f32 %v2631_v14, %v5947_v3 }
 0x8cd   :  { %v3955_v46 = vpop.eup %3954  ;;  %3960 = vrsqrt.f32 %v2587_v20 }
 0x8ce   :  { %v2616_v22 = vmul.f32 %v3955_v46, %v5895_v16  ;;  %v2659_v37 = vpack.c.bf16 %v2647_v62, %v2646_v4 }
 0x8cf   :  { %v2550_v44 = vpop.xlane.xlu1 %2549  ;;  %v3957_v0 = vpop.eup %3956 }
 0x8d0   :  { %v2572_v48 = vmul.f32 0.03125, %v2550_v44  ;;  %v2617_v25 = vmul.f32 %v3957_v0, %v5898_v57  ;;  %3416 = vmatmul.mubr.msk.bf16.gmra.mrb[84].mxu1 %vm171_vm0, %v2659_v37  ;;  %v2632_v58 = vmul.f32 %v2616_v22, %v5942_v17 }
 0x8d1   :  { %v2553_v33 = vpop.xlane.xlu0 %2552 }
 0x8d2   :  { %v2588_v6 = vadd.f32 1e-05, %v2572_v48  ;;  %v2573_v9 = vmul.f32 0.03125, %v2553_v33  ;;  %v2633_v51 = vmul.f32 %v2617_v25, %v5942_v17  ;;  %v2648_v47 = vadd.f32 %v2632_v58, %v5947_v3  ;;  %v3648_v48 = vld [vmem:[#allocation11 + $0x10] sm:$0xff]  }
 0x8d3   :  { %3431 = vmatprep.subr.bf16.mxu0 %v3648_v48 }
 0x8d4   :  { %3962 = vrsqrt.f32 %v2588_v6  ;;  %v2589_v41 = vadd.f32 1e-05, %v2573_v9  ;;  %v2649_v16 = vadd.f32 %v2633_v51, %v5947_v3  ;;  %3432 = vmatpush3.bf16.msra.mxu0 %v3648_v48 }
 0x8d5   :  { %v3959_v53 = vpop.eup %3958 }
 0x8d6   :  { %3964 = vrsqrt.f32 %v2589_v41  ;;  %v2618_v28 = vmul.f32 %v3959_v53, %v5907_v29  ;;  %v2660_v52 = vpack.c.bf16 %v2649_v16, %v2648_v47 }
 0x8d7   :  { %v2556_v57 = vpop.xlane.xlu1 %2555  ;;  %v3961_v49 = vpop.eup %3960 }
 0x8d8   :  { %v2574_v55 = vmul.f32 0.03125, %v2556_v57  ;;  %v2619_v30 = vmul.f32 %v3961_v49, %v5910_v40  ;;  %3419 = vmatprep.mubr.msk.bf16.mxu1 %vm171_vm0, %v2660_v52  ;;  %v2634_v60 = vmul.f32 %v2618_v28, %v5942_v17 }
 0x8d9   :  { %v2559_v15 = vpop.xlane.xlu0 %2558 }
 0x8da   :  { %v2590_v8 = vadd.f32 1e-05, %v2574_v55  ;;  %v2575_v36 = vmul.f32 0.03125, %v2559_v15  ;;  %v2635_v59 = vmul.f32 %v2619_v30, %v5942_v17  ;;  %v2650_v7 = vadd.f32 %v2634_v60, %v5947_v3 }
 0x8dc   :  { %3966 = vrsqrt.f32 %v2590_v8  ;;  %v2591_v19 = vadd.f32 1e-05, %v2575_v36  ;;  %v2651_v29 = vadd.f32 %v2635_v59, %v5947_v3 }
 0x8de   :  { %v3963_v56 = vpop.eup %3962  ;;  %3968 = vrsqrt.f32 %v2591_v19  ;;  %v2661_v40 = vpack.c.bf16 %v2651_v29, %v2650_v7 }
 0x8df   :  { %v2620_v12 = vmul.f32 %v3963_v56, %v5919_v45 }
 0x8e0   :  { %v3965_v39 = vpop.eup %3964  ;;  %3420 = vmatmul.mubr.msk.bf16.gmra.mrb[88].mxu1 %vm171_vm0, %v2661_v40 }
 0x8e1   :  { %v2621_v35 = vmul.f32 %v3965_v39, %v5922_v32  ;;  %v2636_v1 = vmul.f32 %v2620_v12, %v5942_v17 }
 0x8e3   :  { %v2637_v21 = vmul.f32 %v2621_v35, %v5942_v17  ;;  %v2652_v31 = vadd.f32 %v2636_v1, %v5947_v3 }
 0x8e5   :  { %v2653_v14 = vadd.f32 %v2637_v21, %v5947_v3 }
 0x8e6   :  { %v3967_v20 = vpop.eup %3966 }
 0x8e7   :  { %v2622_v4 = vmul.f32 %v3967_v20, %v5931_v24  ;;  %v2662_v62 = vpack.c.bf16 %v2653_v14, %v2652_v31  ;;  %v3649_v24 = vld [vmem:[#allocation11 + $0x18] sm:$0xff]  }
 0x8e8   :  { %v3969_v46 = vpop.eup %3968  ;;  %3433 = vmatprep.subr.bf16.mxu0 %v3649_v24 }
 0x8e9   :  { %v2623_v45 = vmul.f32 %v3969_v46, %v5934_v13  ;;  %3423 = vmatprep.mubr.msk.bf16.mxu1 %vm171_vm0, %v2662_v62  ;;  %v2638_v32 = vmul.f32 %v2622_v4, %v5942_v17  ;;  %3434 = vmatpush3.bf16.msra.mxu0 %v3649_v24  ;;  %v164_v13 = vld [vmem:[#allocation13 + $0x1] ss:$0 sm:$0xff] }
 0x8eb   :  { %v2639_v22 = vmul.f32 %v2623_v45, %v5942_v17  ;;  %v2654_v44 = vadd.f32 %v2638_v32, %v5947_v3 }
 0x8ed   :  { %v2655_v37 = vadd.f32 %v2639_v22, %v5947_v3 }
 0x8ef   :  { %v2663_v0 = vpack.c.bf16 %v2655_v37, %v2654_v44 }
 0x8f1   :  { %3424 = vmatmul.mubr.msk.bf16.gmra.mrb[92].mxu1 %vm171_vm0, %v2663_v0 }
 0x96f   :  { %v3413_v25 = vpop.f32.mrb[80].mxu1 }
 0x970   :  { %v2747_v33 = vadd.f32 %v3413_v25, %v164_v13  ;;  %v2738_v58 = vpop.f32.mrb[81].mxu1 }
 0x971   :  { %v2739_v6 = vadd.f32 %v2738_v58, %v164_v13  ;;  %v3414_v9 = vpop.f32.mrb[82].mxu1 }
 0x972   :  { %v2750_v17 = vadd.f32 %v3414_v9, %v164_v13  ;;  %v2741_v51 = vpop.f32.mrb[83].mxu1  ;;  %v2803_v47 = vmax.f32 %v2747_v33, 0.0 }
 0x973   :  { %v2742_v41 = vadd.f32 %v2741_v51, %v164_v13  ;;  %v2801_v16 = vmax.f32 %v2739_v6, 0.0 }
 0x974   :  { %v2804_v3 = vmax.f32 %v2750_v17, 0.0 }
 0x975   :  { %v2802_v53 = vmax.f32 %v2742_v41, 0.0 }
 0x976   :  { %v2818_v28 = vpack.c.bf16 %v2804_v3, %v2803_v47  ;;  %v170_v3 = vld [vmem:[#allocation13 + $0x7] ss:$0 sm:$0xff] }
 0x977   :  { %v2817_v57 = vpack.c.bf16 %v2802_v53, %v2801_v16 }
 0x979   :  { %3435 = vmatprep.mubr.msk.bf16.mxu0 %vm2857_vm4, %v2817_v57 }
 0x97a   :  { %3436 = vmatmul.mubr.msk.bf16.vlgmr.msra.gmra.mrb[80].mxu0 %vm2857_vm4, %v2818_v28 }
 0x9a3   :  { %v3417_v52 = vpop.f32.mrb[84].mxu1 }
 0x9a4   :  { %v2763_v49 = vadd.f32 %v3417_v52, %v164_v13  ;;  %v2754_v55 = vpop.f32.mrb[85].mxu1 }
 0x9a5   :  { %v2755_v30 = vadd.f32 %v2754_v55, %v164_v13  ;;  %v3418_v15 = vpop.f32.mrb[86].mxu1 }
 0x9a6   :  { %v2766_v60 = vadd.f32 %v3418_v15, %v164_v13  ;;  %v2757_v8 = vpop.f32.mrb[87].mxu1  ;;  %v2807_v59 = vmax.f32 %v2763_v49, 0.0 }
 0x9a7   :  { %v2758_v36 = vadd.f32 %v2757_v8, %v164_v13  ;;  %v2805_v7 = vmax.f32 %v2755_v30, 0.0 }
 0x9a8   :  { %v2808_v19 = vmax.f32 %v2766_v60, 0.0 }
 0x9a9   :  { %v2806_v29 = vmax.f32 %v2758_v36, 0.0 }
 0x9aa   :  { %v2820_v56 = vpack.c.bf16 %v2808_v19, %v2807_v59 }
 0x9ab   :  { %v2819_v12 = vpack.c.bf16 %v2806_v29, %v2805_v7 }
 0x9ad   :  { %3439 = vmatprep.mubr.msk.bf16.mxu0 %vm2857_vm4, %v2819_v12 }
 0x9ae   :  { %3440 = vmatmul.mubr.msk.bf16.gmra.mrb[84].mxu0 %vm2857_vm4, %v2820_v56 }
 0x9b3   :  { %v3421_v40 = vpop.f32.mrb[88].mxu1 }
 0x9b4   :  { %v2779_v39 = vadd.f32 %v3421_v40, %v164_v13  ;;  %v2770_v35 = vpop.f32.mrb[89].mxu1 }
 0x9b5   :  { %v2771_v1 = vadd.f32 %v2770_v35, %v164_v13  ;;  %v3422_v21 = vpop.f32.mrb[90].mxu1 }
 0x9b6   :  { %v2782_v31 = vadd.f32 %v3422_v21, %v164_v13  ;;  %v2773_v14 = vpop.f32.mrb[91].mxu1  ;;  %v2811_v4 = vmax.f32 %v2779_v39, 0.0 }
 0x9b7   :  { %v2774_v20 = vadd.f32 %v2773_v14, %v164_v13  ;;  %v2809_v46 = vmax.f32 %v2771_v1, 0.0 }
 0x9b8   :  { %v2812_v62 = vmax.f32 %v2782_v31, 0.0 }
 0x9b9   :  { %v2810_v45 = vmax.f32 %v2774_v20, 0.0 }
 0x9ba   :  { %v2822_v32 = vpack.c.bf16 %v2812_v62, %v2811_v4 }
 0x9bb   :  { %v2821_v22 = vpack.c.bf16 %v2810_v45, %v2809_v46 }
 0x9bd   :  { %3443 = vmatprep.mubr.msk.bf16.mxu0 %vm2857_vm4, %v2821_v22 }
 0x9be   :  { %3444 = vmatmul.mubr.msk.bf16.gmra.mrb[88].mxu0 %vm2857_vm4, %v2822_v32 }
 0x9c4   :  { %v3425_v44 = vpop.f32.mrb[92].mxu1 }
 0x9c5   :  { %v2795_v37 = vadd.f32 %v3425_v44, %v164_v13  ;;  %v2786_v0 = vpop.f32.mrb[93].mxu1 }
 0x9c6   :  { %v2787_v48 = vadd.f32 %v2786_v0, %v164_v13  ;;  %v3426_v24 = vpop.f32.mrb[94].mxu1 }
 0x9c7   :  { %v2798_v25 = vadd.f32 %v3426_v24, %v164_v13  ;;  %v2789_v33 = vpop.f32.mrb[95].mxu1  ;;  %v2815_v6 = vmax.f32 %v2795_v37, 0.0 }
 0x9c8   :  { %v2790_v58 = vadd.f32 %v2789_v33, %v164_v13  ;;  %v2813_v17 = vmax.f32 %v2787_v48, 0.0 }
 0x9c9   :  { %v2816_v9 = vmax.f32 %v2798_v25, 0.0 }
 0x9ca   :  { %v2814_v51 = vmax.f32 %v2790_v58, 0.0 }
 0x9cb   :  { %v2824_v41 = vpack.c.bf16 %v2816_v9, %v2815_v6 }
 0x9cc   :  { %v2823_v47 = vpack.c.bf16 %v2814_v51, %v2813_v17 }
 0x9ce   :  { %3447 = vmatprep.mubr.msk.bf16.mxu0 %vm2857_vm4, %v2823_v47 }
 0x9cf   :  { %3448 = vmatmul.mubr.msk.bf16.gmra.mrb[92].mxu0 %vm2857_vm4, %v2824_v41 }
 0xa4d   :  { %v3437_v16 = vpop.f32.mrb[80].mxu0 }
 0xa4e   :  { %v2925_v53 = vadd.f32 %v3437_v16, %v170_v3  ;;  %v2916_v28 = vpop.f32.mrb[81].mxu0 }
 0xa4f   :  { %v2917_v57 = vadd.f32 %v2916_v28, %v170_v3  ;;  %v3438_v52 = vpop.f32.mrb[82].mxu0 }
 0xa50   :  { %v2981_v49 = vadd.f32 %v2925_v53, %v5765_v2  ;;  %v2928_v55 = vadd.f32 %v3438_v52, %v170_v3  ;;  %v2919_v13 = vpop.f32.mrb[83].mxu0 }
 0xa51   :  { %v2979_v30 = vadd.f32 %v2917_v57, %v5753_v5  ;;  %v2920_v15 = vadd.f32 %v2919_v13, %v170_v3 }
 0xa52   :  { %v2982_v60 = vadd.f32 %v2928_v55, %v5770_v42  ;;  %2999 = vrot.lane.b32.xlu1 %v2981_v49, %s4174_s6 }
 0xa53   :  { %2995 = vst.msk [vmem:[#allocation14] sm:$0xff] %vm171_vm0, %v2979_v30  ;;  %v2980_v8 = vadd.f32 %v2920_v15, %v5758_v11 }
 0xa54   :  { %3001 = vrot.lane.b32.xlu0 %v2982_v60, %s4174_s6 }
 0xa55   :  { %2996 = vst.msk [vmem:[#allocation14 + $0x10] sm:$0xff] %vm171_vm0, %v2980_v8 }
 0xa81   :  { %v3441_v36 = vpop.f32.mrb[84].mxu0 }
 0xa82   :  { %v2941_v59 = vadd.f32 %v3441_v36, %v170_v3  ;;  %v2932_v2 = vpop.f32.mrb[85].mxu0 }
 0xa83   :  { %v3442_v19 = vpop.f32.mrb[86].mxu0  ;;  %v2933_v5 = vadd.f32 %v2932_v2, %v170_v3 }
 0xa84   :  { %v2985_v7 = vadd.f32 %v2941_v59, %v5791_v23  ;;  %v2944_v29 = vadd.f32 %v3442_v19, %v170_v3  ;;  %v2935_v56 = vpop.f32.mrb[87].mxu0 }
 0xa85   :  { %v2936_v12 = vadd.f32 %v2935_v56, %v170_v3  ;;  %v2983_v11 = vadd.f32 %v2933_v5, %v5777_v63 }
 0xa86   :  { %v2986_v42 = vadd.f32 %v2944_v29, %v5796_v61  ;;  %3021 = vrot.lane.b32.xlu0 %v2985_v7, %s4173_s12 }
 0xa87   :  { %v2984_v40 = vadd.f32 %v2936_v12, %v5782_v26 }
 0xa88   :  { %3023 = vrot.lane.b32.xlu1 %v2986_v42, %s4173_s12 }
 0xa8a   :  { %3010 = vrot.lane.b32.xlu0 %v2983_v11, %s4166_s15 }
 0xa8c   :  { %3012 = vrot.lane.b32.xlu1 %v2984_v40, %s4166_s15 }
 0xa91   :  { %v3445_v39 = vpop.f32.mrb[88].mxu0 }
 0xa92   :  { %v2957_v23 = vadd.f32 %v3445_v39, %v170_v3  ;;  %v2948_v35 = vpop.f32.mrb[89].mxu0 }
 0xa93   :  { %v2949_v1 = vadd.f32 %v2948_v35, %v170_v3  ;;  %v3446_v21 = vpop.f32.mrb[90].mxu0 }
 0xa94   :  { %v2989_v61 = vadd.f32 %v2957_v23, %v5813_v38  ;;  %v2960_v31 = vadd.f32 %v3446_v21, %v170_v3  ;;  %v2951_v14 = vpop.f32.mrb[91].mxu0 }
 0xa95   :  { %v2987_v20 = vadd.f32 %v2949_v1, %v5801_v27  ;;  %v2952_v63 = vadd.f32 %v2951_v14, %v170_v3 }
 0xa96   :  { %3034 = vrot.lane.b32.xlu1 %v2989_v61, %s4174_s6  ;;  %v2990_v4 = vadd.f32 %v2960_v31, %v5818_v50 }
 0xa97   :  { %3030 = vst.msk [vmem:[#allocation14 + $0x8] sm:$0xff] %vm171_vm0, %v2987_v20  ;;  %v2988_v26 = vadd.f32 %v2952_v63, %v5806_v18 }
 0xa99   :  { %3031 = vst.msk [vmem:[#allocation14 + $0x18] sm:$0xff] %vm171_vm0, %v2988_v26  ;;  %vm3005_vm0 = vcmask 523520  }
 0xa9a   :  { %3036 = vrot.lane.b32.xlu1 %v2990_v4, %s4174_s6 }
 0xaa2   :  { %v3449_v62 = vpop.f32.mrb[92].mxu0 }
 0xaa3   :  { %v2964_v46 = vpop.f32.mrb[93].mxu0  ;;  %v2973_v22 = vadd.f32 %v3449_v62, %v170_v3 }
 0xaa4   :  { %v2965_v38 = vadd.f32 %v2964_v46, %v170_v3  ;;  %v3450_v45 = vpop.f32.mrb[94].mxu0 }
 0xaa5   :  { %v2967_v32 = vpop.f32.mrb[95].mxu0  ;;  %v2976_v37 = vadd.f32 %v3450_v45, %v170_v3  ;;  %v2993_v18 = vadd.f32 %v2973_v22, %v5837_v54 }
 0xaa6   :  { %v2991_v27 = vadd.f32 %v2965_v38, %v5825_v10  ;;  %v2968_v44 = vadd.f32 %v2967_v32, %v170_v3 }
 0xaa7   :  { %v2994_v50 = vadd.f32 %v2976_v37, %v5842_v34 }
 0xaa8   :  { %v2992_v0 = vadd.f32 %v2968_v44, %v5830_v43  ;;  %3044 = vrot.lane.b32.xlu0 %v2991_v27, %s4166_s15 }
 0xaaa   :  { %3046 = vrot.lane.b32.xlu1 %v2992_v0, %s4166_s15  ;;  %s4180_s15 = smov [#allocation14]  }
 0xaab   :  { %s3067_s22 = sshll.u32 %s4180_s15, 4  ;;  %s3068_s22 = int_to_ptr.vmem [resolvable:$true] %s3067_s22 }
 0xaac   :  { %3054 = vrot.lane.b32.xlu0 %v2993_v18, %s4173_s12  ;;  %s4128_s23 = scalar_lea.vmem %s3068_s22, 512  ;;  %p4133_p1 = scmp.lt.s32.totalorder %s3068_s22, %s3068_s22 }
 0xaad   :  { %p4129_p0 = scmp.ne.s32.totalorder %s3068_s22, %s4128_s23  ;;  %p4134_p2 = scmp.lt.s32.totalorder %s4128_s23, %s4128_s23 }
 0xaae   :  { %3056 = vrot.lane.b32.xlu1 %v2994_v50, %s4173_s12 }
 0xaaf   :  { %p4135_p3 = por %p4134_p2, %p4133_p1 }
 0xab1   :  { %p4136_p4 = pnand %p4135_p3, %p4129_p0 }
 0xac4   :  { %v3000_v48 = vpop.permute.xlu1 %2999 }
 0xac5   :  { %3006 = vst.msk [vmem:[#allocation14] sm:$0xff] %vm3005_vm0, %v3000_v48 }
 0xac6   :  { %v3002_v10 = vpop.permute.xlu0 %3001 }
 0xac7   :  { %3007 = vst.msk [vmem:[#allocation14 + $0x10] sm:$0xff] %vm3005_vm0, %v3002_v10 }
 0xaf8   :  { %v3022_v43 = vpop.permute.xlu0 %3021 }
 0xafa   :  { %v3024_v24 = vpop.permute.xlu1 %3023 }
 0xafc   :  { %v3011_v54 = vpop.permute.xlu0 %3010 }
 0xafd   :  { %3017 = vst.msk [vmem:[#allocation14] sm:$0xff] %vm3016_vm5, %v3011_v54 }
 0xafe   :  { %3028 = vst.msk [vmem:[#allocation14] sm:$0xff] %vm3027_vm6, %v3022_v43  ;;  %v3013_v34 = vpop.permute.xlu1 %3012 }
 0xaff   :  { %3018 = vst.msk [vmem:[#allocation14 + $0x10] sm:$0xff] %vm3016_vm5, %v3013_v34 }
 0xb00   :  { %3029 = vst.msk [vmem:[#allocation14 + $0x10] sm:$0xff] %vm3027_vm6, %v3024_v24 }
 0xb08   :  { %v3035_v25 = vpop.permute.xlu1 %3034 }
 0xb09   :  { %3040 = vst.msk [vmem:[#allocation14 + $0x8] sm:$0xff] %vm3005_vm0, %v3035_v25 }
 0xb0c   :  { %v3037_v33 = vpop.permute.xlu1 %3036 }
 0xb0d   :  { %3041 = vst.msk [vmem:[#allocation14 + $0x18] sm:$0xff] %vm3005_vm0, %v3037_v33 }
 0xb1a   :  { %v3045_v58 = vpop.permute.xlu0 %3044 }
 0xb1b   :  { %3050 = vst.msk [vmem:[#allocation14 + $0x8] sm:$0xff] %vm3016_vm5, %v3045_v58 }
 0xb1c   :  { %v3047_v6 = vpop.permute.xlu1 %3046 }
 0xb1d   :  { %3051 = vst.msk [vmem:[#allocation14 + $0x18] sm:$0xff] %vm3016_vm5, %v3047_v6 }
 0xb1e   :  { %v3055_v9 = vpop.permute.xlu0 %3054 }
 0xb1f   :  { %3060 = vst.msk [vmem:[#allocation14 + $0x8] sm:$0xff] %vm3027_vm6, %v3055_v9 }
 0xb20   :  { %v3057_v17 = vpop.permute.xlu1 %3056 }
 0xb21   :  { %3061 = vst.msk [vmem:[#allocation14 + $0x18] sm:$0xff] %vm3027_vm6, %v3057_v17 }
 0xb22   :  { %4139 = shalt.err (!%p4136_p4)
}
 0xb23   :  { %s4140_s27 = scalar_lea.hbm %s6076_s7, 512 }
 0xb24   :  { %p4141_p5 = scmp.ne.s32.totalorder %s6076_s7, %s4140_s27  ;;  %p4144_p6 = scmp.lt.u32.totalorder %s4140_s27, %s6076_s7 }
 0xb26   :  { %p4146_p7 = pnand %p4144_p6, %p4141_p5 }
 0xb28   :  { %4149 = shalt.err (!%p4146_p7)
}
 0xb29   :  { %3073 = dma.vmem_to_hbm [thread:$0]  %s3068_s22, 512, %s6076_s7, [#allocation4], %s4168_s5, %s4168_s5, %s4169_s28  }
 0xb2a   :  { %4158 = dma.done.wait [#allocation4], 512  }
 0xb2b   :  { %4159 = vsyncadd [#allocation4], 4294966784 }
 0xb2c   :  { %3077 = vsyncpa [#allocation3], 1 }
 0xb2d   :  { %3078 = vsyncpa [#allocation6], 1 }
 0xb2e   :  { %3079 = vsyncpa [#allocation9], 1 }
 0xb2f   :  { %3080 = vsyncpa [#allocation12], 1 }
 0xb30   :  { %3081 = vsyncpa [#allocation4], 1 }

</bundles_post_ra>
